<compile_context>
chip_gen: v7x
topology: tpu7x:2x2x1
jax: 0.10.0
libtpu: 0.0.40
codegen_flags: <defaults>
</compile_context>

<pallas_src>
import jax
import jax.numpy as jnp
import numpy as np
from jax.experimental import pallas as pl
from jax.experimental.pallas import tpu as pltpu  # noqa: F401  (TPU backend import)

jax.config.update("jax_default_matmul_precision", "highest")

# ---- model hyper-parameters (small, consistent with the module) -------------
VOCAB = 32
EMBED = 16
HIDDEN = 32          # LSTM input size = 2*EMBED == HIDDEN, so weights stack cleanly
NUM_LAYERS = 2
PAD_IDX = 0
BATCH = 2
MAX_LEN = 8
STEPS = 4            # number of fused (teacher-forced) decode steps


# ------------------------------------------------------------------ kernel ---
def _make_kernel(B, T, H, E, L, S, V):
    def kernel(emb_ref, enc_ref, escore_ref, mask_ref, h0_ref, c0_ref, vh_ref,
               wc0_ref, we0_ref, wh0_ref, b0_ref, wf_ref, bf_ref, ow_ref, ob_ref,
               la_ref, state_ref):
        # ---- step-invariant loads, hoisted out of the unrolled loop ----------
        enc2d = enc_ref[...]             # [B*T, H]
        enc_score = escore_ref[...]      # [B, T]   ve.enc[b,t] + v.b  (precomputed)
        ctx_mask = mask_ref[...]         # [B, B*T] static block-diagonal selector
        vh = vh_ref[...]                 # [H, 1]
        wc0 = wc0_ref[...]               # [H, 4H]  (hew folded in)
        we0 = we0_ref[...]               # [E, 4H]
        wh0 = wh0_ref[...]               # [H, 4H]
        b0 = b0_ref[...]                 # [1, 4H]
        wf_l = [wf_ref[l] for l in range(L - 1)]   # each [2H, 4H]
        bf_l = [bf_ref[l] for l in range(L - 1)]   # each [1, 4H]
        ow = ow_ref[...]                 # [H, V]
        ob = ob_ref[...]                 # [1, V]

        # recurrent state carried as values across the unrolled steps
        h = [h0_ref[l * B:(l + 1) * B, :] for l in range(L)]   # each [B, H]
        c = [c0_ref[l * B:(l + 1) * B, :] for l in range(L)]

        for s in range(S):               # fully unrolled: static offsets everywhere
            # ---- GlobalAttn('concat') scores: only the hidden term per step --
            s_h = jnp.dot(h[L - 1], vh, preferred_element_type=jnp.float32)  # [B, 1]
            scores = enc_score + s_h                                         # [B, T]
            m = jnp.max(scores, axis=1, keepdims=True)
            e = jnp.exp(scores - m)
            w_bt = e / jnp.sum(e, axis=1, keepdims=True)                     # [B, T]

            # ---- context: one block-diagonal matmul [B,B*T] @ [B*T,H] -------
            bd = jnp.concatenate([w_bt] * B, axis=1) * ctx_mask              # [B, B*T]
            context = jnp.dot(bd, enc2d, preferred_element_type=jnp.float32)  # [B, H]

            emb_s = emb_ref[s * B:(s + 1) * B, :]                            # [B, E]

            # ---- layer 0: hidden_embedded_linear folded into the gate weights
            gates = (jnp.dot(context, wc0, preferred_element_type=jnp.float32)
                     + jnp.dot(emb_s, we0, preferred_element_type=jnp.float32)
                     + jnp.dot(h[0], wh0, preferred_element_type=jnp.float32)
                     + b0)                                                   # [B, 4H]
            i_g = jax.nn.sigmoid(gates[:, 0 * H:1 * H])
            f_g = jax.nn.sigmoid(gates[:, 1 * H:2 * H])
            g_g = jnp.tanh(gates[:, 2 * H:3 * H])
            o_g = jax.nn.sigmoid(gates[:, 3 * H:4 * H])
            c[0] = f_g * c[0] + i_g * g_g
            h[0] = o_g * jnp.tanh(c[0])
            x = h[0]

            # ---- layers 1..L-1: fused-concat gate matmul ---------------------
            for l in range(1, L):
                xh = jnp.concatenate([x, h[l]], axis=1)                      # [B, 2H]
                gates = jnp.dot(xh, wf_l[l - 1],
                                preferred_element_type=jnp.float32) + bf_l[l - 1]
                i_g = jax.nn.sigmoid(gates[:, 0 * H:1 * H])
                f_g = jax.nn.sigmoid(gates[:, 1 * H:2 * H])
                g_g = jnp.tanh(gates[:, 2 * H:3 * H])
                o_g = jax.nn.sigmoid(gates[:, 3 * H:4 * H])
                c[l] = f_g * c[l] + i_g * g_g
                h[l] = o_g * jnp.tanh(c[l])
                x = h[l]
            # TODO(synk): inter-layer LSTM dropout is identity in eval mode; not applied.

            # ---- output projection + exact log_softmax -----------------------
            logits = jnp.dot(x, ow, preferred_element_type=jnp.float32) + ob  # [B, V]
            lm = jnp.max(logits, axis=1, keepdims=True)
            lse = lm + jnp.log(jnp.sum(jnp.exp(logits - lm), axis=1, keepdims=True))
            # consolidated lane slab: [log-probs | attention weights]
            la_ref[s * B:(s + 1) * B, :] = jnp.concatenate([logits - lse, w_bt], axis=1)

        # final recurrent state, written once: [h_0..h_{L-1}; c_0..c_{L-1}]
        state_ref[...] = jnp.concatenate(h + c, axis=0)                      # [2*L*B, H]

    return kernel


# ----------------------------------------------------------------- wrapper ---
def prepare_params(p):
    """One-time param re-layout: fold v through the attention linear, fold the
    hidden->embed linear into the layer-0 LSTM gates, transpose all PyTorch
    [out,in] weights to [in,out], fuse the per-layer gate weights/biases."""
    H, E, L = HIDDEN, EMBED, NUM_LAYERS
    vfold = p["attn_v"] @ p["attn_w"]                      # [1, 2H]; [:H]->h, [H:]->enc

    w_ih0 = p["w_ih"][0]                                   # [4H, 2E]
    w_ctx_part = w_ih0[:, :E].T                            # [E, 4H]  (multiplies ctx_e)
    wc0 = p["he_w"].T @ w_ctx_part                         # [H, 4H]  hew folded
    we0 = w_ih0[:, E:].T                                   # [E, 4H]
    wh0 = p["w_hh"][0].T                                   # [H, 4H]
    b0 = (p["b_ih"][0] + p["b_hh"][0])[None, :] + p["he_b"] @ w_ctx_part   # [1, 4H]

    wf = jnp.stack([jnp.concatenate([p["w_ih"][l].T, p["w_hh"][l].T], axis=0)
                    for l in range(1, L)], axis=0)         # [L-1, 2H, 4H]
    bf = (p["b_ih"][1:] + p["b_hh"][1:])[:, None, :]       # [L-1, 1, 4H]

    return dict(
        embedding=p["embedding"],
        ve_row=vfold[:, H:],                    # [1, H]  (multiplies encoder output)
        vh_col=vfold[:, :H].T,                  # [H, 1]  (multiplies hidden state)
        vb=p["attn_v"] @ p["attn_b"].T,         # [1, 1]
        wc0=wc0, we0=we0, wh0=wh0, b0=b0,
        wf=wf, bf=bf,
        owt=p["out_w"].T,                       # [H, V]
        ob=p["out_b"],                          # [1, V]
    )


@jax.jit
def bahdanau_decoder_decode(tokens, h0, c0, encoder_outputs, kp):
    """tokens: [S, B] int32 (teacher-forced inputs, one per fused decode step);
    h0/c0: [L, B, H]; encoder_outputs: [T, B, H] (seq-major, batch_first=False)."""
    S, B = tokens.shape
    T, _, H = encoder_outputs.shape
    L = h0.shape[0]
    E = kp["embedding"].shape[1]
    V = kp["owt"].shape[1]

    # embedding lookup (+ eval-mode dropout identity) stays as wrapper glue
    emb2d = kp["embedding"][tokens].reshape(S * B, E)                      # [S*B, E]
    # TODO(synk): nn.Dropout is identity in eval mode; not applied.
    enc2d = jnp.transpose(encoder_outputs, (1, 0, 2)).reshape(B * T, H)    # [B*T, H]
    # hoisted step-invariant encoder score term:  ve.enc[b,t] + v.b
    enc_score = (enc2d @ kp["ve_row"].T).reshape(B, T) + kp["vb"]          # [B, T]
    # static block-diagonal selector for the single context matmul
    blk = jnp.arange(B * T) // T
    ctx_mask = (blk[None, :] == jnp.arange(B)[:, None]).astype(jnp.float32)  # [B, B*T]

    h0f = h0.reshape(L * B, H)
    c0f = c0.reshape(L * B, H)

    inputs = (emb2d, enc2d, enc_score, ctx_mask, h0f, c0f,
              kp["vh_col"], kp["wc0"], kp["we0"], kp["wh0"], kp["b0"],
              kp["wf"], kp["bf"], kp["owt"], kp["ob"])

    out_shapes = (
        jax.ShapeDtypeStruct((S * B, V + T), jnp.float32),   # [log-probs | attn]
        jax.ShapeDtypeStruct((2 * L * B, H), jnp.float32),   # [h_n ; c_n]
    )

    # Single invocation, no grid: everything is resident in VMEM (tens of KB),
    # the S-step recurrence is unrolled inside the kernel.
    la, state = pl.pallas_call(
        _make_kernel(B, T, H, E, L, S, V),
        out_shape=out_shapes,
    )(*inputs)

    logp = la[:, :V].reshape(S, B, V)
    attn = la[:, V:].reshape(S, B, 1, T)
    hn = state[:L * B].reshape(L, B, H)
    cn = state[L * B:].reshape(L, B, H)
    return logp, (hn, cn), attn


# ------------------------------------------------------------------- setup ---
def init_params(key):
    ks = jax.random.split(key, 12)

    def u(k, shape, scale=0.2):
        return jax.random.uniform(k, shape, jnp.float32, -scale, scale)

    emb = u(ks[0], (VOCAB, EMBED)).at[PAD_IDX].set(0.0)   # padding_idx row is zero
    return dict(
        embedding=emb,
        attn_w=u(ks[1], (HIDDEN, 2 * HIDDEN)),            # Linear(2H -> H)
        attn_b=u(ks[2], (1, HIDDEN)),
        attn_v=u(ks[3], (1, HIDDEN)),                     # v parameter
        he_w=u(ks[4], (EMBED, HIDDEN)),                   # Linear(H -> E)
        he_b=u(ks[5], (1, EMBED)),
        w_ih=u(ks[6], (NUM_LAYERS, 4 * HIDDEN, HIDDEN)),  # layer0 input = 2*EMBED == H
        w_hh=u(ks[7], (NUM_LAYERS, 4 * HIDDEN, HIDDEN)),
        b_ih=u(ks[8], (NUM_LAYERS, 4 * HIDDEN)),
        b_hh=u(ks[9], (NUM_LAYERS, 4 * HIDDEN)),
        out_w=u(ks[10], (VOCAB, HIDDEN)),                 # Linear(H -> V), tied=False
        out_b=u(ks[11], (1, VOCAB)),
    )


def reference_step(token_ids, h0, c0, enc, p):
    """Pure-JAX mirror of one PyTorch forward (eval mode)."""
    T, B, H = enc.shape
    emb = p["embedding"][token_ids]                       # [1, B, E]
    h_last = h0[-1]
    cat = jnp.concatenate([jnp.broadcast_to(h_last[None], (T, B, H)), enc], axis=-1)
    proj = jnp.einsum('tbi,oi->tbo', cat, p["attn_w"]) + p["attn_b"][0]
    scores = jnp.einsum('tbo,o->tb', proj, p["attn_v"][0]).T             # [B, T]
    w = jax.nn.softmax(scores, axis=1)
    context = jnp.einsum('bt,tbh->bh', w, enc)
    ctx_e = context @ p["he_w"].T + p["he_b"][0]
    x = jnp.concatenate([ctx_e, emb[0]], axis=1)
    hs, cs = [], []
    for l in range(h0.shape[0]):
        gates = x @ p["w_ih"][l].T + h0[l] @ p["w_hh"][l].T + p["b_ih"][l] + p["b_hh"][l]
        i, f, g, o = jnp.split(gates, 4, axis=1)
        c = jax.nn.sigmoid(f) * c0[l] + jax.nn.sigmoid(i) * jnp.tanh(g)
        h = jax.nn.sigmoid(o) * jnp.tanh(c)
        hs.append(h); cs.append(c); x = h
    logits = x @ p["out_w"].T + p["out_b"][0]
    return jax.nn.log_softmax(logits, axis=1), (jnp.stack(hs), jnp.stack(cs)), w[:, None, :]


def reference_decode(tokens, h0, c0, enc, p):
    h, c = h0, c0
    logps, attns = [], []
    for s in range(tokens.shape[0]):
        lp, (h, c), w = reference_step(tokens[s:s + 1], h, c, enc, p)
        logps.append(lp)
        attns.append(w)
    return jnp.stack(logps), (h, c), jnp.stack(attns)


if __name__ == "__main__":
    key = jax.random.PRNGKey(0)
    kp_, kt, kh, kc, ke = jax.random.split(key, 5)
    params = init_params(kp_)
    kparams = prepare_params(params)                     # one-time re-layout

    tokens = jax.random.randint(kt, (STEPS, BATCH), 0, VOCAB)                    # [S, B]
    h0 = jax.random.normal(kh, (NUM_LAYERS, BATCH, HIDDEN), jnp.float32)
    c0 = jax.random.normal(kc, (NUM_LAYERS, BATCH, HIDDEN), jnp.float32)
    enc = jax.random.normal(ke, (MAX_LEN, BATCH, HIDDEN), jnp.float32)           # [T, B, H]

    logp, (hn, cn), attn = bahdanau_decoder_decode(tokens, h0, c0, enc, kparams)
    jax.block_until_ready((logp, hn, cn, attn))

    r_logp, (r_hn, r_cn), r_attn = reference_decode(tokens, h0, c0, enc, params)
    assert np.allclose(np.asarray(logp), np.asarray(r_logp), atol=1e-4, rtol=1e-4)
    assert np.allclose(np.asarray(hn), np.asarray(r_hn), atol=1e-4, rtol=1e-4)
    assert np.allclose(np.asarray(cn), np.asarray(r_cn), atol=1e-4, rtol=1e-4)
    assert np.allclose(np.asarray(attn), np.asarray(r_attn), atol=1e-4, rtol=1e-4)
    print("KERNEL_OK")
</pallas_src>

<mosaic_0001>
module attributes {stable_mosaic.version = 11 : i64} {
  func.func @kernel(%arg0: memref<8x16xf32, #tpu.memory_space<vmem>>, %arg1: memref<16x32xf32, #tpu.memory_space<vmem>>, %arg2: memref<2x8xf32, #tpu.memory_space<vmem>>, %arg3: memref<2x16xf32, #tpu.memory_space<vmem>>, %arg4: memref<4x32xf32, #tpu.memory_space<vmem>>, %arg5: memref<4x32xf32, #tpu.memory_space<vmem>>, %arg6: memref<32x1xf32, #tpu.memory_space<vmem>>, %arg7: memref<32x128xf32, #tpu.memory_space<vmem>>, %arg8: memref<16x128xf32, #tpu.memory_space<vmem>>, %arg9: memref<32x128xf32, #tpu.memory_space<vmem>>, %arg10: memref<1x128xf32, #tpu.memory_space<vmem>>, %arg11: memref<1x64x128xf32, #tpu.memory_space<vmem>>, %arg12: memref<1x1x128xf32, #tpu.memory_space<vmem>>, %arg13: memref<32x32xf32, #tpu.memory_space<vmem>>, %arg14: memref<1x32xf32, #tpu.memory_space<vmem>>, %arg15: memref<8x40xf32, #tpu.memory_space<vmem>>, %arg16: memref<8x32xf32, #tpu.memory_space<vmem>>) attributes {dimension_semantics = [], scalar_prefetch = 0 : i64, scratch_operands = 0 : i64, tpu.core_type = #tpu.core_type<tc>} {
    %c0 = arith.constant 0 : index
    %c0_0 = arith.constant 0 : index
    %0 = vector.load %arg1[%c0, %c0_0] : memref<16x32xf32, #tpu.memory_space<vmem>>, vector<16x32xf32>
    %c0_1 = arith.constant 0 : index
    %c0_2 = arith.constant 0 : index
    %1 = vector.load %arg2[%c0_1, %c0_2] : memref<2x8xf32, #tpu.memory_space<vmem>>, vector<2x8xf32>
    %c0_3 = arith.constant 0 : index
    %c0_4 = arith.constant 0 : index
    %2 = vector.load %arg3[%c0_3, %c0_4] : memref<2x16xf32, #tpu.memory_space<vmem>>, vector<2x16xf32>
    %c0_5 = arith.constant 0 : index
    %c0_6 = arith.constant 0 : index
    %3 = vector.load %arg6[%c0_5, %c0_6] : memref<32x1xf32, #tpu.memory_space<vmem>>, vector<32x1xf32>
    %c0_7 = arith.constant 0 : index
    %c0_8 = arith.constant 0 : index
    %4 = vector.load %arg7[%c0_7, %c0_8] : memref<32x128xf32, #tpu.memory_space<vmem>>, vector<32x128xf32>
    %c0_9 = arith.constant 0 : index
    %c0_10 = arith.constant 0 : index
    %5 = vector.load %arg8[%c0_9, %c0_10] : memref<16x128xf32, #tpu.memory_space<vmem>>, vector<16x128xf32>
    %c0_11 = arith.constant 0 : index
    %c0_12 = arith.constant 0 : index
    %6 = vector.load %arg9[%c0_11, %c0_12] : memref<32x128xf32, #tpu.memory_space<vmem>>, vector<32x128xf32>
    %c0_13 = arith.constant 0 : index
    %c0_14 = arith.constant 0 : index
    %7 = vector.load %arg10[%c0_13, %c0_14] : memref<1x128xf32, #tpu.memory_space<vmem>>, vector<1x128xf32>
    %c0_15 = arith.constant 0 : index
    %c0_16 = arith.constant 0 : index
    %c0_17 = arith.constant 0 : index
    %8 = vector.load %arg11[%c0_15, %c0_16, %c0_17] : memref<1x64x128xf32, #tpu.memory_space<vmem>>, vector<1x64x128xf32>
    %9 = vector.shape_cast %8 : vector<1x64x128xf32> to vector<64x128xf32>
    %c0_18 = arith.constant 0 : index
    %c0_19 = arith.constant 0 : index
    %c0_20 = arith.constant 0 : index
    %10 = vector.load %arg12[%c0_18, %c0_19, %c0_20] : memref<1x1x128xf32, #tpu.memory_space<vmem>>, vector<1x1x128xf32>
    %11 = vector.shape_cast %10 : vector<1x1x128xf32> to vector<1x128xf32>
    %c0_21 = arith.constant 0 : index
    %c0_22 = arith.constant 0 : index
    %12 = vector.load %arg13[%c0_21, %c0_22] : memref<32x32xf32, #tpu.memory_space<vmem>>, vector<32x32xf32>
    %c0_23 = arith.constant 0 : index
    %c0_24 = arith.constant 0 : index
    %13 = vector.load %arg14[%c0_23, %c0_24] : memref<1x32xf32, #tpu.memory_space<vmem>>, vector<1x32xf32>
    %c0_25 = arith.constant 0 : index
    %c0_26 = arith.constant 0 : index
    %14 = vector.load %arg4[%c0_25, %c0_26] : memref<4x32xf32, #tpu.memory_space<vmem>>, vector<2x32xf32>
    %c2 = arith.constant 2 : index
    %c0_27 = arith.constant 0 : index
    %15 = vector.load %arg4[%c2, %c0_27] : memref<4x32xf32, #tpu.memory_space<vmem>>, vector<2x32xf32>
    %c0_28 = arith.constant 0 : index
    %c0_29 = arith.constant 0 : index
    %16 = vector.load %arg5[%c0_28, %c0_29] : memref<4x32xf32, #tpu.memory_space<vmem>>, vector<2x32xf32>
    %c2_30 = arith.constant 2 : index
    %c0_31 = arith.constant 0 : index
    %17 = vector.load %arg5[%c2_30, %c0_31] : memref<4x32xf32, #tpu.memory_space<vmem>>, vector<2x32xf32>
    %cst = arith.constant dense<0.000000e+00> : vector<2x1xf32>
    %18 = tpu.matmul %15, %3, %cst {dimension_numbers = #tpu.dot_dimension_numbers<[1], [0], [0], [1], [0, 0, 1, 1], [], []>, precision = #tpu.contract_precision<fp32>} : vector<2x32xf32>, vector<32x1xf32>, vector<2x1xf32> -> vector<2x1xf32>
    %19 = vector.broadcast %18 : vector<2x1xf32> to vector<2x8xf32>
    %20 = arith.addf %1, %19 : vector<2x8xf32>
    %cst_32 = arith.constant dense<0xFF800000> : vector<2xf32>
    %21 = vector.multi_reduction <maximumf>, %20, %cst_32 [1] : vector<2x8xf32> to vector<2xf32>
    %22 = vector.shape_cast %21 : vector<2xf32> to vector<2x1xf32>
    %23 = vector.broadcast %22 : vector<2x1xf32> to vector<2x8xf32>
    %24 = arith.subf %20, %23 : vector<2x8xf32>
    %25 = math.exp %24 : vector<2x8xf32>
    %cst_33 = arith.constant dense<0.000000e+00> : vector<2xf32>
    %26 = vector.multi_reduction <add>, %25, %cst_33 [1] : vector<2x8xf32> to vector<2xf32>
    %27 = vector.shape_cast %26 : vector<2xf32> to vector<2x1xf32>
    %28 = vector.broadcast %27 : vector<2x1xf32> to vector<2x8xf32>
    %29 = arith.divf %25, %28 : vector<2x8xf32>
    %30 = tpu.concatenate %29, %29 in 1 : vector<2x8xf32>, vector<2x8xf32> -> vector<2x16xf32>
    %31 = arith.mulf %30, %2 : vector<2x16xf32>
    %cst_34 = arith.constant dense<0.000000e+00> : vector<2x32xf32>
    %32 = tpu.matmul %31, %0, %cst_34 {dimension_numbers = #tpu.dot_dimension_numbers<[1], [0], [0], [1], [0, 0, 1, 1], [], []>, precision = #tpu.contract_precision<fp32>} : vector<2x16xf32>, vector<16x32xf32>, vector<2x32xf32> -> vector<2x32xf32>
    %c0_35 = arith.constant 0 : index
    %c0_36 = arith.constant 0 : index
    %33 = vector.load %arg0[%c0_35, %c0_36] : memref<8x16xf32, #tpu.memory_space<vmem>>, vector<2x16xf32>
    %cst_37 = arith.constant dense<0.000000e+00> : vector<2x128xf32>
    %34 = tpu.matmul %32, %4, %cst_37 {dimension_numbers = #tpu.dot_dimension_numbers<[1], [0], [0], [1], [0, 0, 1, 1], [], []>, precision = #tpu.contract_precision<fp32>} : vector<2x32xf32>, vector<32x128xf32>, vector<2x128xf32> -> vector<2x128xf32>
    %cst_38 = arith.constant dense<0.000000e+00> : vector<2x128xf32>
    %35 = tpu.matmul %33, %5, %cst_38 {dimension_numbers = #tpu.dot_dimension_numbers<[1], [0], [0], [1], [0, 0, 1, 1], [], []>, precision = #tpu.contract_precision<fp32>} : vector<2x16xf32>, vector<16x128xf32>, vector<2x128xf32> -> vector<2x128xf32>
    %36 = arith.addf %34, %35 : vector<2x128xf32>
    %cst_39 = arith.constant dense<0.000000e+00> : vector<2x128xf32>
    %37 = tpu.matmul %14, %6, %cst_39 {dimension_numbers = #tpu.dot_dimension_numbers<[1], [0], [0], [1], [0, 0, 1, 1], [], []>, precision = #tpu.contract_precision<fp32>} : vector<2x32xf32>, vector<32x128xf32>, vector<2x128xf32> -> vector<2x128xf32>
    %38 = arith.addf %36, %37 : vector<2x128xf32>
    %39 = vector.broadcast %7 : vector<1x128xf32> to vector<2x128xf32>
    %40 = arith.addf %38, %39 : vector<2x128xf32>
    %41 = vector.extract_strided_slice %40 {offsets = [0, 0], sizes = [2, 32], strides = [1, 1]} : vector<2x128xf32> to vector<2x32xf32>
    %42 = arith.negf %41 : vector<2x32xf32>
    %43 = math.exp %42 : vector<2x32xf32>
    %cst_40 = arith.constant 1.000000e+00 : f32
    %44 = vector.broadcast %cst_40 : f32 to vector<2x32xf32>
    %45 = arith.addf %44, %43 : vector<2x32xf32>
    %46 = arith.divf %44, %45 : vector<2x32xf32>
    %47 = vector.extract_strided_slice %40 {offsets = [0, 32], sizes = [2, 32], strides = [1, 1]} : vector<2x128xf32> to vector<2x32xf32>
    %48 = arith.negf %47 : vector<2x32xf32>
    %49 = math.exp %48 : vector<2x32xf32>
    %cst_41 = arith.constant 1.000000e+00 : f32
    %50 = vector.broadcast %cst_41 : f32 to vector<2x32xf32>
    %51 = arith.addf %50, %49 : vector<2x32xf32>
    %52 = arith.divf %50, %51 : vector<2x32xf32>
    %53 = vector.extract_strided_slice %40 {offsets = [0, 64], sizes = [2, 32], strides = [1, 1]} : vector<2x128xf32> to vector<2x32xf32>
    %54 = math.tanh %53 : vector<2x32xf32>
    %55 = vector.extract_strided_slice %40 {offsets = [0, 96], sizes = [2, 32], strides = [1, 1]} : vector<2x128xf32> to vector<2x32xf32>
    %56 = arith.negf %55 : vector<2x32xf32>
    %57 = math.exp %56 : vector<2x32xf32>
    %cst_42 = arith.constant 1.000000e+00 : f32
    %58 = vector.broadcast %cst_42 : f32 to vector<2x32xf32>
    %59 = arith.addf %58, %57 : vector<2x32xf32>
    %60 = arith.divf %58, %59 : vector<2x32xf32>
    %61 = arith.mulf %52, %16 : vector<2x32xf32>
    %62 = arith.mulf %46, %54 : vector<2x32xf32>
    %63 = arith.addf %61, %62 : vector<2x32xf32>
    %64 = math.tanh %63 : vector<2x32xf32>
    %65 = arith.mulf %60, %64 : vector<2x32xf32>
    %66 = tpu.concatenate %65, %15 in 1 : vector<2x32xf32>, vector<2x32xf32> -> vector<2x64xf32>
    %cst_43 = arith.constant dense<0.000000e+00> : vector<2x128xf32>
    %67 = tpu.matmul %66, %9, %cst_43 {dimension_numbers = #tpu.dot_dimension_numbers<[1], [0], [0], [1], [0, 0, 1, 1], [], []>, precision = #tpu.contract_precision<fp32>} : vector<2x64xf32>, vector<64x128xf32>, vector<2x128xf32> -> vector<2x128xf32>
    %68 = vector.broadcast %11 : vector<1x128xf32> to vector<2x128xf32>
    %69 = arith.addf %67, %68 : vector<2x128xf32>
    %70 = vector.extract_strided_slice %69 {offsets = [0, 0], sizes = [2, 32], strides = [1, 1]} : vector<2x128xf32> to vector<2x32xf32>
    %71 = arith.negf %70 : vector<2x32xf32>
    %72 = math.exp %71 : vector<2x32xf32>
    %cst_44 = arith.constant 1.000000e+00 : f32
    %73 = vector.broadcast %cst_44 : f32 to vector<2x32xf32>
    %74 = arith.addf %73, %72 : vector<2x32xf32>
    %75 = arith.divf %73, %74 : vector<2x32xf32>
    %76 = vector.extract_strided_slice %69 {offsets = [0, 32], sizes = [2, 32], strides = [1, 1]} : vector<2x128xf32> to vector<2x32xf32>
    %77 = arith.negf %76 : vector<2x32xf32>
    %78 = math.exp %77 : vector<2x32xf32>
    %cst_45 = arith.constant 1.000000e+00 : f32
    %79 = vector.broadcast %cst_45 : f32 to vector<2x32xf32>
    %80 = arith.addf %79, %78 : vector<2x32xf32>
    %81 = arith.divf %79, %80 : vector<2x32xf32>
    %82 = vector.extract_strided_slice %69 {offsets = [0, 64], sizes = [2, 32], strides = [1, 1]} : vector<2x128xf32> to vector<2x32xf32>
    %83 = math.tanh %82 : vector<2x32xf32>
    %84 = vector.extract_strided_slice %69 {offsets = [0, 96], sizes = [2, 32], strides = [1, 1]} : vector<2x128xf32> to vector<2x32xf32>
    %85 = arith.negf %84 : vector<2x32xf32>
    %86 = math.exp %85 : vector<2x32xf32>
    %cst_46 = arith.constant 1.000000e+00 : f32
    %87 = vector.broadcast %cst_46 : f32 to vector<2x32xf32>
    %88 = arith.addf %87, %86 : vector<2x32xf32>
    %89 = arith.divf %87, %88 : vector<2x32xf32>
    %90 = arith.mulf %81, %17 : vector<2x32xf32>
    %91 = arith.mulf %75, %83 : vector<2x32xf32>
    %92 = arith.addf %90, %91 : vector<2x32xf32>
    %93 = math.tanh %92 : vector<2x32xf32>
    %94 = arith.mulf %89, %93 : vector<2x32xf32>
    %cst_47 = arith.constant dense<0.000000e+00> : vector<2x32xf32>
    %95 = tpu.matmul %94, %12, %cst_47 {dimension_numbers = #tpu.dot_dimension_numbers<[1], [0], [0], [1], [0, 0, 1, 1], [], []>, precision = #tpu.contract_precision<fp32>} : vector<2x32xf32>, vector<32x32xf32>, vector<2x32xf32> -> vector<2x32xf32>
    %96 = vector.broadcast %13 : vector<1x32xf32> to vector<2x32xf32>
    %97 = arith.addf %95, %96 : vector<2x32xf32>
    %cst_48 = arith.constant dense<0xFF800000> : vector<2xf32>
    %98 = vector.multi_reduction <maximumf>, %97, %cst_48 [1] : vector<2x32xf32> to vector<2xf32>
    %99 = vector.shape_cast %98 : vector<2xf32> to vector<2x1xf32>
    %100 = vector.broadcast %99 : vector<2x1xf32> to vector<2x32xf32>
    %101 = arith.subf %97, %100 : vector<2x32xf32>
    %102 = math.exp %101 : vector<2x32xf32>
    %cst_49 = arith.constant dense<0.000000e+00> : vector<2xf32>
    %103 = vector.multi_reduction <add>, %102, %cst_49 [1] : vector<2x32xf32> to vector<2xf32>
    %104 = vector.shape_cast %103 : vector<2xf32> to vector<2x1xf32>
    %105 = math.log %104 : vector<2x1xf32>
    %106 = arith.addf %99, %105 : vector<2x1xf32>
    %107 = vector.broadcast %106 : vector<2x1xf32> to vector<2x32xf32>
    %108 = arith.subf %97, %107 : vector<2x32xf32>
    %109 = tpu.concatenate %108, %29 in 1 : vector<2x32xf32>, vector<2x8xf32> -> vector<2x40xf32>
    %c0_50 = arith.constant 0 : index
    %c0_51 = arith.constant 0 : index
    %110 = vector.load %arg15[%c0_50, %c0_51] : memref<8x40xf32, #tpu.memory_space<vmem>>, vector<2x40xf32>
    tpu.vector_store %arg15[%c0_50, %c0_51], %109 {strides = array<i32>} : memref<8x40xf32, #tpu.memory_space<vmem>>, vector<2x40xf32>,
    %cst_52 = arith.constant dense<0.000000e+00> : vector<2x1xf32>
    %111 = tpu.matmul %94, %3, %cst_52 {dimension_numbers = #tpu.dot_dimension_numbers<[1], [0], [0], [1], [0, 0, 1, 1], [], []>, precision = #tpu.contract_precision<fp32>} : vector<2x32xf32>, vector<32x1xf32>, vector<2x1xf32> -> vector<2x1xf32>
    %112 = vector.broadcast %111 : vector<2x1xf32> to vector<2x8xf32>
    %113 = arith.addf %1, %112 : vector<2x8xf32>
    %cst_53 = arith.constant dense<0xFF800000> : vector<2xf32>
    %114 = vector.multi_reduction <maximumf>, %113, %cst_53 [1] : vector<2x8xf32> to vector<2xf32>
    %115 = vector.shape_cast %114 : vector<2xf32> to vector<2x1xf32>
    %116 = vector.broadcast %115 : vector<2x1xf32> to vector<2x8xf32>
    %117 = arith.subf %113, %116 : vector<2x8xf32>
    %118 = math.exp %117 : vector<2x8xf32>
    %cst_54 = arith.constant dense<0.000000e+00> : vector<2xf32>
    %119 = vector.multi_reduction <add>, %118, %cst_54 [1] : vector<2x8xf32> to vector<2xf32>
    %120 = vector.shape_cast %119 : vector<2xf32> to vector<2x1xf32>
    %121 = vector.broadcast %120 : vector<2x1xf32> to vector<2x8xf32>
    %122 = arith.divf %118, %121 : vector<2x8xf32>
    %123 = tpu.concatenate %122, %122 in 1 : vector<2x8xf32>, vector<2x8xf32> -> vector<2x16xf32>
    %124 = arith.mulf %123, %2 : vector<2x16xf32>
    %cst_55 = arith.constant dense<0.000000e+00> : vector<2x32xf32>
    %125 = tpu.matmul %124, %0, %cst_55 {dimension_numbers = #tpu.dot_dimension_numbers<[1], [0], [0], [1], [0, 0, 1, 1], [], []>, precision = #tpu.contract_precision<fp32>} : vector<2x16xf32>, vector<16x32xf32>, vector<2x32xf32> -> vector<2x32xf32>
    %c2_56 = arith.constant 2 : index
    %c0_57 = arith.constant 0 : index
    %126 = vector.load %arg0[%c2_56, %c0_57] : memref<8x16xf32, #tpu.memory_space<vmem>>, vector<2x16xf32>
    %cst_58 = arith.constant dense<0.000000e+00> : vector<2x128xf32>
    %127 = tpu.matmul %125, %4, %cst_58 {dimension_numbers = #tpu.dot_dimension_numbers<[1], [0], [0], [1], [0, 0, 1, 1], [], []>, precision = #tpu.contract_precision<fp32>} : vector<2x32xf32>, vector<32x128xf32>, vector<2x128xf32> -> vector<2x128xf32>
    %cst_59 = arith.constant dense<0.000000e+00> : vector<2x128xf32>
    %128 = tpu.matmul %126, %5, %cst_59 {dimension_numbers = #tpu.dot_dimension_numbers<[1], [0], [0], [1], [0, 0, 1, 1], [], []>, precision = #tpu.contract_precision<fp32>} : vector<2x16xf32>, vector<16x128xf32>, vector<2x128xf32> -> vector<2x128xf32>
    %129 = arith.addf %127, %128 : vector<2x128xf32>
    %cst_60 = arith.constant dense<0.000000e+00> : vector<2x128xf32>
    %130 = tpu.matmul %65, %6, %cst_60 {dimension_numbers = #tpu.dot_dimension_numbers<[1], [0], [0], [1], [0, 0, 1, 1], [], []>, precision = #tpu.contract_precision<fp32>} : vector<2x32xf32>, vector<32x128xf32>, vector<2x128xf32> -> vector<2x128xf32>
    %131 = arith.addf %129, %130 : vector<2x128xf32>
    %132 = vector.broadcast %7 : vector<1x128xf32> to vector<2x128xf32>
    %133 = arith.addf %131, %132 : vector<2x128xf32>
    %134 = vector.extract_strided_slice %133 {offsets = [0, 0], sizes = [2, 32], strides = [1, 1]} : vector<2x128xf32> to vector<2x32xf32>
    %135 = arith.negf %134 : vector<2x32xf32>
    %136 = math.exp %135 : vector<2x32xf32>
    %cst_61 = arith.constant 1.000000e+00 : f32
    %137 = vector.broadcast %cst_61 : f32 to vector<2x32xf32>
    %138 = arith.addf %137, %136 : vector<2x32xf32>
    %139 = arith.divf %137, %138 : vector<2x32xf32>
    %140 = vector.extract_strided_slice %133 {offsets = [0, 32], sizes = [2, 32], strides = [1, 1]} : vector<2x128xf32> to vector<2x32xf32>
    %141 = arith.negf %140 : vector<2x32xf32>
    %142 = math.exp %141 : vector<2x32xf32>
    %cst_62 = arith.constant 1.000000e+00 : f32
    %143 = vector.broadcast %cst_62 : f32 to vector<2x32xf32>
    %144 = arith.addf %143, %142 : vector<2x32xf32>
    %145 = arith.divf %143, %144 : vector<2x32xf32>
    %146 = vector.extract_strided_slice %133 {offsets = [0, 64], sizes = [2, 32], strides = [1, 1]} : vector<2x128xf32> to vector<2x32xf32>
    %147 = math.tanh %146 : vector<2x32xf32>
    %148 = vector.extract_strided_slice %133 {offsets = [0, 96], sizes = [2, 32], strides = [1, 1]} : vector<2x128xf32> to vector<2x32xf32>
    %149 = arith.negf %148 : vector<2x32xf32>
    %150 = math.exp %149 : vector<2x32xf32>
    %cst_63 = arith.constant 1.000000e+00 : f32
    %151 = vector.broadcast %cst_63 : f32 to vector<2x32xf32>
    %152 = arith.addf %151, %150 : vector<2x32xf32>
    %153 = arith.divf %151, %152 : vector<2x32xf32>
    %154 = arith.mulf %145, %63 : vector<2x32xf32>
    %155 = arith.mulf %139, %147 : vector<2x32xf32>
    %156 = arith.addf %154, %155 : vector<2x32xf32>
    %157 = math.tanh %156 : vector<2x32xf32>
    %158 = arith.mulf %153, %157 : vector<2x32xf32>
    %159 = tpu.concatenate %158, %94 in 1 : vector<2x32xf32>, vector<2x32xf32> -> vector<2x64xf32>
    %cst_64 = arith.constant dense<0.000000e+00> : vector<2x128xf32>
    %160 = tpu.matmul %159, %9, %cst_64 {dimension_numbers = #tpu.dot_dimension_numbers<[1], [0], [0], [1], [0, 0, 1, 1], [], []>, precision = #tpu.contract_precision<fp32>} : vector<2x64xf32>, vector<64x128xf32>, vector<2x128xf32> -> vector<2x128xf32>
    %161 = vector.broadcast %11 : vector<1x128xf32> to vector<2x128xf32>
    %162 = arith.addf %160, %161 : vector<2x128xf32>
    %163 = vector.extract_strided_slice %162 {offsets = [0, 0], sizes = [2, 32], strides = [1, 1]} : vector<2x128xf32> to vector<2x32xf32>
    %164 = arith.negf %163 : vector<2x32xf32>
    %165 = math.exp %164 : vector<2x32xf32>
    %cst_65 = arith.constant 1.000000e+00 : f32
    %166 = vector.broadcast %cst_65 : f32 to vector<2x32xf32>
    %167 = arith.addf %166, %165 : vector<2x32xf32>
    %168 = arith.divf %166, %167 : vector<2x32xf32>
    %169 = vector.extract_strided_slice %162 {offsets = [0, 32], sizes = [2, 32], strides = [1, 1]} : vector<2x128xf32> to vector<2x32xf32>
    %170 = arith.negf %169 : vector<2x32xf32>
    %171 = math.exp %170 : vector<2x32xf32>
    %cst_66 = arith.constant 1.000000e+00 : f32
    %172 = vector.broadcast %cst_66 : f32 to vector<2x32xf32>
    %173 = arith.addf %172, %171 : vector<2x32xf32>
    %174 = arith.divf %172, %173 : vector<2x32xf32>
    %175 = vector.extract_strided_slice %162 {offsets = [0, 64], sizes = [2, 32], strides = [1, 1]} : vector<2x128xf32> to vector<2x32xf32>
    %176 = math.tanh %175 : vector<2x32xf32>
    %177 = vector.extract_strided_slice %162 {offsets = [0, 96], sizes = [2, 32], strides = [1, 1]} : vector<2x128xf32> to vector<2x32xf32>
    %178 = arith.negf %177 : vector<2x32xf32>
    %179 = math.exp %178 : vector<2x32xf32>
    %cst_67 = arith.constant 1.000000e+00 : f32
    %180 = vector.broadcast %cst_67 : f32 to vector<2x32xf32>
    %181 = arith.addf %180, %179 : vector<2x32xf32>
    %182 = arith.divf %180, %181 : vector<2x32xf32>
    %183 = arith.mulf %174, %92 : vector<2x32xf32>
    %184 = arith.mulf %168, %176 : vector<2x32xf32>
    %185 = arith.addf %183, %184 : vector<2x32xf32>
    %186 = math.tanh %185 : vector<2x32xf32>
    %187 = arith.mulf %182, %186 : vector<2x32xf32>
    %cst_68 = arith.constant dense<0.000000e+00> : vector<2x32xf32>
    %188 = tpu.matmul %187, %12, %cst_68 {dimension_numbers = #tpu.dot_dimension_numbers<[1], [0], [0], [1], [0, 0, 1, 1], [], []>, precision = #tpu.contract_precision<fp32>} : vector<2x32xf32>, vector<32x32xf32>, vector<2x32xf32> -> vector<2x32xf32>
    %189 = vector.broadcast %13 : vector<1x32xf32> to vector<2x32xf32>
    %190 = arith.addf %188, %189 : vector<2x32xf32>
    %cst_69 = arith.constant dense<0xFF800000> : vector<2xf32>
    %191 = vector.multi_reduction <maximumf>, %190, %cst_69 [1] : vector<2x32xf32> to vector<2xf32>
    %192 = vector.shape_cast %191 : vector<2xf32> to vector<2x1xf32>
    %193 = vector.broadcast %192 : vector<2x1xf32> to vector<2x32xf32>
    %194 = arith.subf %190, %193 : vector<2x32xf32>
    %195 = math.exp %194 : vector<2x32xf32>
    %cst_70 = arith.constant dense<0.000000e+00> : vector<2xf32>
    %196 = vector.multi_reduction <add>, %195, %cst_70 [1] : vector<2x32xf32> to vector<2xf32>
    %197 = vector.shape_cast %196 : vector<2xf32> to vector<2x1xf32>
    %198 = math.log %197 : vector<2x1xf32>
    %199 = arith.addf %192, %198 : vector<2x1xf32>
    %200 = vector.broadcast %199 : vector<2x1xf32> to vector<2x32xf32>
    %201 = arith.subf %190, %200 : vector<2x32xf32>
    %202 = tpu.concatenate %201, %122 in 1 : vector<2x32xf32>, vector<2x8xf32> -> vector<2x40xf32>
    %c2_71 = arith.constant 2 : index
    %c0_72 = arith.constant 0 : index
    %203 = vector.load %arg15[%c2_71, %c0_72] : memref<8x40xf32, #tpu.memory_space<vmem>>, vector<2x40xf32>
    tpu.vector_store %arg15[%c2_71, %c0_72], %202 {strides = array<i32>} : memref<8x40xf32, #tpu.memory_space<vmem>>, vector<2x40xf32>,
    %cst_73 = arith.constant dense<0.000000e+00> : vector<2x1xf32>
    %204 = tpu.matmul %187, %3, %cst_73 {dimension_numbers = #tpu.dot_dimension_numbers<[1], [0], [0], [1], [0, 0, 1, 1], [], []>, precision = #tpu.contract_precision<fp32>} : vector<2x32xf32>, vector<32x1xf32>, vector<2x1xf32> -> vector<2x1xf32>
    %205 = vector.broadcast %204 : vector<2x1xf32> to vector<2x8xf32>
    %206 = arith.addf %1, %205 : vector<2x8xf32>
    %cst_74 = arith.constant dense<0xFF800000> : vector<2xf32>
    %207 = vector.multi_reduction <maximumf>, %206, %cst_74 [1] : vector<2x8xf32> to vector<2xf32>
    %208 = vector.shape_cast %207 : vector<2xf32> to vector<2x1xf32>
    %209 = vector.broadcast %208 : vector<2x1xf32> to vector<2x8xf32>
    %210 = arith.subf %206, %209 : vector<2x8xf32>
    %211 = math.exp %210 : vector<2x8xf32>
    %cst_75 = arith.constant dense<0.000000e+00> : vector<2xf32>
    %212 = vector.multi_reduction <add>, %211, %cst_75 [1] : vector<2x8xf32> to vector<2xf32>
    %213 = vector.shape_cast %212 : vector<2xf32> to vector<2x1xf32>
    %214 = vector.broadcast %213 : vector<2x1xf32> to vector<2x8xf32>
    %215 = arith.divf %211, %214 : vector<2x8xf32>
    %216 = tpu.concatenate %215, %215 in 1 : vector<2x8xf32>, vector<2x8xf32> -> vector<2x16xf32>
    %217 = arith.mulf %216, %2 : vector<2x16xf32>
    %cst_76 = arith.constant dense<0.000000e+00> : vector<2x32xf32>
    %218 = tpu.matmul %217, %0, %cst_76 {dimension_numbers = #tpu.dot_dimension_numbers<[1], [0], [0], [1], [0, 0, 1, 1], [], []>, precision = #tpu.contract_precision<fp32>} : vector<2x16xf32>, vector<16x32xf32>, vector<2x32xf32> -> vector<2x32xf32>
    %c4 = arith.constant 4 : index
    %c0_77 = arith.constant 0 : index
    %219 = vector.load %arg0[%c4, %c0_77] : memref<8x16xf32, #tpu.memory_space<vmem>>, vector<2x16xf32>
    %cst_78 = arith.constant dense<0.000000e+00> : vector<2x128xf32>
    %220 = tpu.matmul %218, %4, %cst_78 {dimension_numbers = #tpu.dot_dimension_numbers<[1], [0], [0], [1], [0, 0, 1, 1], [], []>, precision = #tpu.contract_precision<fp32>} : vector<2x32xf32>, vector<32x128xf32>, vector<2x128xf32> -> vector<2x128xf32>
    %cst_79 = arith.constant dense<0.000000e+00> : vector<2x128xf32>
    %221 = tpu.matmul %219, %5, %cst_79 {dimension_numbers = #tpu.dot_dimension_numbers<[1], [0], [0], [1], [0, 0, 1, 1], [], []>, precision = #tpu.contract_precision<fp32>} : vector<2x16xf32>, vector<16x128xf32>, vector<2x128xf32> -> vector<2x128xf32>
    %222 = arith.addf %220, %221 : vector<2x128xf32>
    %cst_80 = arith.constant dense<0.000000e+00> : vector<2x128xf32>
    %223 = tpu.matmul %158, %6, %cst_80 {dimension_numbers = #tpu.dot_dimension_numbers<[1], [0], [0], [1], [0, 0, 1, 1], [], []>, precision = #tpu.contract_precision<fp32>} : vector<2x32xf32>, vector<32x128xf32>, vector<2x128xf32> -> vector<2x128xf32>
    %224 = arith.addf %222, %223 : vector<2x128xf32>
    %225 = vector.broadcast %7 : vector<1x128xf32> to vector<2x128xf32>
    %226 = arith.addf %224, %225 : vector<2x128xf32>
    %227 = vector.extract_strided_slice %226 {offsets = [0, 0], sizes = [2, 32], strides = [1, 1]} : vector<2x128xf32> to vector<2x32xf32>
    %228 = arith.negf %227 : vector<2x32xf32>
    %229 = math.exp %228 : vector<2x32xf32>
    %cst_81 = arith.constant 1.000000e+00 : f32
    %230 = vector.broadcast %cst_81 : f32 to vector<2x32xf32>
    %231 = arith.addf %230, %229 : vector<2x32xf32>
    %232 = arith.divf %230, %231 : vector<2x32xf32>
    %233 = vector.extract_strided_slice %226 {offsets = [0, 32], sizes = [2, 32], strides = [1, 1]} : vector<2x128xf32> to vector<2x32xf32>
    %234 = arith.negf %233 : vector<2x32xf32>
    %235 = math.exp %234 : vector<2x32xf32>
    %cst_82 = arith.constant 1.000000e+00 : f32
    %236 = vector.broadcast %cst_82 : f32 to vector<2x32xf32>
    %237 = arith.addf %236, %235 : vector<2x32xf32>
    %238 = arith.divf %236, %237 : vector<2x32xf32>
    %239 = vector.extract_strided_slice %226 {offsets = [0, 64], sizes = [2, 32], strides = [1, 1]} : vector<2x128xf32> to vector<2x32xf32>
    %240 = math.tanh %239 : vector<2x32xf32>
    %241 = vector.extract_strided_slice %226 {offsets = [0, 96], sizes = [2, 32], strides = [1, 1]} : vector<2x128xf32> to vector<2x32xf32>
    %242 = arith.negf %241 : vector<2x32xf32>
    %243 = math.exp %242 : vector<2x32xf32>
    %cst_83 = arith.constant 1.000000e+00 : f32
    %244 = vector.broadcast %cst_83 : f32 to vector<2x32xf32>
    %245 = arith.addf %244, %243 : vector<2x32xf32>
    %246 = arith.divf %244, %245 : vector<2x32xf32>
    %247 = arith.mulf %238, %156 : vector<2x32xf32>
    %248 = arith.mulf %232, %240 : vector<2x32xf32>
    %249 = arith.addf %247, %248 : vector<2x32xf32>
    %250 = math.tanh %249 : vector<2x32xf32>
    %251 = arith.mulf %246, %250 : vector<2x32xf32>
    %252 = tpu.concatenate %251, %187 in 1 : vector<2x32xf32>, vector<2x32xf32> -> vector<2x64xf32>
    %cst_84 = arith.constant dense<0.000000e+00> : vector<2x128xf32>
    %253 = tpu.matmul %252, %9, %cst_84 {dimension_numbers = #tpu.dot_dimension_numbers<[1], [0], [0], [1], [0, 0, 1, 1], [], []>, precision = #tpu.contract_precision<fp32>} : vector<2x64xf32>, vector<64x128xf32>, vector<2x128xf32> -> vector<2x128xf32>
    %254 = vector.broadcast %11 : vector<1x128xf32> to vector<2x128xf32>
    %255 = arith.addf %253, %254 : vector<2x128xf32>
    %256 = vector.extract_strided_slice %255 {offsets = [0, 0], sizes = [2, 32], strides = [1, 1]} : vector<2x128xf32> to vector<2x32xf32>
    %257 = arith.negf %256 : vector<2x32xf32>
    %258 = math.exp %257 : vector<2x32xf32>
    %cst_85 = arith.constant 1.000000e+00 : f32
    %259 = vector.broadcast %cst_85 : f32 to vector<2x32xf32>
    %260 = arith.addf %259, %258 : vector<2x32xf32>
    %261 = arith.divf %259, %260 : vector<2x32xf32>
    %262 = vector.extract_strided_slice %255 {offsets = [0, 32], sizes = [2, 32], strides = [1, 1]} : vector<2x128xf32> to vector<2x32xf32>
    %263 = arith.negf %262 : vector<2x32xf32>
    %264 = math.exp %263 : vector<2x32xf32>
    %cst_86 = arith.constant 1.000000e+00 : f32
    %265 = vector.broadcast %cst_86 : f32 to vector<2x32xf32>
    %266 = arith.addf %265, %264 : vector<2x32xf32>
    %267 = arith.divf %265, %266 : vector<2x32xf32>
    %268 = vector.extract_strided_slice %255 {offsets = [0, 64], sizes = [2, 32], strides = [1, 1]} : vector<2x128xf32> to vector<2x32xf32>
    %269 = math.tanh %268 : vector<2x32xf32>
    %270 = vector.extract_strided_slice %255 {offsets = [0, 96], sizes = [2, 32], strides = [1, 1]} : vector<2x128xf32> to vector<2x32xf32>
    %271 = arith.negf %270 : vector<2x32xf32>
    %272 = math.exp %271 : vector<2x32xf32>
    %cst_87 = arith.constant 1.000000e+00 : f32
    %273 = vector.broadcast %cst_87 : f32 to vector<2x32xf32>
    %274 = arith.addf %273, %272 : vector<2x32xf32>
    %275 = arith.divf %273, %274 : vector<2x32xf32>
    %276 = arith.mulf %267, %185 : vector<2x32xf32>
    %277 = arith.mulf %261, %269 : vector<2x32xf32>
    %278 = arith.addf %276, %277 : vector<2x32xf32>
    %279 = math.tanh %278 : vector<2x32xf32>
    %280 = arith.mulf %275, %279 : vector<2x32xf32>
    %cst_88 = arith.constant dense<0.000000e+00> : vector<2x32xf32>
    %281 = tpu.matmul %280, %12, %cst_88 {dimension_numbers = #tpu.dot_dimension_numbers<[1], [0], [0], [1], [0, 0, 1, 1], [], []>, precision = #tpu.contract_precision<fp32>} : vector<2x32xf32>, vector<32x32xf32>, vector<2x32xf32> -> vector<2x32xf32>
    %282 = vector.broadcast %13 : vector<1x32xf32> to vector<2x32xf32>
    %283 = arith.addf %281, %282 : vector<2x32xf32>
    %cst_89 = arith.constant dense<0xFF800000> : vector<2xf32>
    %284 = vector.multi_reduction <maximumf>, %283, %cst_89 [1] : vector<2x32xf32> to vector<2xf32>
    %285 = vector.shape_cast %284 : vector<2xf32> to vector<2x1xf32>
    %286 = vector.broadcast %285 : vector<2x1xf32> to vector<2x32xf32>
    %287 = arith.subf %283, %286 : vector<2x32xf32>
    %288 = math.exp %287 : vector<2x32xf32>
    %cst_90 = arith.constant dense<0.000000e+00> : vector<2xf32>
    %289 = vector.multi_reduction <add>, %288, %cst_90 [1] : vector<2x32xf32> to vector<2xf32>
    %290 = vector.shape_cast %289 : vector<2xf32> to vector<2x1xf32>
    %291 = math.log %290 : vector<2x1xf32>
    %292 = arith.addf %285, %291 : vector<2x1xf32>
    %293 = vector.broadcast %292 : vector<2x1xf32> to vector<2x32xf32>
    %294 = arith.subf %283, %293 : vector<2x32xf32>
    %295 = tpu.concatenate %294, %215 in 1 : vector<2x32xf32>, vector<2x8xf32> -> vector<2x40xf32>
    %c4_91 = arith.constant 4 : index
    %c0_92 = arith.constant 0 : index
    %296 = vector.load %arg15[%c4_91, %c0_92] : memref<8x40xf32, #tpu.memory_space<vmem>>, vector<2x40xf32>
    tpu.vector_store %arg15[%c4_91, %c0_92], %295 {strides = array<i32>} : memref<8x40xf32, #tpu.memory_space<vmem>>, vector<2x40xf32>,
    %cst_93 = arith.constant dense<0.000000e+00> : vector<2x1xf32>
    %297 = tpu.matmul %280, %3, %cst_93 {dimension_numbers = #tpu.dot_dimension_numbers<[1], [0], [0], [1], [0, 0, 1, 1], [], []>, precision = #tpu.contract_precision<fp32>} : vector<2x32xf32>, vector<32x1xf32>, vector<2x1xf32> -> vector<2x1xf32>
    %298 = vector.broadcast %297 : vector<2x1xf32> to vector<2x8xf32>
    %299 = arith.addf %1, %298 : vector<2x8xf32>
    %cst_94 = arith.constant dense<0xFF800000> : vector<2xf32>
    %300 = vector.multi_reduction <maximumf>, %299, %cst_94 [1] : vector<2x8xf32> to vector<2xf32>
    %301 = vector.shape_cast %300 : vector<2xf32> to vector<2x1xf32>
    %302 = vector.broadcast %301 : vector<2x1xf32> to vector<2x8xf32>
    %303 = arith.subf %299, %302 : vector<2x8xf32>
    %304 = math.exp %303 : vector<2x8xf32>
    %cst_95 = arith.constant dense<0.000000e+00> : vector<2xf32>
    %305 = vector.multi_reduction <add>, %304, %cst_95 [1] : vector<2x8xf32> to vector<2xf32>
    %306 = vector.shape_cast %305 : vector<2xf32> to vector<2x1xf32>
    %307 = vector.broadcast %306 : vector<2x1xf32> to vector<2x8xf32>
    %308 = arith.divf %304, %307 : vector<2x8xf32>
    %309 = tpu.concatenate %308, %308 in 1 : vector<2x8xf32>, vector<2x8xf32> -> vector<2x16xf32>
    %310 = arith.mulf %309, %2 : vector<2x16xf32>
    %cst_96 = arith.constant dense<0.000000e+00> : vector<2x32xf32>
    %311 = tpu.matmul %310, %0, %cst_96 {dimension_numbers = #tpu.dot_dimension_numbers<[1], [0], [0], [1], [0, 0, 1, 1], [], []>, precision = #tpu.contract_precision<fp32>} : vector<2x16xf32>, vector<16x32xf32>, vector<2x32xf32> -> vector<2x32xf32>
    %c6 = arith.constant 6 : index
    %c0_97 = arith.constant 0 : index
    %312 = vector.load %arg0[%c6, %c0_97] : memref<8x16xf32, #tpu.memory_space<vmem>>, vector<2x16xf32>
    %cst_98 = arith.constant dense<0.000000e+00> : vector<2x128xf32>
    %313 = tpu.matmul %311, %4, %cst_98 {dimension_numbers = #tpu.dot_dimension_numbers<[1], [0], [0], [1], [0, 0, 1, 1], [], []>, precision = #tpu.contract_precision<fp32>} : vector<2x32xf32>, vector<32x128xf32>, vector<2x128xf32> -> vector<2x128xf32>
    %cst_99 = arith.constant dense<0.000000e+00> : vector<2x128xf32>
    %314 = tpu.matmul %312, %5, %cst_99 {dimension_numbers = #tpu.dot_dimension_numbers<[1], [0], [0], [1], [0, 0, 1, 1], [], []>, precision = #tpu.contract_precision<fp32>} : vector<2x16xf32>, vector<16x128xf32>, vector<2x128xf32> -> vector<2x128xf32>
    %315 = arith.addf %313, %314 : vector<2x128xf32>
    %cst_100 = arith.constant dense<0.000000e+00> : vector<2x128xf32>
    %316 = tpu.matmul %251, %6, %cst_100 {dimension_numbers = #tpu.dot_dimension_numbers<[1], [0], [0], [1], [0, 0, 1, 1], [], []>, precision = #tpu.contract_precision<fp32>} : vector<2x32xf32>, vector<32x128xf32>, vector<2x128xf32> -> vector<2x128xf32>
    %317 = arith.addf %315, %316 : vector<2x128xf32>
    %318 = vector.broadcast %7 : vector<1x128xf32> to vector<2x128xf32>
    %319 = arith.addf %317, %318 : vector<2x128xf32>
    %320 = vector.extract_strided_slice %319 {offsets = [0, 0], sizes = [2, 32], strides = [1, 1]} : vector<2x128xf32> to vector<2x32xf32>
    %321 = arith.negf %320 : vector<2x32xf32>
    %322 = math.exp %321 : vector<2x32xf32>
    %cst_101 = arith.constant 1.000000e+00 : f32
    %323 = vector.broadcast %cst_101 : f32 to vector<2x32xf32>
    %324 = arith.addf %323, %322 : vector<2x32xf32>
    %325 = arith.divf %323, %324 : vector<2x32xf32>
    %326 = vector.extract_strided_slice %319 {offsets = [0, 32], sizes = [2, 32], strides = [1, 1]} : vector<2x128xf32> to vector<2x32xf32>
    %327 = arith.negf %326 : vector<2x32xf32>
    %328 = math.exp %327 : vector<2x32xf32>
    %cst_102 = arith.constant 1.000000e+00 : f32
    %329 = vector.broadcast %cst_102 : f32 to vector<2x32xf32>
    %330 = arith.addf %329, %328 : vector<2x32xf32>
    %331 = arith.divf %329, %330 : vector<2x32xf32>
    %332 = vector.extract_strided_slice %319 {offsets = [0, 64], sizes = [2, 32], strides = [1, 1]} : vector<2x128xf32> to vector<2x32xf32>
    %333 = math.tanh %332 : vector<2x32xf32>
    %334 = vector.extract_strided_slice %319 {offsets = [0, 96], sizes = [2, 32], strides = [1, 1]} : vector<2x128xf32> to vector<2x32xf32>
    %335 = arith.negf %334 : vector<2x32xf32>
    %336 = math.exp %335 : vector<2x32xf32>
    %cst_103 = arith.constant 1.000000e+00 : f32
    %337 = vector.broadcast %cst_103 : f32 to vector<2x32xf32>
    %338 = arith.addf %337, %336 : vector<2x32xf32>
    %339 = arith.divf %337, %338 : vector<2x32xf32>
    %340 = arith.mulf %331, %249 : vector<2x32xf32>
    %341 = arith.mulf %325, %333 : vector<2x32xf32>
    %342 = arith.addf %340, %341 : vector<2x32xf32>
    %343 = math.tanh %342 : vector<2x32xf32>
    %344 = arith.mulf %339, %343 : vector<2x32xf32>
    %345 = tpu.concatenate %344, %280 in 1 : vector<2x32xf32>, vector<2x32xf32> -> vector<2x64xf32>
    %cst_104 = arith.constant dense<0.000000e+00> : vector<2x128xf32>
    %346 = tpu.matmul %345, %9, %cst_104 {dimension_numbers = #tpu.dot_dimension_numbers<[1], [0], [0], [1], [0, 0, 1, 1], [], []>, precision = #tpu.contract_precision<fp32>} : vector<2x64xf32>, vector<64x128xf32>, vector<2x128xf32> -> vector<2x128xf32>
    %347 = vector.broadcast %11 : vector<1x128xf32> to vector<2x128xf32>
    %348 = arith.addf %346, %347 : vector<2x128xf32>
    %349 = vector.extract_strided_slice %348 {offsets = [0, 0], sizes = [2, 32], strides = [1, 1]} : vector<2x128xf32> to vector<2x32xf32>
    %350 = arith.negf %349 : vector<2x32xf32>
    %351 = math.exp %350 : vector<2x32xf32>
    %cst_105 = arith.constant 1.000000e+00 : f32
    %352 = vector.broadcast %cst_105 : f32 to vector<2x32xf32>
    %353 = arith.addf %352, %351 : vector<2x32xf32>
    %354 = arith.divf %352, %353 : vector<2x32xf32>
    %355 = vector.extract_strided_slice %348 {offsets = [0, 32], sizes = [2, 32], strides = [1, 1]} : vector<2x128xf32> to vector<2x32xf32>
    %356 = arith.negf %355 : vector<2x32xf32>
    %357 = math.exp %356 : vector<2x32xf32>
    %cst_106 = arith.constant 1.000000e+00 : f32
    %358 = vector.broadcast %cst_106 : f32 to vector<2x32xf32>
    %359 = arith.addf %358, %357 : vector<2x32xf32>
    %360 = arith.divf %358, %359 : vector<2x32xf32>
    %361 = vector.extract_strided_slice %348 {offsets = [0, 64], sizes = [2, 32], strides = [1, 1]} : vector<2x128xf32> to vector<2x32xf32>
    %362 = math.tanh %361 : vector<2x32xf32>
    %363 = vector.extract_strided_slice %348 {offsets = [0, 96], sizes = [2, 32], strides = [1, 1]} : vector<2x128xf32> to vector<2x32xf32>
    %364 = arith.negf %363 : vector<2x32xf32>
    %365 = math.exp %364 : vector<2x32xf32>
    %cst_107 = arith.constant 1.000000e+00 : f32
    %366 = vector.broadcast %cst_107 : f32 to vector<2x32xf32>
    %367 = arith.addf %366, %365 : vector<2x32xf32>
    %368 = arith.divf %366, %367 : vector<2x32xf32>
    %369 = arith.mulf %360, %278 : vector<2x32xf32>
    %370 = arith.mulf %354, %362 : vector<2x32xf32>
    %371 = arith.addf %369, %370 : vector<2x32xf32>
    %372 = math.tanh %371 : vector<2x32xf32>
    %373 = arith.mulf %368, %372 : vector<2x32xf32>
    %cst_108 = arith.constant dense<0.000000e+00> : vector<2x32xf32>
    %374 = tpu.matmul %373, %12, %cst_108 {dimension_numbers = #tpu.dot_dimension_numbers<[1], [0], [0], [1], [0, 0, 1, 1], [], []>, precision = #tpu.contract_precision<fp32>} : vector<2x32xf32>, vector<32x32xf32>, vector<2x32xf32> -> vector<2x32xf32>
    %375 = vector.broadcast %13 : vector<1x32xf32> to vector<2x32xf32>
    %376 = arith.addf %374, %375 : vector<2x32xf32>
    %cst_109 = arith.constant dense<0xFF800000> : vector<2xf32>
    %377 = vector.multi_reduction <maximumf>, %376, %cst_109 [1] : vector<2x32xf32> to vector<2xf32>
    %378 = vector.shape_cast %377 : vector<2xf32> to vector<2x1xf32>
    %379 = vector.broadcast %378 : vector<2x1xf32> to vector<2x32xf32>
    %380 = arith.subf %376, %379 : vector<2x32xf32>
    %381 = math.exp %380 : vector<2x32xf32>
    %cst_110 = arith.constant dense<0.000000e+00> : vector<2xf32>
    %382 = vector.multi_reduction <add>, %381, %cst_110 [1] : vector<2x32xf32> to vector<2xf32>
    %383 = vector.shape_cast %382 : vector<2xf32> to vector<2x1xf32>
    %384 = math.log %383 : vector<2x1xf32>
    %385 = arith.addf %378, %384 : vector<2x1xf32>
    %386 = vector.broadcast %385 : vector<2x1xf32> to vector<2x32xf32>
    %387 = arith.subf %376, %386 : vector<2x32xf32>
    %388 = tpu.concatenate %387, %308 in 1 : vector<2x32xf32>, vector<2x8xf32> -> vector<2x40xf32>
    %c6_111 = arith.constant 6 : index
    %c0_112 = arith.constant 0 : index
    %389 = vector.load %arg15[%c6_111, %c0_112] : memref<8x40xf32, #tpu.memory_space<vmem>>, vector<2x40xf32>
    tpu.vector_store %arg15[%c6_111, %c0_112], %388 {strides = array<i32>} : memref<8x40xf32, #tpu.memory_space<vmem>>, vector<2x40xf32>,
    %390 = tpu.concatenate %344, %373, %342, %371 in 0 : vector<2x32xf32>, vector<2x32xf32>, vector<2x32xf32>, vector<2x32xf32> -> vector<8x32xf32>
    %c0_113 = arith.constant 0 : index
    %c0_114 = arith.constant 0 : index
    %391 = vector.load %arg16[%c0_113, %c0_114] : memref<8x32xf32, #tpu.memory_space<vmem>>, vector<8x32xf32>
    tpu.vector_store %arg16[%c0_113, %c0_114], %390 {strides = array<i32>} : memref<8x32xf32, #tpu.memory_space<vmem>>, vector<8x32xf32>,
    return
  }
}

</mosaic_0001>

<bundles_post_ra>
// kernel: bahdanau_decoder_decode.1
= control target key start
LH: loop header
LB: loop body
LE: loop exit
PB: predicated region body
PF: predicated region fallthrough
CT: control target
= control target key end

     0   :  { %v20041_v0 = vmov 0.0|0.0   ;;  %vm18199_vm0 = vmmov 0   ;;  %v20039_v4 = vmov 0.0   ;;  %vm89_vm1 = vcmask 261120   ;;  %s18203_s17 = smov 64   ;;  %s20015_s6 = inlined_call_operand.vmem [shape: f32[32,1], index: 6, kind: input, shape index: {}]   ;;  %s20016_s4 = inlined_call_operand.vmem [shape: f32[4,32], index: 4, kind: input, shape index: {}]   ;;  %s20017_s2 = inlined_call_operand.vmem [shape: f32[2,8], index: 2, kind: input, shape index: {}]   ;;  %s20018_s1 = inlined_call_operand.vmem [shape: f32[16,32], index: 1, kind: input, shape index: {}]   ;;  %s20019_s7 = inlined_call_operand.vmem [shape: f32[32,128], index: 7, kind: input, shape index: {}]   ;;  %s20020_s3 = inlined_call_operand.vmem [shape: f32[2,16], index: 3, kind: input, shape index: {}]   ;;  %s20021_s8 = inlined_call_operand.vmem [shape: f32[16,128], index: 8, kind: input, shape index: {}]   ;;  %s20022_s0 = inlined_call_operand.vmem [shape: f32[8,16], index: 0, kind: input, shape index: {}]   ;;  %s20023_s9 = inlined_call_operand.vmem [shape: f32[32,128], index: 9, kind: input, shape index: {}]   ;;  %s20024_s10 = inlined_call_operand.vmem [shape: f32[1,128], index: 10, kind: input, shape index: {}]   ;;  %s20025_s5 = inlined_call_operand.vmem [shape: f32[4,32], index: 5, kind: input, shape index: {}]   ;;  %s20026_s11 = inlined_call_operand.vmem [shape: f32[1,64,128], index: 11, kind: input, shape index: {}]   ;;  %s20027_s12 = inlined_call_operand.vmem [shape: f32[1,1,128], index: 12, kind: input, shape index: {}]   ;;  %s20028_s13 = inlined_call_operand.vmem [shape: f32[32,32], index: 13, kind: input, shape index: {}]   ;;  %s20029_s14 = inlined_call_operand.vmem [shape: f32[1,32], index: 14, kind: input, shape index: {}]   ;;  %s20030_s15 = inlined_call_operand.vmem [shape: f32[8,40], index: 15, kind: output, shape index: {0}]   ;;  %s20031_s16 = inlined_call_operand.vmem [shape: f32[8,32], index: 16, kind: output, shape index: {1}]  }
   0x1   :  { %20102 = sst [smem:[#allocation38_spill]] %s20015_s6  ;;  %16918 = vmatprep.subr.bf16.mxu0 %v20041_v0  ;;  %15083 = vmatprep.mubr.msk.f32.mxu0 %vm18199_vm0, %v20039_v4  ;;  %v18311_v10 = vld [vmem:[%s20016_s4 + $0x2] sm:$0x3]  ;;  %v18201_v41 = vmov 0   ;;  %v54_v47 = vld [vmem:[%s20017_s2] sm:$0x3] }
   0x2   :  { %s20103_s23 = sld [smem:[#allocation38_spill]]  ;;  %16912 = vmatprep.subr.bf16.mxu1 %v20041_v0  ;;  %15072 = vmatprep.mubr.msk.f32.mxu1 %vm18199_vm0, %v20039_v4  ;;  %v91_v16 = vsel %vm89_vm1, %v18311_v10, 0  ;;  %vm584_vm2 = vcmask 58368   ;;  %v52_v57 = vld [vmem:[%s20018_s1] sm:$0xff]  ;;  %v53_v58 = vld [vmem:[%s20018_s1 + $0x8] sm:$0xff]  ;;  %vm600_vm3 = vcmask 64512  }
   0x3   :  { %v162_v20 = vand.u32 4294901760, %v91_v16  ;;  %18093 = vset.pattern.permute.xlu0 %v18201_v41  ;;  %18094 = vset.pattern.permute.xlu1 %v18201_v41  ;;  %v608_v59 = vand.u32 4294901760, %v52_v57  ;;  %v611_v60 = vand.u32 4294901760, %v53_v58  ;;  %vm603_vm4 = vcmask 130048   ;;  %v1066_v41 = vld [vmem:[%s20022_s0] sm:$0x3] }
   0x4   :  { %vm2555_vm5 = vcmask 523264   ;;  %vm3620_vm6 = vcmask 254976   ;;  %vm14194_vm7 = vcmask 1041408   ;;  %vm14196_vm8 = vcmask 1043456  }
   0x5   :  { %v163_v26 = vsub.f32 %v91_v16, %v162_v20  ;;  %v18378_v61 = vpack.c.bf16 %v611_v60, %v608_v59  ;;  %v686_v62 = vsub.f32 %v52_v57, %v608_v59  ;;  %v693_v63 = vsub.f32 %v53_v58, %v611_v60  ;;  %v61_v16 = vld [vmem:[%s20019_s7 + $0x8] sm:$0xff] }
   0x6   :  { %vm3638_vm9 = vcmask 320512   ;;  %vm14198_vm10 = vcmask 1045504  }
   0x7   :  { %v164_v31 = vand.u32 4294901760, %v163_v26 }
   0x8   :  { %v56_v1 = vld [vmem:[%s20103_s23] sm:$0xff]  ;;  %v57_v2 = vld [vmem:[%s20103_s23 + $0x8] sm:$0xff]  ;;  %v58_v3 = vld [vmem:[%s20103_s23 + $0x10] sm:$0xff] }
   0x9   :  { %v94_v5 = vand.u32 4294901760, %v56_v1  ;;  %v97_v6 = vand.u32 4294901760, %v57_v2  ;;  %v59_v7 = vld [vmem:[%s20103_s23 + $0x18] sm:$0xff]  ;;  %v100_v8 = vand.u32 4294901760, %v58_v3  ;;  %v165_v34 = vsub.f32 %v163_v26, %v164_v31  ;;  %s18202_s23 = smov 8  }
   0xa   :  { %v103_v9 = vand.u32 4294901760, %v59_v7 }
   0xb   :  { %v18313_v11 = vpack.c.bf16 %v97_v6, %v94_v5  ;;  %v174_v12 = vsub.f32 %v56_v1, %v94_v5  ;;  %v181_v13 = vsub.f32 %v57_v2, %v97_v6  ;;  %v188_v14 = vsub.f32 %v58_v3, %v100_v8 }
   0xc   :  { %v195_v15 = vsub.f32 %v59_v7, %v103_v9  ;;  %v18318_v21 = vpack.c.bf16 %v103_v9, %v100_v8  ;;  %v166_v36 = vand.u32 4294901760, %v165_v34  ;;  %v687_v3 = vand.u32 4294901760, %v686_v62  ;;  %v64_v34 = vld [vmem:[%s20021_s8] sm:$0xff] }
   0xd   :  { %v175_v17 = vand.u32 4294901760, %v174_v12  ;;  %v182_v18 = vand.u32 4294901760, %v181_v13  ;;  %v189_v19 = vand.u32 4294901760, %v188_v14  ;;  %16914 = vmatpush3.bf16.msra.mxu1 %v18313_v11  ;;  %v18332_v37 = vpack.c.bf16 %v181_v13, %v174_v12 }
   0xe   :  { %v196_v22 = vand.u32 4294901760, %v195_v15  ;;  %16915 = vmatprep.subr.bf16.mxu1 %v20041_v0  ;;  %v18336_v38 = vpack.c.bf16 %v195_v15, %v188_v14  ;;  %v694_v5 = vand.u32 4294901760, %v693_v63  ;;  %v688_v6 = vsub.f32 %v686_v62, %v687_v3 }
   0xf   :  { %v176_v23 = vsub.f32 %v174_v12, %v175_v17  ;;  %v183_v24 = vsub.f32 %v181_v13, %v182_v18  ;;  %v190_v25 = vsub.f32 %v188_v14, %v189_v19  ;;  %v18348_v39 = vpack.c.bf16 %v182_v18, %v175_v17 }
  0x10   :  { %v197_v27 = vsub.f32 %v195_v15, %v196_v22  ;;  %v18352_v40 = vpack.c.bf16 %v196_v22, %v189_v19  ;;  %v695_v7 = vsub.f32 %v693_v63, %v694_v5  ;;  %v689_v8 = vand.u32 4294901760, %v688_v6  ;;  %v60_v15 = vld [vmem:[%s20019_s7] sm:$0xff] }
  0x11   :  { %v177_v28 = vand.u32 4294901760, %v176_v23  ;;  %v184_v29 = vand.u32 4294901760, %v183_v24  ;;  %v191_v30 = vand.u32 4294901760, %v190_v25  ;;  %16917 = vmatpush3.bf16.msra.mxu1 %v18318_v21  ;;  %20104 = vst [vmem:[#allocation2_spill] sm:$0xff] %v18348_v39  ;;  %v18388_v13 = vpack.c.bf16 %v693_v63, %v686_v62  ;;  %v55_v23 = vld [vmem:[%s20020_s3] sm:$0x3] }
  0x12   :  { %v198_v32 = vand.u32 4294901760, %v197_v27  ;;  %16948 = vmatprep.subr.bf16.mxu1 %v20041_v0  ;;  %20105 = vst [vmem:[#allocation3_spill] sm:$0xff] %v18352_v40  ;;  %v696_v9 = vand.u32 4294901760, %v695_v7  ;;  %v18390_v14 = vpack.c.bf16 %v694_v5, %v687_v3  ;;  %v1533_v17 = vand.u32 4294901760, %v60_v15 }
  0x13   :  { %v18323_v33 = vpack.c.bf16 %v184_v29, %v177_v28  ;;  %20108 = vst [vmem:[#allocation6_spill] sm:$0xff] %v18388_v13  ;;  %v1536_v18 = vand.u32 4294901760, %v61_v16 }
  0x14   :  { %v18326_v35 = vpack.c.bf16 %v198_v32, %v191_v30  ;;  %15073 = vmatmul.mubr.f32.vlgmr.msra.gmra.mrb[0].mxu1 %v166_v36  ;;  %v18386_v12 = vpack.c.bf16 %v696_v9, %v689_v8  ;;  %20109 = vst [vmem:[#allocation7_spill] sm:$0xff] %v18390_v14  ;;  %v65_v36 = vld [vmem:[%s20021_s8 + $0x8] sm:$0xff]  ;;  %v62_v9 = vld [vmem:[%s20019_s7 + $0x10] sm:$0xff]  ;;  %s18204_s8 = smov 32  }
  0x15   :  { %16920 = vmatpush3.bf16.msra.mxu0 %v18323_v33  ;;  %15134 = vmatprep.mubr.msk.f32.mxu1 %vm18199_vm0, %v20039_v4  ;;  %v18398_v19 = vpack.c.bf16 %v1536_v18, %v1533_v17  ;;  %v18402_v22 = vsub.f32 %v61_v16, %v1536_v18  ;;  %v1539_v16 = vand.u32 4294901760, %v62_v9 }
  0x16   :  { %16921 = vmatprep.subr.bf16.mxu0 %v20041_v0  ;;  %16950 = vmatpush3.bf16.msra.mxu1 %v18378_v61  ;;  %20107 = vst [vmem:[#allocation5_spill] sm:$0xff] %v18386_v12 }
  0x17   :  { %16951 = vmatprep.subr.bf16.mxu1 %v20041_v0  ;;  %v1621_v63 = vand.u32 4294901760, %v18402_v22  ;;  %v1627_v18 = vsub.f32 %v62_v9, %v1539_v16 }
  0x19   :  { %16923 = vmatpush3.bf16.msra.mxu0 %v18326_v35  ;;  %v1622_v5 = vsub.f32 %v18402_v22, %v1621_v63 }
  0x1a   :  { %16924 = vmatprep.subr.bf16.mxu0 %v20041_v0 }
  0x1b   :  { %v1623_v7 = vand.u32 4294901760, %v1622_v5 }
  0x1c   :  { %15084 = vmatmul.mubr.f32.vlgmr.msra.gmra.mrb[0].mxu0 %v162_v20 }
  0x1d   :  { %16926 = vmatpush3.bf16.msra.mxu0 %v18332_v37  ;;  %15094 = vmatprep.mubr.msk.f32.mxu0 %vm18199_vm0, %v20039_v4 }
  0x1e   :  { %16927 = vmatprep.subr.bf16.mxu0 %v20041_v0 }
  0x21   :  { %16929 = vmatpush3.bf16.msra.mxu0 %v18336_v38 }
  0x22   :  { %16930 = vmatprep.subr.bf16.mxu0 %v20041_v0 }
  0x24   :  { %15095 = vmatmul.mubr.f32.vlgmr.msra.gmra.mrb[0].mxu0 %v163_v26 }
  0x25   :  { %16932 = vmatpush3.bf16.msra.mxu0 %v18313_v11  ;;  %15105 = vmatprep.mubr.msk.f32.mxu0 %vm18199_vm0, %v20039_v4 }
  0x26   :  { %16933 = vmatprep.subr.bf16.mxu0 %v20041_v0 }
  0x29   :  { %16935 = vmatpush3.bf16.msra.mxu0 %v18318_v21 }
  0x2a   :  { %16936 = vmatprep.subr.bf16.mxu0 %v20041_v0 }
  0x2c   :  { %15106 = vmatmul.mubr.f32.vlgmr.msra.gmra.mrb[0].mxu0 %v164_v31 }
  0x2d   :  { %16938 = vmatpush3.bf16.msra.mxu0 %v18348_v39  ;;  %15116 = vmatprep.mubr.msk.f32.mxu0 %vm18199_vm0, %v20039_v4 }
  0x2e   :  { %16939 = vmatprep.subr.bf16.mxu0 %v20041_v0 }
  0x31   :  { %16941 = vmatpush3.bf16.msra.mxu0 %v18352_v40 }
  0x32   :  { %16942 = vmatprep.subr.bf16.mxu0 %v20041_v0 }
  0x34   :  { %15117 = vmatmul.mubr.f32.vlgmr.msra.gmra.mrb[0].mxu0 %v162_v20 }
  0x35   :  { %16944 = vmatpush3.bf16.msra.mxu0 %v18313_v11  ;;  %15127 = vmatprep.mubr.msk.f32.mxu0 %vm18199_vm0, %v20039_v4 }
  0x36   :  { %16945 = vmatprep.subr.bf16.mxu0 %v20041_v0 }
  0x39   :  { %16947 = vmatpush3.bf16.msra.mxu0 %v18318_v21 }
  0x3a   :  { %16984 = vmatprep.subr.bf16.mxu0 %v20041_v0 }
  0x3c   :  { %15128 = vmatmul.mubr.f32.vlgmr.msra.gmra.mrb[0].mxu0 %v162_v20  ;;  %v18400_v20 = vsub.f32 %v60_v15, %v1533_v17  ;;  %v63_v15 = vld [vmem:[%s20019_s7 + $0x18] sm:$0xff] }
  0x3d   :  { %15222 = vmatprep.mubr.msk.f32.mxu0 %vm18199_vm0, %v20039_v4  ;;  %16986 = vmatpush3.bf16.msra.mxu0 %v18398_v19  ;;  %v1542_v17 = vand.u32 4294901760, %v63_v15 }
  0x3e   :  { %16987 = vmatprep.subr.bf16.mxu0 %v20041_v0  ;;  %v1614_v62 = vand.u32 4294901760, %v18400_v20 }
  0x40   :  { %v1615_v3 = vsub.f32 %v18400_v20, %v1614_v62 }
  0x42   :  { %v1616_v6 = vand.u32 4294901760, %v1615_v3 }
  0x44   :  { %v18481_v8 = vpack.c.bf16 %v1623_v7, %v1616_v6 }
  0x46   :  { %20114 = vst [vmem:[#allocation12_spill] sm:$0xff] %v18481_v8 }
  0xe7   :  { %v168_v42 = vpop.f32.mrb[0].mxu1 }
  0xe8   :  { %v15074_v43 = vpop.f32.mrb[1].mxu1 }
  0xe9   :  { %v1074_v43 = vand.u32 4294901760, %v65_v36 }
 0x10f   :  { %v574_v44 = vpop.f32.mrb[0].mxu0 }
 0x110   :  { %v17920_v45 = vadd.f32 %v574_v44, %v168_v42  ;;  %v15129_v46 = vpop.f32.mrb[1].mxu0  ;;  %v1071_v42 = vand.u32 4294901760, %v64_v34  ;;  %v1068_v44 = vsel %vm603_vm4, %v1066_v41, 0  ;;  %v18514_v41 = vld [vmem:[%s20023_s9 + $0x8] sm:$0xff] }
 0x112   :  { %580 = vperm.xlu0 %18093, %v17920_v45   ;;  %v1137_v45 = vand.u32 4294901760, %v1068_v44  ;;  %v1149_v46 = vsub.f32 %v64_v34, %v1071_v42 }
 0x191   :  { %v581_v48 = vpop.permute.xlu0 %580 }
 0x192   :  { %v583_v49 = vadd.f32 %v581_v48, %v54_v47  ;;  %v1156_v47 = vsub.f32 %v65_v36, %v1074_v43  ;;  %v1138_v48 = vsub.f32 %v1068_v44, %v1137_v45  ;;  %v18509_v36 = vld [vmem:[%s20023_s9] sm:$0xff]  ;;  %v18521_v44 = vld [vmem:[%s20023_s9 + $0x10] sm:$0xff] }
 0x194   :  { %v585_v50 = vsel %vm584_vm2, %v583_v49, -inf  ;;  %v18453_v60 = vpack.c.bf16 %v1156_v47, %v1149_v46 }
 0x195   :  { %586 = vmax.xlane.f32.xlu0 %v585_v50  ;;  %v1157_v50 = vand.u32 4294901760, %v1156_v47 }
 0x196   :  { %20112 = vst [vmem:[#allocation10_spill] sm:$0xff] %v18453_v60 }
 0x222   :  { %v587_v51 = vpop.xlane.xlu0 %586 }
 0x223   :  { %v588_v52 = vsub.f32 %v583_v49, %v587_v51  ;;  %v1150_v49 = vand.u32 4294901760, %v1149_v46  ;;  %v1139_v51 = vand.u32 4294901760, %v1138_v48 }
 0x225   :  { %v589_v53 = vmul.f32 1.442695, %v588_v52  ;;  %v1151_v52 = vsub.f32 %v1149_v46, %v1150_v49 }
 0x227   :  { %18095 = vpow2.f32 %v589_v53  ;;  %v1158_v53 = vsub.f32 %v1156_v47, %v1157_v50 }
 0x229   :  { %v1159_v57 = vand.u32 4294901760, %v1158_v53 }
 0x231   :  { %v18096_v54 = vpop.eup %18095 }
 0x232   :  { %v591_v55 = vsel %vm584_vm2, %v18096_v54, 0.0 }
 0x233   :  { %592 = vadd.xlane.f32.xlu1 %v591_v55  ;;  %v18442_v55 = vpack.c.bf16 %v1074_v43, %v1071_v42  ;;  %v2021_v42 = vand.u32 4294901760, %v18509_v36  ;;  %v2024_v43 = vand.u32 4294901760, %v18514_v41 }
 0x235   :  { %20110 = vst [vmem:[#allocation8_spill] sm:$0xff] %v18442_v55 }
 0x2c0   :  { %v593_v56 = vpop.xlane.xlu1 %592 }
 0x2c1   :  { %18097 = vrcp.f32 %v593_v56  ;;  %v1152_v56 = vand.u32 4294901760, %v1151_v52  ;;  %v2027_v52 = vand.u32 4294901760, %v18521_v44 }
 0x2c3   :  { %v18447_v59 = vpack.c.bf16 %v1159_v57, %v1152_v56  ;;  %v18554_v6 = vsub.f32 %v18521_v44, %v2027_v52 }
 0x2c5   :  { %20111 = vst [vmem:[#allocation9_spill] sm:$0xff] %v18447_v59 }
 0x2cb   :  { %v18098_v1 = vpop.eup %18097 }
 0x2cc   :  { %v18380_v2 = vmul.f32 %v18098_v1, %v18096_v54  ;;  %v1140_v54 = vsub.f32 %v1138_v48, %v1139_v51  ;;  %v18465_v1 = vpack.c.bf16 %v1157_v50, %v1150_v49  ;;  %v18532_v49 = vsub.f32 %v18509_v36, %v2021_v42 }
 0x2ce   :  { %20106 = vst [vmem:[#allocation4_spill] sm:$0xff] %v18380_v2  ;;  %597 = vrot.lane.b32.xlu1 %v18380_v2, %s18202_s23  ;;  %v1141_v58 = vand.u32 4294901760, %v1140_v54  ;;  %20113 = vst [vmem:[#allocation11_spill] sm:$0xff] %v18465_v1  ;;  %v2102_v57 = vand.u32 4294901760, %v18532_v49 }
 0x340   :  { %v598_v24 = vpop.permute.xlu1 %597 }
 0x341   :  { %v601_v25 = vsel %vm600_vm3, %v18380_v2, %v598_v24  ;;  %v1628_v24 = vand.u32 4294901760, %v1627_v18 }
 0x342   :  { %v602_v26 = vmul.f32 %v601_v25, %v55_v23  ;;  %v1634_v23 = vsub.f32 %v63_v15, %v1542_v17 }
 0x344   :  { %v605_v27 = vsel %vm603_vm4, %v602_v26, 0  ;;  %v1635_v25 = vand.u32 4294901760, %v1634_v23  ;;  %v1629_v26 = vsub.f32 %v1627_v18, %v1628_v24 }
 0x345   :  { %v674_v28 = vand.u32 4294901760, %v605_v27 }
 0x346   :  { %v18504_v34 = vpack.c.bf16 %v1635_v25, %v1628_v24  ;;  %v85_v24 = vld [vmem:[%s20016_s4] sm:$0x3] }
 0x347   :  { %v675_v29 = vsub.f32 %v605_v27, %v674_v28  ;;  %v1636_v27 = vsub.f32 %v1634_v23, %v1635_v25 }
 0x349   :  { %v676_v30 = vand.u32 4294901760, %v675_v29 }
 0x34b   :  { %v677_v31 = vsub.f32 %v675_v29, %v676_v30 }
 0x34d   :  { %v678_v32 = vand.u32 4294901760, %v677_v31  ;;  %v18498_v31 = vpack.c.bf16 %v1542_v17, %v1539_v16  ;;  %v18564_v16 = vpack.c.bf16 %v18402_v22, %v18400_v20  ;;  %v2103_v17 = vsub.f32 %v18532_v49, %v2102_v57 }
 0x34f   :  { %15135 = vmatmul.mubr.f32.vlgmr.msra.gmra.mrb[2].mxu1 %v678_v32  ;;  %16989 = vmatpush3.bf16.msra.mxu0 %v18498_v31  ;;  %v18502_v32 = vpack.c.bf16 %v1634_v23, %v1627_v18 }
 0x350   :  { %16953 = vmatpush3.bf16.msra.mxu1 %v18386_v12  ;;  %15141 = vmatprep.mubr.msk.f32.mxu1 %vm18199_vm0, %v20039_v4 }
 0x351   :  { %16954 = vmatprep.subr.bf16.mxu1 %v20041_v0  ;;  %16996 = vmatprep.subr.bf16.mxu0 %v20041_v0 }
 0x357   :  { %15142 = vmatmul.mubr.f32.vlgmr.msra.gmra.mrb[2].mxu1 %v674_v28 }
 0x358   :  { %16956 = vmatpush3.bf16.msra.mxu1 %v18388_v13  ;;  %15148 = vmatprep.mubr.msk.f32.mxu1 %vm18199_vm0, %v20039_v4 }
 0x359   :  { %16957 = vmatprep.subr.bf16.mxu1 %v20041_v0 }
 0x35f   :  { %15149 = vmatmul.mubr.f32.vlgmr.msra.gmra.mrb[2].mxu1 %v675_v29  ;;  %v1637_v29 = vand.u32 4294901760, %v1636_v27  ;;  %v2116_v27 = vand.u32 4294901760, %v18554_v6 }
 0x360   :  { %16959 = vmatpush3.bf16.msra.mxu1 %v18378_v61  ;;  %15155 = vmatprep.mubr.msk.f32.mxu1 %vm18199_vm0, %v20039_v4 }
 0x361   :  { %16960 = vmatprep.subr.bf16.mxu1 %v20041_v0 }
 0x367   :  { %15156 = vmatmul.mubr.f32.vlgmr.msra.gmra.mrb[2].mxu1 %v676_v30 }
 0x368   :  { %16962 = vmatpush3.bf16.msra.mxu1 %v18390_v14  ;;  %15162 = vmatprep.mubr.msk.f32.mxu1 %vm18199_vm0, %v20039_v4 }
 0x369   :  { %16963 = vmatprep.subr.bf16.mxu1 %v20041_v0 }
 0x36f   :  { %15163 = vmatmul.mubr.f32.vlgmr.msra.gmra.mrb[2].mxu1 %v674_v28 }
 0x370   :  { %16965 = vmatpush3.bf16.msra.mxu1 %v18378_v61  ;;  %15169 = vmatprep.mubr.msk.f32.mxu1 %vm18199_vm0, %v20039_v4 }
 0x371   :  { %16966 = vmatprep.subr.bf16.mxu1 %v20041_v0 }
 0x377   :  { %15170 = vmatmul.mubr.f32.vlgmr.msra.gmra.mrb[2].mxu1 %v674_v28  ;;  %v1630_v28 = vand.u32 4294901760, %v1629_v26 }
 0x378   :  { %16968 = vmatpush3.bf16.msra.mxu1 %v18442_v55  ;;  %15176 = vmatprep.mubr.msk.f32.mxu1 %vm18199_vm0, %v20039_v4 }
 0x379   :  { %16969 = vmatprep.subr.bf16.mxu1 %v20041_v0  ;;  %v18494_v30 = vpack.c.bf16 %v1637_v29, %v1630_v28 }
 0x37b   :  { %15177 = vmatmul.mubr.f32.vlgmr.msra.gmra.mrb[4].mxu1 %v1141_v58  ;;  %20115 = vst [vmem:[#allocation13_spill] sm:$0xff] %v18494_v30 }
 0x37c   :  { %16971 = vmatpush3.bf16.msra.mxu1 %v18447_v59  ;;  %15183 = vmatprep.mubr.msk.f32.mxu1 %vm18199_vm0, %v20039_v4 }
 0x37d   :  { %16972 = vmatprep.subr.bf16.mxu1 %v20041_v0 }
 0x37f   :  { %15184 = vmatmul.mubr.f32.vlgmr.msra.gmra.mrb[6].mxu1 %v1137_v45 }
 0x380   :  { %16974 = vmatpush3.bf16.msra.mxu1 %v18453_v60  ;;  %15190 = vmatprep.mubr.msk.f32.mxu1 %vm18199_vm0, %v20039_v4 }
 0x381   :  { %16975 = vmatprep.subr.bf16.mxu1 %v20041_v0 }
 0x383   :  { %15191 = vmatmul.mubr.f32.vlgmr.msra.gmra.mrb[8].mxu1 %v1138_v48 }
 0x384   :  { %16977 = vmatpush3.bf16.msra.mxu1 %v18442_v55  ;;  %15197 = vmatprep.mubr.msk.f32.mxu1 %vm18199_vm0, %v20039_v4 }
 0x385   :  { %16978 = vmatprep.subr.bf16.mxu1 %v20041_v0 }
 0x387   :  { %15198 = vmatmul.mubr.f32.vlgmr.msra.gmra.mrb[10].mxu1 %v1139_v51  ;;  %v18539_v51 = vsub.f32 %v18514_v41, %v2024_v43 }
 0x388   :  { %16980 = vmatpush3.bf16.msra.mxu1 %v18465_v1  ;;  %15204 = vmatprep.mubr.msk.f32.mxu1 %vm18199_vm0, %v20039_v4 }
 0x389   :  { %16981 = vmatprep.subr.bf16.mxu1 %v20041_v0  ;;  %v2109_v5 = vand.u32 4294901760, %v18539_v51 }
 0x38b   :  { %15205 = vmatmul.mubr.f32.vlgmr.msra.gmra.mrb[12].mxu1 %v1137_v45  ;;  %v2110_v26 = vsub.f32 %v18539_v51, %v2109_v5  ;;  %v18670_v44 = vpack.c.bf16 %v2109_v5, %v2102_v57 }
 0x38c   :  { %16983 = vmatpush3.bf16.msra.mxu1 %v18442_v55  ;;  %15211 = vmatprep.mubr.msk.f32.mxu1 %vm18199_vm0, %v20039_v4 }
 0x38d   :  { %16990 = vmatprep.subr.bf16.mxu1 %v20041_v0  ;;  %20120 = vst [vmem:[#allocation18_spill] sm:$0xff] %v18670_v44 }
 0x38f   :  { %15212 = vmatmul.mubr.f32.vlgmr.msra.gmra.mrb[14].mxu1 %v1137_v45  ;;  %v18526_v45 = vld [vmem:[%s20023_s9 + $0x18] sm:$0xff] }
 0x390   :  { %16992 = vmatpush3.bf16.msra.mxu1 %v18481_v8  ;;  %15233 = vmatprep.mubr.msk.f32.mxu1 %vm18199_vm0, %v20039_v4  ;;  %v2030_v53 = vand.u32 4294901760, %v18526_v45 }
 0x391   :  { %16993 = vmatprep.subr.bf16.mxu1 %v20041_v0 }
 0x392   :  { %v18559_v7 = vsub.f32 %v18526_v45, %v2030_v53  ;;  %v18635_v36 = vpack.c.bf16 %v2030_v53, %v2027_v52 }
 0x394   :  { %16995 = vmatpush3.bf16.msra.mxu1 %v18494_v30  ;;  %v2123_v28 = vand.u32 4294901760, %v18559_v7  ;;  %20117 = vst [vmem:[#allocation15_spill] sm:$0xff] %v18635_v36 }
 0x395   :  { %17002 = vmatprep.subr.bf16.mxu1 %v20041_v0 }
 0x396   :  { %v18680_v45 = vpack.c.bf16 %v2123_v28, %v2116_v27 }
 0x398   :  { %20121 = vst [vmem:[#allocation19_spill] sm:$0xff] %v18680_v45 }
 0x44a   :  { %v1062_v46 = vpop.f32.mrb[2].mxu1 }
 0x44b   :  { %v1530_v47 = vsel %vm89_vm1, %v1062_v46, 0  ;;  %v15171_v48 = vpop.f32.mrb[3].mxu1  ;;  %v2018_v46 = vsel %vm89_vm1, %v85_v24, 0 }
 0x44c   :  { %v18534_v50 = vand.u32 4294901760, %v1530_v47 }
 0x44e   :  { %v1602_v54 = vsub.f32 %v1530_v47, %v18534_v50  ;;  %15234 = vmatmul.mubr.f32.vlgmr.msra.gmra.mrb[16].mxu1 %v18534_v50  ;;  %v1143_v56 = vpop.f32.mrb[4].mxu1 }
 0x44f   :  { %17004 = vmatpush3.bf16.msra.mxu1 %v18398_v19  ;;  %15255 = vmatprep.mubr.msk.f32.mxu1 %vm18199_vm0, %v20039_v4  ;;  %v15178_v58 = vpop.f32.mrb[5].mxu1 }
 0x450   :  { %v1603_v3 = vand.u32 4294901760, %v1602_v54  ;;  %17005 = vmatprep.subr.bf16.mxu1 %v20041_v0  ;;  %v2111_v58 = vand.u32 4294901760, %v2110_v26 }
 0x452   :  { %v1604_v9 = vsub.f32 %v1602_v54, %v1603_v3  ;;  %v1224_v15 = vpop.f32.mrb[6].mxu1 }
 0x453   :  { %17007 = vmatpush3.bf16.msra.mxu1 %v18498_v31  ;;  %v1225_v18 = vadd.f32 %v1224_v15, %v1143_v56  ;;  %v15185_v23 = vpop.f32.mrb[7].mxu1  ;;  %v2104_v56 = vand.u32 4294901760, %v2103_v17  ;;  %v18593_v15 = vand.u32 4294901760, %v2018_v46  ;;  %v18601_v17 = vpack.c.bf16 %v1621_v63, %v1614_v62 }
 0x454   :  { %v1605_v25 = vand.u32 4294901760, %v1604_v9  ;;  %17014 = vmatprep.subr.bf16.mxu1 %v20041_v0  ;;  %v2124_v9 = vsub.f32 %v18559_v7, %v2123_v28 }
 0x456   :  { %15256 = vmatmul.mubr.f32.vlgmr.msra.gmra.mrb[18].mxu1 %v1603_v3  ;;  %15223 = vmatmul.mubr.f32.vlgmr.msra.gmra.mrb[2].mxu0 %v1605_v25  ;;  %v1300_v29 = vpop.f32.mrb[8].mxu1  ;;  %v2117_v3 = vsub.f32 %v18554_v6, %v2116_v27  ;;  %v18605_v25 = vpack.c.bf16 %v2111_v58, %v2104_v56 }
 0x457   :  { %16998 = vmatpush3.bf16.msra.mxu0 %v18564_v16  ;;  %17016 = vmatpush3.bf16.msra.mxu1 %v18398_v19  ;;  %v1301_v47 = vadd.f32 %v1300_v29, %v1225_v18  ;;  %v15192_v48 = vpop.f32.mrb[9].mxu1  ;;  %v2125_v29 = vand.u32 4294901760, %v2124_v9 }
 0x458   :  { %16999 = vmatprep.subr.bf16.mxu0 %v20041_v0  ;;  %17017 = vmatprep.subr.bf16.mxu1 %v20041_v0  ;;  %v2118_v26 = vand.u32 4294901760, %v2117_v3  ;;  %v2090_v48 = vsub.f32 %v2018_v46, %v18593_v15 }
 0x459   :  { %15244 = vmatprep.mubr.msk.f32.mxu0 %vm18199_vm0, %v20039_v4  ;;  %15277 = vmatprep.mubr.msk.f32.mxu1 %vm18199_vm0, %v20039_v4 }
 0x45a   :  { %v1375_v18 = vpop.f32.mrb[10].mxu1  ;;  %v18614_v63 = vpack.c.bf16 %v2125_v29, %v2118_v26 }
 0x45b   :  { %17001 = vmatpush3.bf16.msra.mxu0 %v18502_v32  ;;  %17019 = vmatpush3.bf16.msra.mxu1 %v18498_v31  ;;  %v1376_v23 = vadd.f32 %v1375_v18, %v1301_v47  ;;  %v15199_v24 = vpop.f32.mrb[11].mxu1  ;;  %v18624_v47 = vpack.c.bf16 %v2024_v43, %v2021_v42  ;;  %v18648_v42 = vpack.c.bf16 %v18539_v51, %v18532_v49 }
 0x45c   :  { %17008 = vmatprep.subr.bf16.mxu0 %v20041_v0  ;;  %17026 = vmatprep.subr.bf16.mxu1 %v20041_v0  ;;  %v18656_v43 = vpack.c.bf16 %v18559_v7, %v18554_v6 }
 0x45d   :  { %20116 = vst [vmem:[#allocation14_spill] sm:$0xff] %v18624_v47  ;;  %20118 = vst [vmem:[#allocation16_spill] sm:$0xff] %v18648_v42 }
 0x45e   :  { %15245 = vmatmul.mubr.f32.vlgmr.msra.gmra.mrb[4].mxu0 %v1602_v54  ;;  %15278 = vmatmul.mubr.f32.vlgmr.msra.gmra.mrb[20].mxu1 %v18534_v50  ;;  %v1452_v20 = vpop.f32.mrb[12].mxu1  ;;  %v2091_v54 = vand.u32 4294901760, %v2090_v48  ;;  %20119 = vst [vmem:[#allocation17_spill] sm:$0xff] %v18656_v43 }
 0x45f   :  { %17010 = vmatpush3.bf16.msra.mxu0 %v18601_v17  ;;  %15266 = vmatprep.mubr.msk.f32.mxu0 %vm18199_vm0, %v20039_v4  ;;  %v1453_v22 = vadd.f32 %v1452_v20, %v1376_v23  ;;  %v15206_v62 = vpop.f32.mrb[13].mxu1 }
 0x460   :  { %17011 = vmatprep.subr.bf16.mxu0 %v20041_v0  ;;  %17028 = vmatpush3.bf16.msra.mxu1 %v18605_v25  ;;  %v2092_v3 = vsub.f32 %v2090_v48, %v2091_v54 }
 0x461   :  { %17029 = vmatprep.subr.bf16.mxu1 %v20041_v0  ;;  %15299 = vmatprep.mubr.msk.f32.mxu1 %vm18199_vm0, %v20039_v4 }
 0x462   :  { %v1525_v46 = vpop.f32.mrb[14].mxu1  ;;  %v2093_v41 = vand.u32 4294901760, %v2092_v3 }
 0x463   :  { %17013 = vmatpush3.bf16.msra.mxu0 %v18504_v34  ;;  %v1526_v56 = vadd.f32 %v1525_v46, %v1453_v22  ;;  %v15213_v58 = vpop.f32.mrb[15].mxu1 }
 0x464   :  { %17020 = vmatprep.subr.bf16.mxu0 %v20041_v0  ;;  %17031 = vmatpush3.bf16.msra.mxu1 %v18614_v63 }
 0x465   :  { %17038 = vmatprep.subr.bf16.mxu1 %v20041_v0 }
 0x466   :  { %15267 = vmatmul.mubr.f32.vlgmr.msra.gmra.mrb[6].mxu0 %v18534_v50 }
 0x467   :  { %17022 = vmatpush3.bf16.msra.mxu0 %v18624_v47  ;;  %15288 = vmatprep.mubr.msk.f32.mxu0 %vm18199_vm0, %v20039_v4 }
 0x468   :  { %17023 = vmatprep.subr.bf16.mxu0 %v20041_v0  ;;  %15300 = vmatmul.mubr.f32.vlgmr.msra.gmra.mrb[22].mxu1 %v18593_v15 }
 0x469   :  { %17040 = vmatpush3.bf16.msra.mxu1 %v18624_v47  ;;  %15321 = vmatprep.mubr.msk.f32.mxu1 %vm18199_vm0, %v20039_v4 }
 0x46a   :  { %17041 = vmatprep.subr.bf16.mxu1 %v20041_v0 }
 0x46b   :  { %17025 = vmatpush3.bf16.msra.mxu0 %v18635_v36 }
 0x46c   :  { %17032 = vmatprep.subr.bf16.mxu0 %v20041_v0 }
 0x46d   :  { %17043 = vmatpush3.bf16.msra.mxu1 %v18635_v36 }
 0x46e   :  { %15289 = vmatmul.mubr.f32.vlgmr.msra.gmra.mrb[8].mxu0 %v2093_v41  ;;  %17050 = vmatprep.subr.bf16.mxu1 %v20041_v0 }
 0x46f   :  { %17034 = vmatpush3.bf16.msra.mxu0 %v18648_v42  ;;  %15310 = vmatprep.mubr.msk.f32.mxu0 %vm18199_vm0, %v20039_v4 }
 0x470   :  { %17035 = vmatprep.subr.bf16.mxu0 %v20041_v0  ;;  %15322 = vmatmul.mubr.f32.vlgmr.msra.gmra.mrb[24].mxu1 %v2091_v54 }
 0x471   :  { %17052 = vmatpush3.bf16.msra.mxu1 %v18624_v47  ;;  %15343 = vmatprep.mubr.msk.f32.mxu1 %vm18199_vm0, %v20039_v4 }
 0x472   :  { %17053 = vmatprep.subr.bf16.mxu1 %v20041_v0 }
 0x473   :  { %17037 = vmatpush3.bf16.msra.mxu0 %v18656_v43 }
 0x474   :  { %17044 = vmatprep.subr.bf16.mxu0 %v20041_v0 }
 0x475   :  { %17055 = vmatpush3.bf16.msra.mxu1 %v18635_v36 }
 0x476   :  { %15311 = vmatmul.mubr.f32.vlgmr.msra.gmra.mrb[10].mxu0 %v2090_v48  ;;  %17056 = vmatprep.subr.bf16.mxu1 %v20041_v0 }
 0x477   :  { %17046 = vmatpush3.bf16.msra.mxu0 %v18670_v44  ;;  %15332 = vmatprep.mubr.msk.f32.mxu0 %vm18199_vm0, %v20039_v4 }
 0x478   :  { %17047 = vmatprep.subr.bf16.mxu0 %v20041_v0  ;;  %15344 = vmatmul.mubr.f32.vlgmr.msra.gmra.mrb[26].mxu1 %v18593_v15 }
 0x479   :  { %15362 = vmatprep.mubr.msk.f32.mxu1 %vm18199_vm0, %v20039_v4 }
 0x47b   :  { %17049 = vmatpush3.bf16.msra.mxu0 %v18680_v45 }
 0x47c   :  { %17068 = vmatprep.subr.bf16.mxu0 %v20041_v0 }
 0x47e   :  { %15333 = vmatmul.mubr.f32.vlgmr.msra.gmra.mrb[12].mxu0 %v18593_v15 }
 0x47f   :  { %15381 = vmatprep.mubr.msk.f32.mxu0 %vm18199_vm0, %v20039_v4 }
 0x521   :  { %v1698_v49 = vpop.f32.mrb[16].mxu1 }
 0x522   :  { %v15235_v50 = vpop.f32.mrb[17].mxu1 }
 0x529   :  { %v1855_v51 = vpop.f32.mrb[18].mxu1  ;;  %v1607_v52 = vpop.f32.mrb[2].mxu0 }
 0x52a   :  { %v1608_v53 = vadd.f32 %v1607_v52, %v1526_v56  ;;  %v15257_v57 = vpop.f32.mrb[19].mxu1  ;;  %v15224_v5 = vpop.f32.mrb[3].mxu0 }
 0x52c   :  { %v1699_v6 = vadd.f32 %v1698_v49, %v1608_v53 }
 0x531   :  { %v1778_v7 = vpop.f32.mrb[4].mxu0  ;;  %v2013_v27 = vpop.f32.mrb[20].mxu1 }
 0x532   :  { %v1779_v28 = vadd.f32 %v1778_v7, %v1699_v6  ;;  %v15246_v9 = vpop.f32.mrb[5].mxu0  ;;  %v15279_v18 = vpop.f32.mrb[21].mxu1  ;;  %v14213_v6 = vld [vmem:[%s20024_s10] ss:$0 sm:$0xff] }
 0x533   :  { %v87_v9 = vld [vmem:[%s20025_s5] sm:$0x3] }
 0x534   :  { %v1856_v23 = vadd.f32 %v1855_v51, %v1779_v28 }
 0x539   :  { %v1938_v24 = vpop.f32.mrb[6].mxu0 }
 0x53a   :  { %v1939_v26 = vadd.f32 %v1938_v24, %v1856_v23  ;;  %v15268_v15 = vpop.f32.mrb[7].mxu0 }
 0x53b   :  { %v2186_v29 = vpop.f32.mrb[22].mxu1 }
 0x53c   :  { %v2014_v48 = vadd.f32 %v2013_v27, %v1939_v26  ;;  %v15301_v20 = vpop.f32.mrb[23].mxu1 }
 0x541   :  { %v2095_v22 = vpop.f32.mrb[8].mxu0 }
 0x542   :  { %v15290_v62 = vpop.f32.mrb[9].mxu0  ;;  %v2187_v54 = vadd.f32 %v2186_v29, %v2095_v22 }
 0x543   :  { %v2343_v46 = vpop.f32.mrb[24].mxu1 }
 0x544   :  { %v15323_v56 = vpop.f32.mrb[25].mxu1 }
 0x545   :  { %v73_v56 = vld [vmem:[%s20026_s11 + $0x10] sm:$0xff] }
 0x549   :  { %v2266_v58 = vpop.f32.mrb[10].mxu0 }
 0x54a   :  { %v2267_v3 = vadd.f32 %v2266_v58, %v2187_v54  ;;  %v15312_v41 = vpop.f32.mrb[11].mxu0  ;;  %v71_v54 = vld [vmem:[%s20026_s11] sm:$0xff] }
 0x54b   :  { %v2501_v49 = vpop.f32.mrb[26].mxu1  ;;  %v2560_v58 = vand.u32 4294901760, %v71_v54  ;;  %v74_v41 = vld [vmem:[%s20026_s11 + $0x18] sm:$0xff] }
 0x54c   :  { %v2344_v50 = vadd.f32 %v2343_v46, %v2267_v3  ;;  %v15345_v52 = vpop.f32.mrb[27].mxu1  ;;  %v72_v46 = vld [vmem:[%s20026_s11 + $0x8] sm:$0xff] }
 0x54d   :  { %v2563_v3 = vand.u32 4294901760, %v72_v46  ;;  %v76_v52 = vld [vmem:[%s20026_s11 + $0x28] sm:$0xff] }
 0x551   :  { %v2426_v53 = vpop.f32.mrb[12].mxu0 }
 0x552   :  { %v2427_v57 = vadd.f32 %v2426_v53, %v2344_v50  ;;  %v15334_v51 = vpop.f32.mrb[13].mxu0  ;;  %v75_v50 = vld [vmem:[%s20026_s11 + $0x20] sm:$0xff]  ;;  %v2569_v53 = vand.u32 4294901760, %v74_v41 }
 0x553   :  { %v2575_v51 = vand.u32 4294901760, %v76_v52 }
 0x554   :  { %v2502_v5 = vadd.f32 %v2501_v49, %v2427_v57  ;;  %v2566_v49 = vand.u32 4294901760, %v73_v56  ;;  %v2572_v57 = vand.u32 4294901760, %v75_v50 }
 0x556   :  { %v2505_v7 = vadd.f32 %v2502_v5, %v2014_v48  ;;  %v18727_v5 = vpack.c.bf16 %v2563_v3, %v2560_v58 }
 0x558   :  { %v2512_v27 = vadd.f32 %v14213_v6, %v2505_v7  ;;  %v18729_v6 = vsub.f32 %v71_v54, %v2560_v58  ;;  %v18731_v7 = vsub.f32 %v72_v46, %v2563_v3  ;;  %17058 = vmatpush3.bf16.msra.mxu1 %v18727_v5  ;;  %v18763_v3 = vpack.c.bf16 %v2575_v51, %v2572_v57 }
 0x559   :  { %17059 = vmatprep.subr.bf16.mxu1 %v20041_v0 }
 0x55a   :  { %18099 = vtanh.f32 %v2512_v27  ;;  %v14214_v18 = vmul.f32 -1.442695, %v2512_v27  ;;  %v18733_v27 = vsub.f32 %v73_v56, %v2566_v49 }
 0x55c   :  { %18101 = vpow2.f32 %v14214_v18  ;;  %v18739_v18 = vsub.f32 %v75_v50, %v2572_v57 }
 0x564   :  { %v18100_v28 = vpop.eup %18099 }
 0x565   :  { %2526 = vrot.lane.b32.xlu1 %v18100_v28, %s18203_s17  ;;  %v18735_v28 = vpack.c.bf16 %v2569_v53, %v2566_v49 }
 0x566   :  { %v18102_v23 = vpop.eup %18101 }
 0x567   :  { %v2516_v24 = vadd.f32 1.0, %v18102_v23  ;;  %v20038_v23 = vand.u32 4294901760, %v18729_v6  ;;  %17061 = vmatpush3.bf16.msra.mxu1 %v18735_v28 }
 0x568   :  { %17062 = vmatprep.subr.bf16.mxu1 %v20041_v0 }
 0x569   :  { %2521 = vrot.lane.b32.xlu1 %v87_v9, %s18204_s8  ;;  %18103 = vrcp.f32 %v2516_v24  ;;  %v18737_v9 = vsub.f32 %v74_v41, %v2569_v53  ;;  %v20034_v24 = vand.u32 4294901760, %v18731_v7 }
 0x56b   :  { %v2653_v54 = vsub.f32 %v18731_v7, %v20034_v24  ;;  %17064 = vmatpush3.bf16.msra.mxu1 %v18763_v3 }
 0x56c   :  { %17065 = vmatprep.subr.bf16.mxu1 %v20041_v0 }
 0x573   :  { %v18701_v26 = vpop.eup %18103 }
 0x5d7   :  { %v2527_v15 = vpop.permute.xlu1 %2526 }
 0x5d8   :  { %v2529_v29 = vmul.f32 %v18701_v26, %v2527_v15  ;;  %v20033_v15 = vand.u32 4294901760, %v18733_v27 }
 0x5da   :  { %2531 = vrot.lane.b32.xlu1 %v2529_v29, %s18204_s8  ;;  %v18744_v29 = vsub.f32 %v76_v52, %v2575_v51  ;;  %v2660_v46 = vsub.f32 %v18733_v27, %v20033_v15  ;;  %v2654_v52 = vand.u32 4294901760, %v2653_v54 }
 0x5db   :  { %v2522_v48 = vpop.permute.xlu1 %2521 }
 0x5dc   :  { %v2524_v20 = vmul.f32 %v18701_v26, %v2522_v48  ;;  %v20037_v48 = vand.u32 4294901760, %v18737_v9  ;;  %v20035_v56 = vand.u32 4294901760, %v18744_v29  ;;  %v2661_v53 = vand.u32 4294901760, %v2660_v46 }
 0x5de   :  { %v2667_v58 = vsub.f32 %v18737_v9, %v20037_v48  ;;  %v2681_v15 = vsub.f32 %v18744_v29, %v20035_v56 }
 0x5e0   :  { %v2668_v24 = vand.u32 4294901760, %v2667_v58  ;;  %v2682_v54 = vand.u32 4294901760, %v2681_v15 }
 0x5e2   :  { %v18777_v51 = vpack.c.bf16 %v2668_v24, %v2661_v53  ;;  %v77_v24 = vld [vmem:[%s20026_s11 + $0x30] sm:$0xff] }
 0x5e3   :  { %v2578_v15 = vand.u32 4294901760, %v77_v24 }
 0x5e4   :  { %20124 = vst [vmem:[#allocation22_spill] sm:$0xff] %v18777_v51 }
 0x64c   :  { %v2532_v22 = vpop.permute.xlu1 %2531 }
 0x64d   :  { %v18706_v62 = vadd.f32 %v2532_v22, %v2524_v20  ;;  %v20036_v20 = vand.u32 4294901760, %v18739_v18  ;;  %v2646_v22 = vsub.f32 %v18729_v6, %v20038_v23 }
 0x64f   :  { %20122 = vst [vmem:[#allocation20_spill] sm:$0xff] %v18706_v62  ;;  %18105 = vtanh.f32 %v18706_v62  ;;  %v2674_v41 = vsub.f32 %v18739_v18, %v20036_v20  ;;  %v2647_v50 = vand.u32 4294901760, %v2646_v22 }
 0x651   :  { %v18774_v57 = vpack.c.bf16 %v2654_v52, %v2647_v50  ;;  %v2675_v22 = vand.u32 4294901760, %v2674_v41  ;;  %v2686_v41 = vsub.f32 %v77_v24, %v2578_v15 }
 0x653   :  { %20123 = vst [vmem:[#allocation21_spill] sm:$0xff] %v18774_v57  ;;  %17070 = vmatpush3.bf16.msra.mxu0 %v18774_v57  ;;  %v18785_v46 = vpack.c.bf16 %v2682_v54, %v2675_v22  ;;  %v2687_v50 = vand.u32 4294901760, %v2686_v41 }
 0x654   :  { %17071 = vmatprep.subr.bf16.mxu0 %v20041_v0 }
 0x655   :  { %20125 = vst [vmem:[#allocation23_spill] sm:$0xff] %v18785_v46  ;;  %v2688_v53 = vsub.f32 %v2686_v41, %v2687_v50 }
 0x657   :  { %17073 = vmatpush3.bf16.msra.mxu0 %v18777_v51  ;;  %v2689_v54 = vand.u32 4294901760, %v2688_v53 }
 0x658   :  { %17074 = vmatprep.subr.bf16.mxu0 %v20041_v0 }
 0x659   :  { %v18106_v49 = vpop.eup %18105 }
 0x65a   :  { %2537 = vrot.lane.b32.xlu1 %v18106_v49, %s18203_s17 }
 0x65b   :  { %17076 = vmatpush3.bf16.msra.mxu0 %v18785_v46 }
 0x65c   :  { %17077 = vmatprep.subr.bf16.mxu0 %v20041_v0 }
 0x65e   :  { %2545 = vrot.lane.b32.xlu1 %v18311_v10, %s18204_s8  ;;  %v78_v10 = vld [vmem:[%s20026_s11 + $0x38] sm:$0xff] }
 0x65f   :  { %v2581_v58 = vand.u32 4294901760, %v78_v10 }
 0x661   :  { %v2693_v49 = vsub.f32 %v78_v10, %v2581_v58  ;;  %v18800_v48 = vpack.c.bf16 %v2581_v58, %v2578_v15 }
 0x663   :  { %v2694_v52 = vand.u32 4294901760, %v2693_v49  ;;  %17067 = vmatpush3.bf16.msra.mxu1 %v18800_v48  ;;  %v18806_v10 = vpack.c.bf16 %v2693_v49, %v2686_v41  ;;  %v18822_v41 = vpack.c.bf16 %v18737_v9, %v18733_v27 }
 0x664   :  { %17128 = vmatprep.subr.bf16.mxu1 %v20041_v0 }
 0x665   :  { %v2695_v22 = vsub.f32 %v2693_v49, %v2694_v52  ;;  %20127 = vst [vmem:[#allocation25_spill] sm:$0xff] %v18806_v10  ;;  %v18808_v53 = vpack.c.bf16 %v2694_v52, %v2687_v50  ;;  %20130 = vst [vmem:[#allocation28_spill] sm:$0xff] %v18822_v41  ;;  %v18830_v52 = vpack.c.bf16 %v18744_v29, %v18739_v18 }
 0x667   :  { %v2696_v56 = vand.u32 4294901760, %v2695_v22  ;;  %20128 = vst [vmem:[#allocation26_spill] sm:$0xff] %v18808_v53  ;;  %20131 = vst [vmem:[#allocation29_spill] sm:$0xff] %v18830_v52 }
 0x669   :  { %v18796_v20 = vpack.c.bf16 %v2696_v56, %v2689_v54  ;;  %v18817_v54 = vpack.c.bf16 %v18731_v7, %v18729_v6 }
 0x66b   :  { %20126 = vst [vmem:[#allocation24_spill] sm:$0xff] %v18796_v20  ;;  %17079 = vmatpush3.bf16.msra.mxu0 %v18796_v20  ;;  %20129 = vst [vmem:[#allocation27_spill] sm:$0xff] %v18817_v54 }
 0x66c   :  { %17080 = vmatprep.subr.bf16.mxu0 %v20041_v0 }
 0x6cc   :  { %v2538_v23 = vpop.permute.xlu1 %2537 }
 0x6cd   :  { %v2540_v24 = vmul.f32 %v18701_v26, %v2538_v23 }
 0x6cf   :  { %2542 = vrot.lane.b32.xlu0 %v2540_v24, %s18204_s8 }
 0x6d0   :  { %v2546_v56 = vpop.permute.xlu1 %2545 }
 0x741   :  { %v18810_v22 = vpop.permute.xlu0 %2542 }
 0x742   :  { %v2548_v15 = vsel %vm89_vm1, %v18810_v22, %v2546_v56  ;;  %v20132_v56 = vand.u32 4294901760, %v18729_v6  ;;  %v20138_v6 = vand.u32 4294901760, %v18739_v18  ;;  %v18894_v18 = vld [vmem:[%s20027_s12] ss:$0 sm:$0xff] }
 0x743   :  { %v2557_v58 = vsel %vm2555_vm5, %v2548_v15, 0  ;;  %v20133_v15 = vand.u32 4294901760, %v18731_v7  ;;  %v20139_v7 = vand.u32 4294901760, %v18744_v29  ;;  %20141 = vst [vmem:[#allocation33_spill] sm:$0xff] %v18894_v18 }
 0x744   :  { %v2632_v26 = vand.u32 4294901760, %v2557_v58 }
 0x746   :  { %v2633_v23 = vsub.f32 %v2557_v58, %v2632_v26  ;;  %15382 = vmatmul.mubr.f32.vlgmr.msra.gmra.mrb[14].mxu0 %v2632_v26  ;;  %v18852_v58 = vpack.c.bf16 %v20133_v15, %v20132_v56 }
 0x747   :  { %17082 = vmatpush3.bf16.msra.mxu0 %v18817_v54  ;;  %15400 = vmatprep.mubr.msk.f32.mxu0 %vm18199_vm0, %v20039_v4 }
 0x748   :  { %v2634_v49 = vand.u32 4294901760, %v2633_v23  ;;  %17083 = vmatprep.subr.bf16.mxu0 %v20041_v0  ;;  %20134 = vst [vmem:[#allocation30_spill] sm:$0xff] %v18852_v58 }
 0x74a   :  { %v2635_v50 = vsub.f32 %v2633_v23, %v2634_v49 }
 0x74b   :  { %17085 = vmatpush3.bf16.msra.mxu0 %v18822_v41 }
 0x74c   :  { %17086 = vmatprep.subr.bf16.mxu0 %v20041_v0  ;;  %v2636_v24 = vand.u32 4294901760, %v2635_v50  ;;  %v20136_v50 = vand.u32 4294901760, %v18737_v9 }
 0x74e   :  { %15363 = vmatmul.mubr.f32.vlgmr.msra.gmra.mrb[28].mxu1 %v2636_v24 }
 0x74f   :  { %17088 = vmatpush3.bf16.msra.mxu0 %v18830_v52  ;;  %15468 = vmatprep.mubr.msk.f32.mxu1 %vm18199_vm0, %v20039_v4 }
 0x750   :  { %17089 = vmatprep.subr.bf16.mxu0 %v20041_v0 }
 0x753   :  { %17091 = vmatpush3.bf16.msra.mxu0 %v18806_v10 }
 0x754   :  { %17092 = vmatprep.subr.bf16.mxu0 %v20041_v0 }
 0x756   :  { %15401 = vmatmul.mubr.f32.vlgmr.msra.gmra.mrb[14].mxu0 %v2633_v23  ;;  %v20135_v23 = vand.u32 4294901760, %v18733_v27 }
 0x757   :  { %17094 = vmatpush3.bf16.msra.mxu0 %v18727_v5  ;;  %15419 = vmatprep.mubr.msk.f32.mxu0 %vm18199_vm0, %v20039_v4 }
 0x758   :  { %17095 = vmatprep.subr.bf16.mxu0 %v20041_v0  ;;  %v18860_v24 = vpack.c.bf16 %v20136_v50, %v20135_v23  ;;  %v88_v50 = vld [vmem:[%s20025_s5 + $0x2] sm:$0x3] }
 0x75a   :  { %20137 = vst [vmem:[#allocation31_spill] sm:$0xff] %v18860_v24 }
 0x75b   :  { %17097 = vmatpush3.bf16.msra.mxu0 %v18735_v28 }
 0x75c   :  { %17098 = vmatprep.subr.bf16.mxu0 %v20041_v0 }
 0x75f   :  { %17100 = vmatpush3.bf16.msra.mxu0 %v18763_v3 }
 0x760   :  { %17101 = vmatprep.subr.bf16.mxu0 %v20041_v0 }
 0x763   :  { %17103 = vmatpush3.bf16.msra.mxu0 %v18800_v48 }
 0x764   :  { %17104 = vmatprep.subr.bf16.mxu0 %v20041_v0 }
 0x766   :  { %15420 = vmatmul.mubr.f32.vlgmr.msra.gmra.mrb[14].mxu0 %v2634_v49  ;;  %v18870_v49 = vpack.c.bf16 %v20139_v7, %v20138_v6 }
 0x767   :  { %17106 = vmatpush3.bf16.msra.mxu0 %v18852_v58  ;;  %15438 = vmatprep.mubr.msk.f32.mxu0 %vm18199_vm0, %v20039_v4 }
 0x768   :  { %17107 = vmatprep.subr.bf16.mxu0 %v20041_v0  ;;  %20140 = vst [vmem:[#allocation32_spill] sm:$0xff] %v18870_v49 }
 0x76b   :  { %17109 = vmatpush3.bf16.msra.mxu0 %v18860_v24 }
 0x76c   :  { %17110 = vmatprep.subr.bf16.mxu0 %v20041_v0 }
 0x76f   :  { %17112 = vmatpush3.bf16.msra.mxu0 %v18870_v49 }
 0x770   :  { %17113 = vmatprep.subr.bf16.mxu0 %v20041_v0 }
 0x773   :  { %17115 = vmatpush3.bf16.msra.mxu0 %v18808_v53  ;;  %v20143_v53 = vmov 0.0|0.0  }
 0x774   :  { %17116 = vmatprep.subr.bf16.mxu0 %v20041_v0 }
 0x776   :  { %15439 = vmatmul.mubr.f32.vlgmr.msra.gmra.mrb[14].mxu0 %v2632_v26 }
 0x777   :  { %17118 = vmatpush3.bf16.msra.mxu0 %v18727_v5  ;;  %15457 = vmatprep.mubr.msk.f32.mxu0 %vm18199_vm0, %v20039_v4 }
 0x778   :  { %17119 = vmatprep.subr.bf16.mxu0 %v20041_v0 }
 0x77b   :  { %17121 = vmatpush3.bf16.msra.mxu0 %v18735_v28 }
 0x77c   :  { %17122 = vmatprep.subr.bf16.mxu0 %v20041_v0 }
 0x77f   :  { %17124 = vmatpush3.bf16.msra.mxu0 %v18763_v3 }
 0x780   :  { %17125 = vmatprep.subr.bf16.mxu0 %v20041_v0 }
 0x783   :  { %17127 = vmatpush3.bf16.msra.mxu0 %v18800_v48 }
 0x784   :  { %17200 = vmatprep.subr.bf16.mxu0 %v20041_v0 }
 0x786   :  { %15458 = vmatmul.mubr.f32.vlgmr.msra.gmra.mrb[14].mxu0 %v2632_v26 }
 0x787   :  { %17202 = vmatpush3.bf16.msra.mxu0 %v18378_v61  ;;  %15596 = vmatprep.mubr.msk.f32.mxu0 %vm18199_vm0, %v20039_v4 }
 0x788   :  { %17203 = vmatprep.subr.bf16.mxu0 %v20041_v0 }
 0x821   :  { %v2638_v27 = vpop.f32.mrb[28].mxu1 }
 0x822   :  { %v15364_v9 = vpop.f32.mrb[29].mxu1  ;;  %v2639_v29 = vadd.f32 %v18894_v18, %v2638_v27 }
 0x859   :  { %v3092_v56 = vpop.f32.mrb[14].mxu0 }
 0x85a   :  { %v17922_v15 = vadd.f32 %v3092_v56, %v2639_v29  ;;  %v15459_v23 = vpop.f32.mrb[15].mxu0 }
 0x85c   :  { %18107 = vtanh.f32 %v17922_v15  ;;  %v14216_v6 = vmul.f32 -1.442695, %v17922_v15  ;;  %v80_v15 = vld [vmem:[%s20028_s13] sm:$0xff] }
 0x85e   :  { %18109 = vpow2.f32 %v14216_v6  ;;  %v3136_v6 = vand.u32 4294901760, %v80_v15 }
 0x866   :  { %v18108_v26 = vpop.eup %18107 }
 0x867   :  { %3109 = vrot.lane.b32.xlu1 %v18108_v26, %s18203_s17 }
 0x868   :  { %v18110_v7 = vpop.eup %18109 }
 0x869   :  { %v3099_v9 = vadd.f32 1.0, %v18110_v7 }
 0x86b   :  { %3104 = vrot.lane.b32.xlu1 %v88_v50, %s18204_s8  ;;  %18111 = vrcp.f32 %v3099_v9  ;;  %v81_v50 = vld [vmem:[%s20028_s13 + $0x8] sm:$0xff]  ;;  %v3216_v9 = vsub.f32 %v80_v15, %v3136_v6 }
 0x875   :  { %v18112_v4 = vpop.eup %18111 }
 0x8d9   :  { %v3110_v27 = vpop.permute.xlu1 %3109 }
 0x8da   :  { %v3112_v0 = vmul.f32 %v18112_v4, %v3110_v27 }
 0x8dc   :  { %3114 = vrot.lane.b32.xlu1 %v3112_v0, %s18204_s8  ;;  %v3139_v0 = vand.u32 4294901760, %v81_v50 }
 0x8dd   :  { %v3105_v29 = vpop.permute.xlu1 %3104 }
 0x8de   :  { %v3107_v56 = vmul.f32 %v18112_v4, %v3105_v29  ;;  %v18913_v7 = vpack.c.bf16 %v3139_v0, %v3136_v6  ;;  %v3223_v27 = vsub.f32 %v81_v50, %v3139_v0  ;;  %v82_v29 = vld [vmem:[%s20028_s13 + $0x10] sm:$0xff] }
 0x8e0   :  { %17130 = vmatpush3.bf16.msra.mxu1 %v18913_v7  ;;  %v3224_v18 = vand.u32 4294901760, %v3223_v27 }
 0x8e1   :  { %17131 = vmatprep.subr.bf16.mxu1 %v20143_v53 }
 0x8e2   :  { %v3225_v50 = vsub.f32 %v3223_v27, %v3224_v18 }
 0x8e4   :  { %v3226_v58 = vand.u32 4294901760, %v3225_v50 }
 0x94e   :  { %v3115_v23 = vpop.permute.xlu1 %3114 }
 0x94f   :  { %v18903_v26 = vadd.f32 %v3115_v23, %v3107_v56  ;;  %v3142_v56 = vand.u32 4294901760, %v82_v29 }
 0x951   :  { %20142 = vst [vmem:[#allocation34_spill] sm:$0xff] %v18903_v26  ;;  %18113 = vtanh.f32 %v18903_v26  ;;  %v3217_v26 = vand.u32 4294901760, %v3216_v9  ;;  %v3230_v6 = vsub.f32 %v82_v29, %v3142_v56 }
 0x953   :  { %v3218_v15 = vsub.f32 %v3216_v9, %v3217_v26  ;;  %v3231_v10 = vand.u32 4294901760, %v3230_v6 }
 0x955   :  { %v3219_v24 = vand.u32 4294901760, %v3218_v15  ;;  %v3232_v20 = vsub.f32 %v3230_v6, %v3231_v10 }
 0x957   :  { %v18927_v41 = vpack.c.bf16 %v3226_v58, %v3219_v24  ;;  %v3233_v57 = vand.u32 4294901760, %v3232_v20 }
 0x95b   :  { %v18114_v2 = vpop.eup %18113 }
 0x95c   :  { %3120 = vrot.lane.b32.xlu1 %v18114_v2, %s18203_s17  ;;  %v83_v2 = vld [vmem:[%s20028_s13 + $0x18] sm:$0xff] }
 0x95d   :  { %v3145_v23 = vand.u32 4294901760, %v83_v2 }
 0x95f   :  { %v18923_v49 = vpack.c.bf16 %v3145_v23, %v3142_v56  ;;  %v3237_v0 = vsub.f32 %v83_v2, %v3145_v23  ;;  %v18935_v2 = vpack.c.bf16 %v3223_v27, %v3216_v9  ;;  %v18939_v23 = vpack.c.bf16 %v3224_v18, %v3217_v26  ;;  %v19028_v9 = vld [vmem:[%s20017_s2] sm:$0x3] }
 0x961   :  { %17133 = vmatpush3.bf16.msra.mxu1 %v18923_v49  ;;  %v3238_v52 = vand.u32 4294901760, %v3237_v0  ;;  %v18937_v56 = vpack.c.bf16 %v3237_v0, %v3230_v6 }
 0x962   :  { %17134 = vmatprep.subr.bf16.mxu1 %v20143_v53 }
 0x963   :  { %v3239_v46 = vsub.f32 %v3237_v0, %v3238_v52  ;;  %v18941_v58 = vpack.c.bf16 %v3238_v52, %v3231_v10 }
 0x965   :  { %v3240_v62 = vand.u32 4294901760, %v3239_v46 }
 0x967   :  { %v18933_v29 = vpack.c.bf16 %v3240_v62, %v3233_v57  ;;  %v20144_v62 = vmov 0.0  }
 0x9ce   :  { %v3121_v54 = vpop.permute.xlu1 %3120 }
 0x9cf   :  { %v18929_v51 = vmul.f32 %v18112_v4, %v3121_v54 }
 0x9d1   :  { %3131 = vrot.lane.b32.xlu0 %v18929_v51, %s18204_s8 }
 0xa43   :  { %v3132_v24 = vpop.permute.xlu0 %3131 }
 0xa44   :  { %v3133_v15 = vsel %vm89_vm1, %v3132_v24, 0 }
 0xa45   :  { %v18944_v4 = vand.u32 4294901760, %v3133_v15 }
 0xa47   :  { %v3205_v20 = vsub.f32 %v3133_v15, %v18944_v4 }
 0xa49   :  { %v3206_v46 = vand.u32 4294901760, %v3205_v20 }
 0xa4b   :  { %v3207_v54 = vsub.f32 %v3205_v20, %v3206_v46 }
 0xa4d   :  { %v3208_v50 = vand.u32 4294901760, %v3207_v54 }
 0xa4f   :  { %15469 = vmatmul.mubr.f32.vlgmr.msra.gmra.mrb[30].mxu1 %v3208_v50 }
 0xa50   :  { %17136 = vmatpush3.bf16.msra.mxu1 %v18927_v41  ;;  %15479 = vmatprep.mubr.msk.f32.mxu1 %vm18199_vm0, %v20144_v62 }
 0xa51   :  { %17137 = vmatprep.subr.bf16.mxu1 %v20143_v53 }
 0xa54   :  { %17139 = vmatpush3.bf16.msra.mxu1 %v18933_v29 }
 0xa55   :  { %17140 = vmatprep.subr.bf16.mxu1 %v20143_v53 }
 0xa57   :  { %15480 = vmatmul.mubr.f32.vlgmr.msra.gmra.mrb[30].mxu1 %v18944_v4 }
 0xa58   :  { %17142 = vmatpush3.bf16.msra.mxu1 %v18935_v2  ;;  %15490 = vmatprep.mubr.msk.f32.mxu1 %vm18199_vm0, %v20144_v62 }
 0xa59   :  { %17143 = vmatprep.subr.bf16.mxu1 %v20143_v53 }
 0xa5c   :  { %17145 = vmatpush3.bf16.msra.mxu1 %v18937_v56 }
 0xa5d   :  { %17146 = vmatprep.subr.bf16.mxu1 %v20143_v53 }
 0xa5f   :  { %15491 = vmatmul.mubr.f32.vlgmr.msra.gmra.mrb[30].mxu1 %v3205_v20 }
 0xa60   :  { %17148 = vmatpush3.bf16.msra.mxu1 %v18913_v7  ;;  %15501 = vmatprep.mubr.msk.f32.mxu1 %vm18199_vm0, %v20144_v62 }
 0xa61   :  { %17149 = vmatprep.subr.bf16.mxu1 %v20143_v53 }
 0xa64   :  { %17151 = vmatpush3.bf16.msra.mxu1 %v18923_v49 }
 0xa65   :  { %17152 = vmatprep.subr.bf16.mxu1 %v20143_v53 }
 0xa67   :  { %15502 = vmatmul.mubr.f32.vlgmr.msra.gmra.mrb[30].mxu1 %v3206_v46 }
 0xa68   :  { %17154 = vmatpush3.bf16.msra.mxu1 %v18939_v23  ;;  %15512 = vmatprep.mubr.msk.f32.mxu1 %vm18199_vm0, %v20144_v62 }
 0xa69   :  { %17155 = vmatprep.subr.bf16.mxu1 %v20143_v53 }
 0xa6c   :  { %17157 = vmatpush3.bf16.msra.mxu1 %v18941_v58 }
 0xa6d   :  { %17158 = vmatprep.subr.bf16.mxu1 %v20143_v53 }
 0xa6f   :  { %15513 = vmatmul.mubr.f32.vlgmr.msra.gmra.mrb[30].mxu1 %v18944_v4 }
 0xa70   :  { %17160 = vmatpush3.bf16.msra.mxu1 %v18913_v7  ;;  %15523 = vmatprep.mubr.msk.f32.mxu1 %vm18199_vm0, %v20144_v62 }
 0xa71   :  { %17161 = vmatprep.subr.bf16.mxu1 %v20143_v53 }
 0xa74   :  { %17163 = vmatpush3.bf16.msra.mxu1 %v18923_v49 }
 0xa75   :  { %17164 = vmatprep.subr.bf16.mxu1 %v20143_v53 }
 0xa77   :  { %15524 = vmatmul.mubr.f32.vlgmr.msra.gmra.mrb[30].mxu1 %v18944_v4 }
 0xa78   :  { %17166 = vmatpush3.bf16.msra.mxu1 %v18313_v11  ;;  %15534 = vmatprep.mubr.msk.f32.mxu1 %vm18199_vm0, %v20144_v62 }
 0xa79   :  { %17167 = vmatprep.subr.bf16.mxu1 %v20143_v53 }
 0xa7c   :  { %17169 = vmatpush3.bf16.msra.mxu1 %v18318_v21 }
 0xa7d   :  { %17170 = vmatprep.subr.bf16.mxu1 %v20143_v53 }
 0xa7f   :  { %15535 = vmatmul.mubr.f32.vlgmr.msra.gmra.mrb[32].mxu1 %v3208_v50 }
 0xa80   :  { %17172 = vmatpush3.bf16.msra.mxu1 %v18323_v33  ;;  %15545 = vmatprep.mubr.msk.f32.mxu1 %vm18199_vm0, %v20144_v62 }
 0xa81   :  { %17173 = vmatprep.subr.bf16.mxu1 %v20143_v53 }
 0xa84   :  { %17175 = vmatpush3.bf16.msra.mxu1 %v18326_v35 }
 0xa85   :  { %17176 = vmatprep.subr.bf16.mxu1 %v20143_v53 }
 0xa87   :  { %15546 = vmatmul.mubr.f32.vlgmr.msra.gmra.mrb[32].mxu1 %v18944_v4 }
 0xa88   :  { %17178 = vmatpush3.bf16.msra.mxu1 %v18332_v37  ;;  %15556 = vmatprep.mubr.msk.f32.mxu1 %vm18199_vm0, %v20144_v62 }
 0xa89   :  { %17179 = vmatprep.subr.bf16.mxu1 %v20143_v53 }
 0xa8c   :  { %17181 = vmatpush3.bf16.msra.mxu1 %v18336_v38 }
 0xa8d   :  { %17182 = vmatprep.subr.bf16.mxu1 %v20143_v53 }
 0xa8f   :  { %15557 = vmatmul.mubr.f32.vlgmr.msra.gmra.mrb[32].mxu1 %v3205_v20 }
 0xa90   :  { %17184 = vmatpush3.bf16.msra.mxu1 %v18313_v11  ;;  %15567 = vmatprep.mubr.msk.f32.mxu1 %vm18199_vm0, %v20144_v62 }
 0xa91   :  { %17185 = vmatprep.subr.bf16.mxu1 %v20143_v53 }
 0xa94   :  { %17187 = vmatpush3.bf16.msra.mxu1 %v18318_v21 }
 0xa95   :  { %17188 = vmatprep.subr.bf16.mxu1 %v20143_v53 }
 0xa97   :  { %15568 = vmatmul.mubr.f32.vlgmr.msra.gmra.mrb[32].mxu1 %v3206_v46 }
 0xa98   :  { %17190 = vmatpush3.bf16.msra.mxu1 %v18348_v39  ;;  %15578 = vmatprep.mubr.msk.f32.mxu1 %vm18199_vm0, %v20144_v62 }
 0xa99   :  { %17191 = vmatprep.subr.bf16.mxu1 %v20143_v53 }
 0xa9c   :  { %17193 = vmatpush3.bf16.msra.mxu1 %v18352_v40 }
 0xa9d   :  { %17194 = vmatprep.subr.bf16.mxu1 %v20143_v53 }
 0xa9f   :  { %15579 = vmatmul.mubr.f32.vlgmr.msra.gmra.mrb[32].mxu1 %v18944_v4 }
 0xaa0   :  { %17196 = vmatpush3.bf16.msra.mxu1 %v18313_v11  ;;  %15589 = vmatprep.mubr.msk.f32.mxu1 %vm18199_vm0, %v20144_v62 }
 0xaa1   :  { %17197 = vmatprep.subr.bf16.mxu1 %v20143_v53 }
 0xaa4   :  { %17199 = vmatpush3.bf16.msra.mxu1 %v18318_v21 }
 0xaa5   :  { %17218 = vmatprep.subr.bf16.mxu1 %v20143_v53 }
 0xaa7   :  { %15590 = vmatmul.mubr.f32.vlgmr.msra.gmra.mrb[32].mxu1 %v18944_v4 }
 0xaa8   :  { %17220 = vmatpush3.bf16.msra.mxu1 %v18442_v55  ;;  %15638 = vmatprep.mubr.msk.f32.mxu1 %vm18199_vm0, %v20144_v62 }
 0xaa9   :  { %17221 = vmatprep.subr.bf16.mxu1 %v20143_v53 }
 0xb4a   :  { %v19023_v57 = vpop.f32.mrb[30].mxu1 }
 0xb4b   :  { %20145 = vst [vmem:[#allocation35_spill] sm:$0xff] %v19023_v57  ;;  %v15525_v10 = vpop.f32.mrb[31].mxu1 }
 0xb4c   :  { %v4610_v10 = vld [vmem:[%s20022_s0 + $0x2] sm:$0x3] }
 0xb7a   :  { %v4121_v52 = vpop.f32.mrb[32].mxu1 }
 0xb7b   :  { %4127 = vperm.xlu1 %18094, %v4121_v52   ;;  %v15591_v18 = vpop.f32.mrb[33].mxu1  ;;  %v4612_v52 = vsel %vm603_vm4, %v4610_v10, 0 }
 0xb7c   :  { %v4681_v18 = vand.u32 4294901760, %v4612_v52 }
 0xbfa   :  { %v4128_v26 = vpop.permute.xlu1 %4127 }
 0xbfb   :  { %v4130_v27 = vadd.f32 %v19028_v9, %v4128_v26  ;;  %v4682_v26 = vsub.f32 %v4612_v52, %v4681_v18 }
 0xbfd   :  { %v4131_v6 = vsel %vm584_vm2, %v4130_v27, -inf }
 0xbfe   :  { %4132 = vmax.xlane.f32.xlu0 %v4131_v6 }
 0xc8b   :  { %v4133_v0 = vpop.xlane.xlu0 %4132 }
 0xc8c   :  { %v4134_v24 = vsub.f32 %v4130_v27, %v4133_v0  ;;  %v4683_v27 = vand.u32 4294901760, %v4682_v26 }
 0xc8e   :  { %v4135_v15 = vmul.f32 1.442695, %v4134_v24  ;;  %v4684_v6 = vsub.f32 %v4682_v26, %v4683_v27 }
 0xc90   :  { %18115 = vpow2.f32 %v4135_v15  ;;  %v4685_v0 = vand.u32 4294901760, %v4684_v6 }
 0xc92   :  { %15639 = vmatmul.mubr.f32.vlgmr.msra.gmra.mrb[34].mxu1 %v4685_v0 }
 0xc93   :  { %17223 = vmatpush3.bf16.msra.mxu1 %v18447_v59  ;;  %15645 = vmatprep.mubr.msk.f32.mxu1 %vm18199_vm0, %v20144_v62 }
 0xc94   :  { %17224 = vmatprep.subr.bf16.mxu1 %v20143_v53 }
 0xc96   :  { %15646 = vmatmul.mubr.f32.vlgmr.msra.gmra.mrb[36].mxu1 %v4681_v18 }
 0xc97   :  { %17226 = vmatpush3.bf16.msra.mxu1 %v18453_v60  ;;  %15652 = vmatprep.mubr.msk.f32.mxu1 %vm18199_vm0, %v20144_v62 }
 0xc98   :  { %17227 = vmatprep.subr.bf16.mxu1 %v20143_v53 }
 0xc9a   :  { %v18116_v4 = vpop.eup %18115  ;;  %15653 = vmatmul.mubr.f32.vlgmr.msra.gmra.mrb[38].mxu1 %v4682_v26 }
 0xc9b   :  { %v4137_v20 = vsel %vm584_vm2, %v18116_v4, 0.0  ;;  %17229 = vmatpush3.bf16.msra.mxu1 %v18442_v55  ;;  %15659 = vmatprep.mubr.msk.f32.mxu1 %vm18199_vm0, %v20144_v62 }
 0xc9c   :  { %4138 = vadd.xlane.f32.xlu1 %v4137_v20  ;;  %17230 = vmatprep.subr.bf16.mxu1 %v20143_v53 }
 0xc9e   :  { %15660 = vmatmul.mubr.f32.vlgmr.msra.gmra.mrb[40].mxu1 %v4683_v27 }
 0xc9f   :  { %17232 = vmatpush3.bf16.msra.mxu1 %v18465_v1  ;;  %15666 = vmatprep.mubr.msk.f32.mxu1 %vm18199_vm0, %v20144_v62 }
 0xca0   :  { %17233 = vmatprep.subr.bf16.mxu1 %v20143_v53 }
 0xca2   :  { %15667 = vmatmul.mubr.f32.vlgmr.msra.gmra.mrb[42].mxu1 %v4681_v18 }
 0xca3   :  { %17235 = vmatpush3.bf16.msra.mxu1 %v18442_v55  ;;  %15673 = vmatprep.mubr.msk.f32.mxu1 %vm18199_vm0, %v20144_v62 }
 0xca4   :  { %17242 = vmatprep.subr.bf16.mxu1 %v20143_v53 }
 0xca6   :  { %15674 = vmatmul.mubr.f32.vlgmr.msra.gmra.mrb[44].mxu1 %v4681_v18 }
 0xca7   :  { %17244 = vmatpush3.bf16.msra.mxu1 %v18481_v8  ;;  %15695 = vmatprep.mubr.msk.f32.mxu1 %vm18199_vm0, %v20144_v62 }
 0xca8   :  { %17245 = vmatprep.subr.bf16.mxu1 %v20143_v53 }
 0xcab   :  { %17247 = vmatpush3.bf16.msra.mxu1 %v18494_v30 }
 0xcac   :  { %17254 = vmatprep.subr.bf16.mxu1 %v20143_v53 }
 0xd29   :  { %v4139_v46 = vpop.xlane.xlu1 %4138 }
 0xd2a   :  { %18117 = vrcp.f32 %v4139_v46 }
 0xd34   :  { %v18118_v54 = vpop.eup %18117 }
 0xd35   :  { %v19033_v50 = vmul.f32 %v18118_v54, %v18116_v4  ;;  %v19072_v4 = vld [vmem:[%s20020_s3] sm:$0x3] }
 0xd36   :  { %20147 = vst [vmem:[#allocation37_spill] sm:$0xff] %v19072_v4 }
 0xd37   :  { %20146 = vst [vmem:[#allocation36_spill] sm:$0xff] %v19033_v50  ;;  %4143 = vrot.lane.b32.xlu0 %v19033_v50, %s18202_s23 }
 0xd65   :  { %v4687_v27 = vpop.f32.mrb[34].mxu1 }
 0xd66   :  { %v15640_v6 = vpop.f32.mrb[35].mxu1 }
 0xd69   :  { %v4768_v0 = vpop.f32.mrb[36].mxu1 }
 0xda9   :  { %v4144_v24 = vpop.permute.xlu0 %4143 }
 0xdaa   :  { %v4146_v15 = vsel %vm600_vm3, %v19033_v50, %v4144_v24  ;;  %v4769_v24 = vadd.f32 %v4768_v0, %v4687_v27 }
 0xdab   :  { %v4147_v20 = vmul.f32 %v19072_v4, %v4146_v15  ;;  %v15647_v15 = vpop.f32.mrb[37].mxu1 }
 0xdad   :  { %v4149_v46 = vsel %vm603_vm4, %v4147_v20, 0  ;;  %v4844_v20 = vpop.f32.mrb[38].mxu1 }
 0xdae   :  { %v4218_v54 = vand.u32 4294901760, %v4149_v46 }
 0xdb0   :  { %v4219_v10 = vsub.f32 %v4149_v46, %v4218_v54  ;;  %v4845_v46 = vadd.f32 %v4844_v20, %v4769_v24 }
 0xdb2   :  { %v4220_v52 = vand.u32 4294901760, %v4219_v10 }
 0xdb4   :  { %v4221_v18 = vsub.f32 %v4219_v10, %v4220_v52 }
 0xdb6   :  { %v4222_v26 = vand.u32 4294901760, %v4221_v18 }
 0xdb8   :  { %15597 = vmatmul.mubr.f32.vlgmr.msra.gmra.mrb[16].mxu0 %v4222_v26 }
 0xdb9   :  { %17205 = vmatpush3.bf16.msra.mxu0 %v18386_v12  ;;  %15603 = vmatprep.mubr.msk.f32.mxu0 %vm18199_vm0, %v20144_v62 }
 0xdba   :  { %17206 = vmatprep.subr.bf16.mxu0 %v20143_v53 }
 0xdc0   :  { %15604 = vmatmul.mubr.f32.vlgmr.msra.gmra.mrb[16].mxu0 %v4218_v54 }
 0xdc1   :  { %17208 = vmatpush3.bf16.msra.mxu0 %v18388_v13  ;;  %15610 = vmatprep.mubr.msk.f32.mxu0 %vm18199_vm0, %v20144_v62 }
 0xdc2   :  { %17209 = vmatprep.subr.bf16.mxu0 %v20143_v53 }
 0xdc8   :  { %15611 = vmatmul.mubr.f32.vlgmr.msra.gmra.mrb[16].mxu0 %v4219_v10  ;;  %v15654_v10 = vpop.f32.mrb[39].mxu1 }
 0xdc9   :  { %17211 = vmatpush3.bf16.msra.mxu0 %v18378_v61  ;;  %15617 = vmatprep.mubr.msk.f32.mxu0 %vm18199_vm0, %v20144_v62 }
 0xdca   :  { %17212 = vmatprep.subr.bf16.mxu0 %v20143_v53 }
 0xdd0   :  { %15618 = vmatmul.mubr.f32.vlgmr.msra.gmra.mrb[16].mxu0 %v4220_v52 }
 0xdd1   :  { %17214 = vmatpush3.bf16.msra.mxu0 %v18390_v14  ;;  %15624 = vmatprep.mubr.msk.f32.mxu0 %vm18199_vm0, %v20144_v62 }
 0xdd2   :  { %17215 = vmatprep.subr.bf16.mxu0 %v20143_v53 }
 0xdd8   :  { %15625 = vmatmul.mubr.f32.vlgmr.msra.gmra.mrb[16].mxu0 %v4218_v54 }
 0xdd9   :  { %17217 = vmatpush3.bf16.msra.mxu0 %v18378_v61  ;;  %15631 = vmatprep.mubr.msk.f32.mxu0 %vm18199_vm0, %v20144_v62 }
 0xdda   :  { %17236 = vmatprep.subr.bf16.mxu0 %v20143_v53 }
 0xde0   :  { %15632 = vmatmul.mubr.f32.vlgmr.msra.gmra.mrb[16].mxu0 %v4218_v54  ;;  %v4919_v54 = vpop.f32.mrb[40].mxu1 }
 0xde1   :  { %17238 = vmatpush3.bf16.msra.mxu0 %v18398_v19  ;;  %15684 = vmatprep.mubr.msk.f32.mxu0 %vm18199_vm0, %v20144_v62  ;;  %v4920_v52 = vadd.f32 %v4919_v54, %v4845_v46  ;;  %v15661_v18 = vpop.f32.mrb[41].mxu1 }
 0xde2   :  { %17239 = vmatprep.subr.bf16.mxu0 %v20143_v53  ;;  %v4996_v26 = vpop.f32.mrb[42].mxu1 }
 0xde3   :  { %v4997_v50 = vadd.f32 %v4996_v26, %v4920_v52  ;;  %v15668_v57 = vpop.f32.mrb[43].mxu1 }
 0xde4   :  { %v5069_v14 = vpop.f32.mrb[44].mxu1 }
 0xde5   :  { %17241 = vmatpush3.bf16.msra.mxu0 %v18498_v31  ;;  %v19102_v13 = vadd.f32 %v5069_v14, %v4997_v50  ;;  %v15675_v12 = vpop.f32.mrb[45].mxu1 }
 0xde6   :  { %17248 = vmatprep.subr.bf16.mxu0 %v20143_v53  ;;  %v5561_v12 = vsel %vm89_vm1, %v18810_v22, 0 }
 0xeb3   :  { %v4606_v4 = vpop.f32.mrb[16].mxu0 }
 0xeb4   :  { %v5074_v30 = vsel %vm89_vm1, %v4606_v4, 0  ;;  %v15633_v6 = vpop.f32.mrb[17].mxu0 }
 0xeb5   :  { %v5145_v8 = vand.u32 4294901760, %v5074_v30 }
 0xeb7   :  { %v5146_v27 = vsub.f32 %v5074_v30, %v5145_v8  ;;  %15696 = vmatmul.mubr.f32.vlgmr.msra.gmra.mrb[46].mxu1 %v5145_v8  ;;  %v5632_v30 = vand.u32 4294901760, %v5561_v12 }
 0xeb8   :  { %17256 = vmatpush3.bf16.msra.mxu1 %v18398_v19  ;;  %15717 = vmatprep.mubr.msk.f32.mxu1 %vm18199_vm0, %v20144_v62 }
 0xeb9   :  { %v5147_v0 = vand.u32 4294901760, %v5146_v27  ;;  %17257 = vmatprep.subr.bf16.mxu1 %v20143_v53  ;;  %v5633_v22 = vsub.f32 %v5561_v12, %v5632_v30 }
 0xebb   :  { %v5148_v57 = vsub.f32 %v5146_v27, %v5147_v0  ;;  %v5634_v50 = vand.u32 4294901760, %v5633_v22 }
 0xebc   :  { %17259 = vmatpush3.bf16.msra.mxu1 %v18498_v31 }
 0xebd   :  { %v5149_v14 = vand.u32 4294901760, %v5148_v57  ;;  %17266 = vmatprep.subr.bf16.mxu1 %v20143_v53  ;;  %v5635_v4 = vsub.f32 %v5633_v22, %v5634_v50 }
 0xebf   :  { %15718 = vmatmul.mubr.f32.vlgmr.msra.gmra.mrb[48].mxu1 %v5147_v0  ;;  %15685 = vmatmul.mubr.f32.vlgmr.msra.gmra.mrb[18].mxu0 %v5149_v14 }
 0xec0   :  { %17250 = vmatpush3.bf16.msra.mxu0 %v18564_v16  ;;  %17268 = vmatpush3.bf16.msra.mxu1 %v18398_v19 }
 0xec1   :  { %17251 = vmatprep.subr.bf16.mxu0 %v20143_v53  ;;  %17269 = vmatprep.subr.bf16.mxu1 %v20143_v53 }
 0xec2   :  { %15706 = vmatprep.mubr.msk.f32.mxu0 %vm18199_vm0, %v20144_v62  ;;  %15739 = vmatprep.mubr.msk.f32.mxu1 %vm18199_vm0, %v20144_v62 }
 0xec4   :  { %17253 = vmatpush3.bf16.msra.mxu0 %v18502_v32  ;;  %17271 = vmatpush3.bf16.msra.mxu1 %v18498_v31 }
 0xec5   :  { %17260 = vmatprep.subr.bf16.mxu0 %v20143_v53  ;;  %17278 = vmatprep.subr.bf16.mxu1 %v20143_v53 }
 0xec7   :  { %15707 = vmatmul.mubr.f32.vlgmr.msra.gmra.mrb[20].mxu0 %v5146_v27  ;;  %15740 = vmatmul.mubr.f32.vlgmr.msra.gmra.mrb[50].mxu1 %v5145_v8 }
 0xec8   :  { %17262 = vmatpush3.bf16.msra.mxu0 %v18601_v17  ;;  %17280 = vmatpush3.bf16.msra.mxu1 %v18605_v25 }
 0xec9   :  { %17263 = vmatprep.subr.bf16.mxu0 %v20143_v53  ;;  %17281 = vmatprep.subr.bf16.mxu1 %v20143_v53 }
 0xeca   :  { %15728 = vmatprep.mubr.msk.f32.mxu0 %vm18199_vm0, %v20144_v62  ;;  %15761 = vmatprep.mubr.msk.f32.mxu1 %vm18199_vm0, %v20144_v62 }
 0xecc   :  { %17265 = vmatpush3.bf16.msra.mxu0 %v18504_v34  ;;  %17283 = vmatpush3.bf16.msra.mxu1 %v18614_v63 }
 0xecd   :  { %17272 = vmatprep.subr.bf16.mxu0 %v20143_v53  ;;  %17290 = vmatprep.subr.bf16.mxu1 %v20143_v53 }
 0xecf   :  { %15729 = vmatmul.mubr.f32.vlgmr.msra.gmra.mrb[22].mxu0 %v5145_v8  ;;  %15762 = vmatmul.mubr.f32.vlgmr.msra.gmra.mrb[52].mxu1 %v5632_v30  ;;  %v5636_v8 = vand.u32 4294901760, %v5635_v4 }
 0xed0   :  { %17274 = vmatpush3.bf16.msra.mxu0 %v18624_v47  ;;  %17292 = vmatpush3.bf16.msra.mxu1 %v18624_v47 }
 0xed1   :  { %17275 = vmatprep.subr.bf16.mxu0 %v20143_v53  ;;  %17293 = vmatprep.subr.bf16.mxu1 %v20143_v53 }
 0xed2   :  { %15750 = vmatprep.mubr.msk.f32.mxu0 %vm18199_vm0, %v20144_v62  ;;  %15783 = vmatprep.mubr.msk.f32.mxu1 %vm18199_vm0, %v20144_v62 }
 0xed4   :  { %17277 = vmatpush3.bf16.msra.mxu0 %v18635_v36  ;;  %17295 = vmatpush3.bf16.msra.mxu1 %v18635_v36 }
 0xed5   :  { %17284 = vmatprep.subr.bf16.mxu0 %v20143_v53  ;;  %17302 = vmatprep.subr.bf16.mxu1 %v20143_v53 }
 0xed7   :  { %15751 = vmatmul.mubr.f32.vlgmr.msra.gmra.mrb[24].mxu0 %v5636_v8  ;;  %15784 = vmatmul.mubr.f32.vlgmr.msra.gmra.mrb[54].mxu1 %v5634_v50 }
 0xed8   :  { %17286 = vmatpush3.bf16.msra.mxu0 %v18648_v42  ;;  %17304 = vmatpush3.bf16.msra.mxu1 %v18624_v47 }
 0xed9   :  { %17287 = vmatprep.subr.bf16.mxu0 %v20143_v53  ;;  %17305 = vmatprep.subr.bf16.mxu1 %v20143_v53 }
 0xeda   :  { %15772 = vmatprep.mubr.msk.f32.mxu0 %vm18199_vm0, %v20144_v62  ;;  %15805 = vmatprep.mubr.msk.f32.mxu1 %vm18199_vm0, %v20144_v62 }
 0xedc   :  { %17289 = vmatpush3.bf16.msra.mxu0 %v18656_v43  ;;  %17307 = vmatpush3.bf16.msra.mxu1 %v18635_v36 }
 0xedd   :  { %17296 = vmatprep.subr.bf16.mxu0 %v20143_v53  ;;  %17380 = vmatprep.subr.bf16.mxu1 %v20143_v53 }
 0xedf   :  { %15773 = vmatmul.mubr.f32.vlgmr.msra.gmra.mrb[26].mxu0 %v5633_v22  ;;  %15806 = vmatmul.mubr.f32.vlgmr.msra.gmra.mrb[56].mxu1 %v5632_v30 }
 0xee0   :  { %17298 = vmatpush3.bf16.msra.mxu0 %v18670_v44  ;;  %15794 = vmatprep.mubr.msk.f32.mxu0 %vm18199_vm0, %v20144_v62 }
 0xee1   :  { %17299 = vmatprep.subr.bf16.mxu0 %v20143_v53  ;;  %17382 = vmatpush3.bf16.msra.mxu1 %v18913_v7 }
 0xee2   :  { %17383 = vmatprep.subr.bf16.mxu1 %v20143_v53  ;;  %15930 = vmatprep.mubr.msk.f32.mxu1 %vm18199_vm0, %v20144_v62 }
 0xee4   :  { %17301 = vmatpush3.bf16.msra.mxu0 %v18680_v45 }
 0xee5   :  { %17308 = vmatprep.subr.bf16.mxu0 %v20143_v53  ;;  %17385 = vmatpush3.bf16.msra.mxu1 %v18923_v49 }
 0xee6   :  { %17386 = vmatprep.subr.bf16.mxu1 %v20143_v53 }
 0xee7   :  { %15795 = vmatmul.mubr.f32.vlgmr.msra.gmra.mrb[28].mxu0 %v5632_v30 }
 0xee8   :  { %17310 = vmatpush3.bf16.msra.mxu0 %v18727_v5  ;;  %15824 = vmatprep.mubr.msk.f32.mxu0 %vm18199_vm0, %v20144_v62 }
 0xee9   :  { %17311 = vmatprep.subr.bf16.mxu0 %v20143_v53 }
 0xeec   :  { %17313 = vmatpush3.bf16.msra.mxu0 %v18735_v28 }
 0xeed   :  { %17314 = vmatprep.subr.bf16.mxu0 %v20143_v53 }
 0xef0   :  { %17316 = vmatpush3.bf16.msra.mxu0 %v18763_v3 }
 0xef1   :  { %17317 = vmatprep.subr.bf16.mxu0 %v20143_v53 }
 0xef4   :  { %17319 = vmatpush3.bf16.msra.mxu0 %v18800_v48 }
 0xef5   :  { %17320 = vmatprep.subr.bf16.mxu0 %v20143_v53 }
 0xf8a   :  { %v5242_v24 = vpop.f32.mrb[46].mxu1 }
 0xf8b   :  { %v15697_v15 = vpop.f32.mrb[47].mxu1 }
 0xf92   :  { %v5399_v20 = vpop.f32.mrb[48].mxu1  ;;  %v5151_v46 = vpop.f32.mrb[18].mxu0 }
 0xf93   :  { %v5152_v10 = vadd.f32 %v5151_v46, %v19102_v13  ;;  %v15719_v54 = vpop.f32.mrb[49].mxu1  ;;  %v15686_v52 = vpop.f32.mrb[19].mxu0 }
 0xf95   :  { %v5243_v18 = vadd.f32 %v5242_v24, %v5152_v10 }
 0xf9a   :  { %v5322_v26 = vpop.f32.mrb[20].mxu0  ;;  %v5557_v6 = vpop.f32.mrb[50].mxu1 }
 0xf9b   :  { %v5323_v27 = vadd.f32 %v5322_v26, %v5243_v18  ;;  %v15708_v0 = vpop.f32.mrb[21].mxu0  ;;  %v15741_v57 = vpop.f32.mrb[51].mxu1 }
 0xf9d   :  { %v5400_v14 = vadd.f32 %v5399_v20, %v5323_v27 }
 0xfa2   :  { %v5482_v12 = vpop.f32.mrb[22].mxu0  ;;  %v5729_v30 = vpop.f32.mrb[52].mxu1 }
 0xfa3   :  { %v5483_v22 = vadd.f32 %v5482_v12, %v5400_v14  ;;  %v15730_v50 = vpop.f32.mrb[23].mxu0  ;;  %v15763_v4 = vpop.f32.mrb[53].mxu1 }
 0xfa4   :  { %v20148_v4 = vld [vmem:[#allocation20_spill] sm:$0xff] }
 0xfa5   :  { %v5558_v8 = vadd.f32 %v5557_v6, %v5483_v22  ;;  %v19187_v6 = vld [vmem:[%s20024_s10] ss:$0 sm:$0xff] }
 0xfaa   :  { %v5638_v15 = vpop.f32.mrb[24].mxu0  ;;  %v5886_v45 = vpop.f32.mrb[54].mxu1 }
 0xfab   :  { %v5730_v44 = vadd.f32 %v5729_v30, %v5638_v15  ;;  %v15752_v43 = vpop.f32.mrb[25].mxu0  ;;  %v15785_v13 = vpop.f32.mrb[55].mxu1 }
 0xfb2   :  { %v5809_v46 = vpop.f32.mrb[26].mxu0  ;;  %v6044_v54 = vpop.f32.mrb[56].mxu1 }
 0xfb3   :  { %v5810_v24 = vadd.f32 %v5809_v46, %v5730_v44  ;;  %v15774_v10 = vpop.f32.mrb[27].mxu0  ;;  %v15807_v52 = vpop.f32.mrb[57].mxu1 }
 0xfb5   :  { %v5887_v18 = vadd.f32 %v5886_v45, %v5810_v24 }
 0xfba   :  { %v5969_v26 = vpop.f32.mrb[28].mxu0 }
 0xfbb   :  { %v5970_v0 = vadd.f32 %v5969_v26, %v5887_v18  ;;  %v15796_v20 = vpop.f32.mrb[29].mxu0 }
 0xfbd   :  { %v6045_v27 = vadd.f32 %v6044_v54, %v5970_v0 }
 0xfbf   :  { %v6048_v57 = vadd.f32 %v6045_v27, %v5558_v8 }
 0xfc1   :  { %v6049_v14 = vadd.f32 %v19187_v6, %v6048_v57 }
 0xfc3   :  { %18119 = vtanh.f32 %v6049_v14  ;;  %v14218_v44 = vmul.f32 -1.442695, %v6049_v14 }
 0xfc5   :  { %18121 = vpow2.f32 %v14218_v44  ;;  %v20151_v44 = vld [vmem:[#allocation23_spill] sm:$0xff] }
 0xfcd   :  { %v18120_v43 = vpop.eup %18119 }
 0xfce   :  { %6059 = vrot.lane.b32.xlu1 %v18120_v43, %s18203_s17  ;;  %v20149_v43 = vld [vmem:[#allocation21_spill] sm:$0xff] }
 0xfcf   :  { %v18122_v12 = vpop.eup %18121 }
 0xfd0   :  { %v6053_v45 = vadd.f32 1.0, %v18122_v12  ;;  %v20152_v12 = vld [vmem:[#allocation24_spill] sm:$0xff] }
 0xfd2   :  { %18123 = vrcp.f32 %v6053_v45  ;;  %v20153_v45 = vld [vmem:[#allocation27_spill] sm:$0xff] }
 0xfdc   :  { %v18124_v30 = vpop.eup %18123 }
 0xfdd   :  { %v6057_v8 = vmul.f32 %v18124_v30, %v20148_v4  ;;  %v20157_v4 = vld [vmem:[#allocation30_spill] sm:$0xff] }
0x1040   :  { %v6060_v22 = vpop.permute.xlu1 %6059 }
0x1041   :  { %v6062_v50 = vmul.f32 %v18124_v30, %v6060_v22  ;;  %v20155_v22 = vld [vmem:[#allocation29_spill] sm:$0xff] }
0x1043   :  { %6064 = vrot.lane.b32.xlu0 %v6062_v50, %s18204_s8  ;;  %v20156_v50 = vld [vmem:[#allocation25_spill] sm:$0xff] }
0x10b5   :  { %v6065_v15 = vpop.permute.xlu0 %6064 }
0x10b6   :  { %v19193_v13 = vadd.f32 %v6065_v15, %v6057_v8  ;;  %v20158_v8 = vld [vmem:[#allocation31_spill] sm:$0xff]  ;;  %v20159_v15 = vld [vmem:[#allocation32_spill] sm:$0xff] }
0x10b8   :  { %18125 = vtanh.f32 %v19193_v13 }
0x10c2   :  { %v18126_v46 = vpop.eup %18125 }
0x10c3   :  { %6070 = vrot.lane.b32.xlu1 %v18126_v46, %s18203_s17  ;;  %v20160_v46 = vld [vmem:[#allocation26_spill] sm:$0xff] }
0x10c7   :  { %6078 = vrot.lane.b32.xlu1 %v18929_v51, %s18203_s17  ;;  %v20150_v51 = vld [vmem:[#allocation22_spill] sm:$0xff] }
0x1135   :  { %v6071_v54 = vpop.permute.xlu1 %6070 }
0x1136   :  { %v6073_v24 = vmul.f32 %v18124_v30, %v6071_v54  ;;  %v20154_v30 = vld [vmem:[#allocation28_spill] sm:$0xff] }
0x1138   :  { %6075 = vrot.lane.b32.xlu0 %v6073_v24, %s18204_s8  ;;  %v20161_v24 = vld [vmem:[#allocation33_spill] sm:$0xff] }
0x1139   :  { %v6079_v10 = vpop.permute.xlu1 %6078 }
0x11aa   :  { %v19200_v52 = vpop.permute.xlu0 %6075 }
0x11ab   :  { %v6081_v18 = vsel %vm89_vm1, %v19200_v52, %v6079_v10 }
0x11ac   :  { %v6083_v26 = vsel %vm2555_vm5, %v6081_v18, 0 }
0x11ad   :  { %v6158_v0 = vand.u32 4294901760, %v6083_v26 }
0x11af   :  { %v6159_v20 = vsub.f32 %v6083_v26, %v6158_v0 }
0x11b1   :  { %v6160_v27 = vand.u32 4294901760, %v6159_v20 }
0x11b3   :  { %v6161_v57 = vsub.f32 %v6159_v20, %v6160_v27 }
0x11b5   :  { %v6162_v14 = vand.u32 4294901760, %v6161_v57 }
0x11b7   :  { %15825 = vmatmul.mubr.f32.vlgmr.msra.gmra.mrb[30].mxu0 %v6162_v14 }
0x11b8   :  { %17322 = vmatpush3.bf16.msra.mxu0 %v20149_v43  ;;  %15843 = vmatprep.mubr.msk.f32.mxu0 %vm18199_vm0, %v20144_v62 }
0x11b9   :  { %17323 = vmatprep.subr.bf16.mxu0 %v20143_v53 }
0x11bc   :  { %17325 = vmatpush3.bf16.msra.mxu0 %v20150_v51 }
0x11bd   :  { %17326 = vmatprep.subr.bf16.mxu0 %v20143_v53 }
0x11c0   :  { %17328 = vmatpush3.bf16.msra.mxu0 %v20151_v44 }
0x11c1   :  { %17329 = vmatprep.subr.bf16.mxu0 %v20143_v53 }
0x11c4   :  { %17331 = vmatpush3.bf16.msra.mxu0 %v20152_v12 }
0x11c5   :  { %17332 = vmatprep.subr.bf16.mxu0 %v20143_v53 }
0x11c7   :  { %15844 = vmatmul.mubr.f32.vlgmr.msra.gmra.mrb[30].mxu0 %v6158_v0 }
0x11c8   :  { %17334 = vmatpush3.bf16.msra.mxu0 %v20153_v45  ;;  %15862 = vmatprep.mubr.msk.f32.mxu0 %vm18199_vm0, %v20144_v62 }
0x11c9   :  { %17335 = vmatprep.subr.bf16.mxu0 %v20143_v53 }
0x11cc   :  { %17337 = vmatpush3.bf16.msra.mxu0 %v20154_v30 }
0x11cd   :  { %17338 = vmatprep.subr.bf16.mxu0 %v20143_v53 }
0x11d0   :  { %17340 = vmatpush3.bf16.msra.mxu0 %v20155_v22 }
0x11d1   :  { %17341 = vmatprep.subr.bf16.mxu0 %v20143_v53 }
0x11d4   :  { %17343 = vmatpush3.bf16.msra.mxu0 %v20156_v50 }
0x11d5   :  { %17344 = vmatprep.subr.bf16.mxu0 %v20143_v53 }
0x11d7   :  { %15863 = vmatmul.mubr.f32.vlgmr.msra.gmra.mrb[30].mxu0 %v6159_v20 }
0x11d8   :  { %17346 = vmatpush3.bf16.msra.mxu0 %v18727_v5  ;;  %15881 = vmatprep.mubr.msk.f32.mxu0 %vm18199_vm0, %v20144_v62 }
0x11d9   :  { %17347 = vmatprep.subr.bf16.mxu0 %v20143_v53 }
0x11dc   :  { %17349 = vmatpush3.bf16.msra.mxu0 %v18735_v28 }
0x11dd   :  { %17350 = vmatprep.subr.bf16.mxu0 %v20143_v53 }
0x11e0   :  { %17352 = vmatpush3.bf16.msra.mxu0 %v18763_v3 }
0x11e1   :  { %17353 = vmatprep.subr.bf16.mxu0 %v20143_v53 }
0x11e4   :  { %17355 = vmatpush3.bf16.msra.mxu0 %v18800_v48 }
0x11e5   :  { %17356 = vmatprep.subr.bf16.mxu0 %v20143_v53 }
0x11e7   :  { %15882 = vmatmul.mubr.f32.vlgmr.msra.gmra.mrb[30].mxu0 %v6160_v27 }
0x11e8   :  { %17358 = vmatpush3.bf16.msra.mxu0 %v20157_v4  ;;  %15900 = vmatprep.mubr.msk.f32.mxu0 %vm18199_vm0, %v20144_v62 }
0x11e9   :  { %17359 = vmatprep.subr.bf16.mxu0 %v20143_v53 }
0x11ec   :  { %17361 = vmatpush3.bf16.msra.mxu0 %v20158_v8 }
0x11ed   :  { %17362 = vmatprep.subr.bf16.mxu0 %v20143_v53 }
0x11f0   :  { %17364 = vmatpush3.bf16.msra.mxu0 %v20159_v15  ;;  %v20162_v15 = vld [vmem:[#allocation34_spill] sm:$0xff] }
0x11f1   :  { %17365 = vmatprep.subr.bf16.mxu0 %v20143_v53 }
0x11f4   :  { %17367 = vmatpush3.bf16.msra.mxu0 %v20160_v46 }
0x11f5   :  { %17368 = vmatprep.subr.bf16.mxu0 %v20143_v53 }
0x11f7   :  { %15901 = vmatmul.mubr.f32.vlgmr.msra.gmra.mrb[30].mxu0 %v6158_v0 }
0x11f8   :  { %17370 = vmatpush3.bf16.msra.mxu0 %v18727_v5  ;;  %15919 = vmatprep.mubr.msk.f32.mxu0 %vm18199_vm0, %v20144_v62 }
0x11f9   :  { %17371 = vmatprep.subr.bf16.mxu0 %v20143_v53 }
0x11fc   :  { %17373 = vmatpush3.bf16.msra.mxu0 %v18735_v28 }
0x11fd   :  { %17374 = vmatprep.subr.bf16.mxu0 %v20143_v53 }
0x1200   :  { %17376 = vmatpush3.bf16.msra.mxu0 %v18763_v3 }
0x1201   :  { %17377 = vmatprep.subr.bf16.mxu0 %v20143_v53 }
0x1204   :  { %17379 = vmatpush3.bf16.msra.mxu0 %v18800_v48 }
0x1205   :  { %17452 = vmatprep.subr.bf16.mxu0 %v20143_v53 }
0x1207   :  { %15920 = vmatmul.mubr.f32.vlgmr.msra.gmra.mrb[30].mxu0 %v6158_v0 }
0x1208   :  { %17454 = vmatpush3.bf16.msra.mxu0 %v18378_v61  ;;  %16058 = vmatprep.mubr.msk.f32.mxu0 %vm18199_vm0, %v20144_v62 }
0x1209   :  { %17455 = vmatprep.subr.bf16.mxu0 %v20143_v53 }
0x12da   :  { %v6618_v54 = vpop.f32.mrb[30].mxu0 }
0x12db   :  { %v17924_v10 = vadd.f32 %v20161_v24, %v6618_v54  ;;  %v15921_v18 = vpop.f32.mrb[31].mxu0 }
0x12dd   :  { %18127 = vtanh.f32 %v17924_v10  ;;  %v14219_v20 = vmul.f32 -1.442695, %v17924_v10 }
0x12df   :  { %18129 = vpow2.f32 %v14219_v20 }
0x12e7   :  { %v18128_v26 = vpop.eup %18127 }
0x12e8   :  { %6631 = vrot.lane.b32.xlu0 %v18128_v26, %s18203_s17 }
0x12e9   :  { %v18130_v27 = vpop.eup %18129 }
0x12ea   :  { %v6625_v57 = vadd.f32 1.0, %v18130_v27 }
0x12ec   :  { %18131 = vrcp.f32 %v6625_v57 }
0x12f6   :  { %v18132_v0 = vpop.eup %18131 }
0x12f7   :  { %v6629_v8 = vmul.f32 %v18132_v0, %v20162_v15 }
0x135a   :  { %v6632_v14 = vpop.permute.xlu0 %6631 }
0x135b   :  { %v6634_v46 = vmul.f32 %v18132_v0, %v6632_v14 }
0x135d   :  { %6636 = vrot.lane.b32.xlu1 %v6634_v46, %s18204_s8 }
0x13cf   :  { %v6637_v4 = vpop.permute.xlu1 %6636 }
0x13d0   :  { %v19263_v50 = vadd.f32 %v6637_v4, %v6629_v8 }
0x13d2   :  { %18133 = vtanh.f32 %v19263_v50 }
0x13dc   :  { %v18134_v54 = vpop.eup %18133 }
0x13dd   :  { %6642 = vrot.lane.b32.xlu0 %v18134_v54, %s18203_s17 }
0x144f   :  { %v6643_v24 = vpop.permute.xlu0 %6642 }
0x1450   :  { %v19267_v10 = vmul.f32 %v18132_v0, %v6643_v24 }
0x1452   :  { %6647 = vrot.lane.b32.xlu1 %v19267_v10, %s18204_s8 }
0x14c4   :  { %v6648_v18 = vpop.permute.xlu1 %6647 }
0x14c5   :  { %v6649_v26 = vsel %vm89_vm1, %v6648_v18, 0 }
0x14c6   :  { %v19272_v46 = vand.u32 4294901760, %v6649_v26 }
0x14c8   :  { %v6721_v15 = vsub.f32 %v6649_v26, %v19272_v46 }
0x14ca   :  { %v6722_v4 = vand.u32 4294901760, %v6721_v15 }
0x14cc   :  { %v6723_v8 = vsub.f32 %v6721_v15, %v6722_v4 }
0x14ce   :  { %v6724_v20 = vand.u32 4294901760, %v6723_v8 }
0x14d0   :  { %15931 = vmatmul.mubr.f32.vlgmr.msra.gmra.mrb[58].mxu1 %v6724_v20 }
0x14d1   :  { %17388 = vmatpush3.bf16.msra.mxu1 %v18927_v41  ;;  %15941 = vmatprep.mubr.msk.f32.mxu1 %vm18199_vm0, %v20144_v62 }
0x14d2   :  { %17389 = vmatprep.subr.bf16.mxu1 %v20143_v53 }
0x14d5   :  { %17391 = vmatpush3.bf16.msra.mxu1 %v18933_v29 }
0x14d6   :  { %17392 = vmatprep.subr.bf16.mxu1 %v20143_v53 }
0x14d8   :  { %15942 = vmatmul.mubr.f32.vlgmr.msra.gmra.mrb[58].mxu1 %v19272_v46 }
0x14d9   :  { %17394 = vmatpush3.bf16.msra.mxu1 %v18935_v2  ;;  %15952 = vmatprep.mubr.msk.f32.mxu1 %vm18199_vm0, %v20144_v62 }
0x14da   :  { %17395 = vmatprep.subr.bf16.mxu1 %v20143_v53 }
0x14dd   :  { %17397 = vmatpush3.bf16.msra.mxu1 %v18937_v56 }
0x14de   :  { %17398 = vmatprep.subr.bf16.mxu1 %v20143_v53 }
0x14e0   :  { %15953 = vmatmul.mubr.f32.vlgmr.msra.gmra.mrb[58].mxu1 %v6721_v15 }
0x14e1   :  { %17400 = vmatpush3.bf16.msra.mxu1 %v18913_v7  ;;  %15963 = vmatprep.mubr.msk.f32.mxu1 %vm18199_vm0, %v20144_v62 }
0x14e2   :  { %17401 = vmatprep.subr.bf16.mxu1 %v20143_v53 }
0x14e5   :  { %17403 = vmatpush3.bf16.msra.mxu1 %v18923_v49 }
0x14e6   :  { %17404 = vmatprep.subr.bf16.mxu1 %v20143_v53 }
0x14e8   :  { %15964 = vmatmul.mubr.f32.vlgmr.msra.gmra.mrb[58].mxu1 %v6722_v4 }
0x14e9   :  { %17406 = vmatpush3.bf16.msra.mxu1 %v18939_v23  ;;  %15974 = vmatprep.mubr.msk.f32.mxu1 %vm18199_vm0, %v20144_v62 }
0x14ea   :  { %17407 = vmatprep.subr.bf16.mxu1 %v20143_v53 }
0x14ed   :  { %17409 = vmatpush3.bf16.msra.mxu1 %v18941_v58 }
0x14ee   :  { %17410 = vmatprep.subr.bf16.mxu1 %v20143_v53 }
0x14f0   :  { %15975 = vmatmul.mubr.f32.vlgmr.msra.gmra.mrb[58].mxu1 %v19272_v46 }
0x14f1   :  { %17412 = vmatpush3.bf16.msra.mxu1 %v18913_v7  ;;  %15985 = vmatprep.mubr.msk.f32.mxu1 %vm18199_vm0, %v20144_v62 }
0x14f2   :  { %17413 = vmatprep.subr.bf16.mxu1 %v20143_v53 }
0x14f5   :  { %17415 = vmatpush3.bf16.msra.mxu1 %v18923_v49 }
0x14f6   :  { %17416 = vmatprep.subr.bf16.mxu1 %v20143_v53 }
0x14f8   :  { %15986 = vmatmul.mubr.f32.vlgmr.msra.gmra.mrb[58].mxu1 %v19272_v46 }
0x14f9   :  { %17418 = vmatpush3.bf16.msra.mxu1 %v18313_v11  ;;  %15996 = vmatprep.mubr.msk.f32.mxu1 %vm18199_vm0, %v20144_v62 }
0x14fa   :  { %17419 = vmatprep.subr.bf16.mxu1 %v20143_v53 }
0x14fd   :  { %17421 = vmatpush3.bf16.msra.mxu1 %v18318_v21 }
0x14fe   :  { %17422 = vmatprep.subr.bf16.mxu1 %v20143_v53 }
0x1500   :  { %15997 = vmatmul.mubr.f32.vlgmr.msra.gmra.mrb[60].mxu1 %v6724_v20 }
0x1501   :  { %17424 = vmatpush3.bf16.msra.mxu1 %v18323_v33  ;;  %16007 = vmatprep.mubr.msk.f32.mxu1 %vm18199_vm0, %v20144_v62 }
0x1502   :  { %17425 = vmatprep.subr.bf16.mxu1 %v20143_v53 }
0x1505   :  { %17427 = vmatpush3.bf16.msra.mxu1 %v18326_v35 }
0x1506   :  { %17428 = vmatprep.subr.bf16.mxu1 %v20143_v53 }
0x1508   :  { %16008 = vmatmul.mubr.f32.vlgmr.msra.gmra.mrb[60].mxu1 %v19272_v46 }
0x1509   :  { %17430 = vmatpush3.bf16.msra.mxu1 %v18332_v37  ;;  %16018 = vmatprep.mubr.msk.f32.mxu1 %vm18199_vm0, %v20144_v62 }
0x150a   :  { %17431 = vmatprep.subr.bf16.mxu1 %v20143_v53 }
0x150d   :  { %17433 = vmatpush3.bf16.msra.mxu1 %v18336_v38 }
0x150e   :  { %17434 = vmatprep.subr.bf16.mxu1 %v20143_v53 }
0x1510   :  { %16019 = vmatmul.mubr.f32.vlgmr.msra.gmra.mrb[60].mxu1 %v6721_v15 }
0x1511   :  { %17436 = vmatpush3.bf16.msra.mxu1 %v18313_v11  ;;  %16029 = vmatprep.mubr.msk.f32.mxu1 %vm18199_vm0, %v20144_v62 }
0x1512   :  { %17437 = vmatprep.subr.bf16.mxu1 %v20143_v53 }
0x1515   :  { %17439 = vmatpush3.bf16.msra.mxu1 %v18318_v21 }
0x1516   :  { %17440 = vmatprep.subr.bf16.mxu1 %v20143_v53 }
0x1518   :  { %16030 = vmatmul.mubr.f32.vlgmr.msra.gmra.mrb[60].mxu1 %v6722_v4 }
0x1519   :  { %17442 = vmatpush3.bf16.msra.mxu1 %v18348_v39  ;;  %16040 = vmatprep.mubr.msk.f32.mxu1 %vm18199_vm0, %v20144_v62 }
0x151a   :  { %17443 = vmatprep.subr.bf16.mxu1 %v20143_v53 }
0x151d   :  { %17445 = vmatpush3.bf16.msra.mxu1 %v18352_v40 }
0x151e   :  { %17446 = vmatprep.subr.bf16.mxu1 %v20143_v53 }
0x1520   :  { %16041 = vmatmul.mubr.f32.vlgmr.msra.gmra.mrb[60].mxu1 %v19272_v46 }
0x1521   :  { %17448 = vmatpush3.bf16.msra.mxu1 %v18313_v11  ;;  %16051 = vmatprep.mubr.msk.f32.mxu1 %vm18199_vm0, %v20144_v62 }
0x1522   :  { %17449 = vmatprep.subr.bf16.mxu1 %v20143_v53 }
0x1525   :  { %17451 = vmatpush3.bf16.msra.mxu1 %v18318_v21 }
0x1526   :  { %17470 = vmatprep.subr.bf16.mxu1 %v20143_v53 }
0x1528   :  { %16052 = vmatmul.mubr.f32.vlgmr.msra.gmra.mrb[60].mxu1 %v19272_v46 }
0x1529   :  { %17472 = vmatpush3.bf16.msra.mxu1 %v18442_v55  ;;  %16100 = vmatprep.mubr.msk.f32.mxu1 %vm18199_vm0, %v20144_v62 }
0x152a   :  { %17473 = vmatprep.subr.bf16.mxu1 %v20143_v53 }
0x15cb   :  { %v19351_v27 = vpop.f32.mrb[58].mxu1 }
0x15cc   :  { %20163 = vst [vmem:[#allocation20_spill] sm:$0xff] %v19351_v27  ;;  %v15987_v57 = vpop.f32.mrb[59].mxu1 }
0x15fb   :  { %v7635_v0 = vpop.f32.mrb[60].mxu1 }
0x15fc   :  { %7641 = vperm.xlu0 %18093, %v7635_v0   ;;  %v16053_v14 = vpop.f32.mrb[61].mxu1 }
0x167b   :  { %v7642_v54 = vpop.permute.xlu0 %7641 }
0x167c   :  { %v7644_v24 = vadd.f32 %v19028_v9, %v7642_v54  ;;  %v8124_v9 = vld [vmem:[%s20022_s0 + $0x4] sm:$0x3] }
0x167d   :  { %v8126_v0 = vsel %vm603_vm4, %v8124_v9, 0 }
0x167e   :  { %v7645_v18 = vsel %vm584_vm2, %v7644_v24, -inf  ;;  %v8195_v14 = vand.u32 4294901760, %v8126_v0 }
0x167f   :  { %7646 = vmax.xlane.f32.xlu1 %v7645_v18 }
0x1680   :  { %v8196_v54 = vsub.f32 %v8126_v0, %v8195_v14 }
0x170c   :  { %v7647_v26 = vpop.xlane.xlu1 %7646 }
0x170d   :  { %v7648_v46 = vsub.f32 %v7644_v24, %v7647_v26  ;;  %v8197_v24 = vand.u32 4294901760, %v8196_v54 }
0x170f   :  { %v7649_v15 = vmul.f32 1.442695, %v7648_v46  ;;  %v8198_v18 = vsub.f32 %v8196_v54, %v8197_v24  ;;  %v20165_v46 = vld [vmem:[#allocation12_spill] sm:$0xff] }
0x1711   :  { %18135 = vpow2.f32 %v7649_v15  ;;  %v8199_v26 = vand.u32 4294901760, %v8198_v18  ;;  %v20166_v15 = vld [vmem:[#allocation13_spill] sm:$0xff] }
0x1713   :  { %16101 = vmatmul.mubr.f32.vlgmr.msra.gmra.mrb[62].mxu1 %v8199_v26  ;;  %v20168_v26 = vld [vmem:[#allocation5_spill] sm:$0xff] }
0x1714   :  { %17475 = vmatpush3.bf16.msra.mxu1 %v18447_v59  ;;  %16107 = vmatprep.mubr.msk.f32.mxu1 %vm18199_vm0, %v20144_v62 }
0x1715   :  { %17476 = vmatprep.subr.bf16.mxu1 %v20143_v53 }
0x1717   :  { %16108 = vmatmul.mubr.f32.vlgmr.msra.gmra.mrb[64].mxu1 %v8195_v14 }
0x1718   :  { %17478 = vmatpush3.bf16.msra.mxu1 %v18453_v60  ;;  %16114 = vmatprep.mubr.msk.f32.mxu1 %vm18199_vm0, %v20144_v62 }
0x1719   :  { %17479 = vmatprep.subr.bf16.mxu1 %v20143_v53 }
0x171b   :  { %v18136_v4 = vpop.eup %18135  ;;  %16115 = vmatmul.mubr.f32.vlgmr.msra.gmra.mrb[66].mxu1 %v8196_v54 }
0x171c   :  { %v7651_v8 = vsel %vm584_vm2, %v18136_v4, 0.0  ;;  %17481 = vmatpush3.bf16.msra.mxu1 %v18442_v55  ;;  %16121 = vmatprep.mubr.msk.f32.mxu1 %vm18199_vm0, %v20144_v62 }
0x171d   :  { %7652 = vadd.xlane.f32.xlu0 %v7651_v8  ;;  %17482 = vmatprep.subr.bf16.mxu1 %v20143_v53 }
0x171f   :  { %16122 = vmatmul.mubr.f32.vlgmr.msra.gmra.mrb[68].mxu1 %v8197_v24 }
0x1720   :  { %17484 = vmatpush3.bf16.msra.mxu1 %v18465_v1  ;;  %16128 = vmatprep.mubr.msk.f32.mxu1 %vm18199_vm0, %v20144_v62 }
0x1721   :  { %17485 = vmatprep.subr.bf16.mxu1 %v20143_v53 }
0x1723   :  { %16129 = vmatmul.mubr.f32.vlgmr.msra.gmra.mrb[70].mxu1 %v8195_v14 }
0x1724   :  { %17487 = vmatpush3.bf16.msra.mxu1 %v18442_v55  ;;  %16135 = vmatprep.mubr.msk.f32.mxu1 %vm18199_vm0, %v20144_v62 }
0x1725   :  { %17494 = vmatprep.subr.bf16.mxu1 %v20143_v53 }
0x1727   :  { %16136 = vmatmul.mubr.f32.vlgmr.msra.gmra.mrb[72].mxu1 %v8195_v14 }
0x1728   :  { %17496 = vmatpush3.bf16.msra.mxu1 %v20165_v46  ;;  %16157 = vmatprep.mubr.msk.f32.mxu1 %vm18199_vm0, %v20144_v62 }
0x1729   :  { %17497 = vmatprep.subr.bf16.mxu1 %v20143_v53 }
0x172c   :  { %17499 = vmatpush3.bf16.msra.mxu1 %v20166_v15  ;;  %v20169_v15 = vld [vmem:[#allocation6_spill] sm:$0xff] }
0x172d   :  { %17506 = vmatprep.subr.bf16.mxu1 %v20143_v53 }
0x17aa   :  { %v7653_v20 = vpop.xlane.xlu0 %7652 }
0x17ab   :  { %18137 = vrcp.f32 %v7653_v20  ;;  %v20167_v20 = vld [vmem:[#allocation37_spill] sm:$0xff] }
0x17b5   :  { %v18138_v57 = vpop.eup %18137 }
0x17b6   :  { %v19356_v27 = vmul.f32 %v18138_v57, %v18136_v4 }
0x17b8   :  { %20164 = vst [vmem:[#allocation21_spill] sm:$0xff] %v19356_v27  ;;  %7657 = vrot.lane.b32.xlu0 %v19356_v27, %s18202_s23 }
0x182a   :  { %v7658_v4 = vpop.permute.xlu0 %7657 }
0x182b   :  { %v7660_v8 = vsel %vm600_vm3, %v19356_v27, %v7658_v4  ;;  %v20170_v4 = vld [vmem:[#allocation7_spill] sm:$0xff] }
0x182c   :  { %v7661_v57 = vmul.f32 %v20167_v20, %v7660_v8  ;;  %v8201_v8 = vpop.f32.mrb[62].mxu1 }
0x182d   :  { %v16102_v20 = vpop.f32.mrb[63].mxu1 }
0x182e   :  { %v7663_v9 = vsel %vm603_vm4, %v7661_v57, 0  ;;  %v8282_v57 = vpop.f32.mrb[64].mxu1 }
0x182f   :  { %v7732_v0 = vand.u32 4294901760, %v7663_v9 }
0x1831   :  { %v7733_v14 = vsub.f32 %v7663_v9, %v7732_v0  ;;  %v8283_v9 = vadd.f32 %v8282_v57, %v8201_v8  ;;  %v20173_v57 = vld [vmem:[#allocation19_spill] sm:$0xff] }
0x1833   :  { %v7734_v54 = vand.u32 4294901760, %v7733_v14 }
0x1835   :  { %v7735_v24 = vsub.f32 %v7733_v14, %v7734_v54 }
0x1837   :  { %v7736_v18 = vand.u32 4294901760, %v7735_v24 }
0x1839   :  { %16059 = vmatmul.mubr.f32.vlgmr.msra.gmra.mrb[32].mxu0 %v7736_v18 }
0x183a   :  { %17457 = vmatpush3.bf16.msra.mxu0 %v20168_v26  ;;  %16065 = vmatprep.mubr.msk.f32.mxu0 %vm18199_vm0, %v20144_v62 }
0x183b   :  { %17458 = vmatprep.subr.bf16.mxu0 %v20143_v53 }
0x1841   :  { %16066 = vmatmul.mubr.f32.vlgmr.msra.gmra.mrb[32].mxu0 %v7732_v0 }
0x1842   :  { %17460 = vmatpush3.bf16.msra.mxu0 %v20169_v15  ;;  %16072 = vmatprep.mubr.msk.f32.mxu0 %vm18199_vm0, %v20144_v62 }
0x1843   :  { %17461 = vmatprep.subr.bf16.mxu0 %v20143_v53 }
0x1849   :  { %16073 = vmatmul.mubr.f32.vlgmr.msra.gmra.mrb[32].mxu0 %v7733_v14  ;;  %v16109_v14 = vpop.f32.mrb[65].mxu1 }
0x184a   :  { %17463 = vmatpush3.bf16.msra.mxu0 %v18378_v61  ;;  %16079 = vmatprep.mubr.msk.f32.mxu0 %vm18199_vm0, %v20144_v62 }
0x184b   :  { %17464 = vmatprep.subr.bf16.mxu0 %v20143_v53 }
0x1851   :  { %16080 = vmatmul.mubr.f32.vlgmr.msra.gmra.mrb[32].mxu0 %v7734_v54  ;;  %v8358_v54 = vpop.f32.mrb[66].mxu1 }
0x1852   :  { %17466 = vmatpush3.bf16.msra.mxu0 %v20170_v4  ;;  %16086 = vmatprep.mubr.msk.f32.mxu0 %vm18199_vm0, %v20144_v62  ;;  %v8359_v24 = vadd.f32 %v8358_v54, %v8283_v9  ;;  %v16116_v18 = vpop.f32.mrb[67].mxu1 }
0x1853   :  { %17467 = vmatprep.subr.bf16.mxu0 %v20143_v53 }
0x1859   :  { %16087 = vmatmul.mubr.f32.vlgmr.msra.gmra.mrb[32].mxu0 %v7732_v0 }
0x185a   :  { %17469 = vmatpush3.bf16.msra.mxu0 %v18378_v61  ;;  %16093 = vmatprep.mubr.msk.f32.mxu0 %vm18199_vm0, %v20144_v62 }
0x185b   :  { %17488 = vmatprep.subr.bf16.mxu0 %v20143_v53 }
0x1861   :  { %16094 = vmatmul.mubr.f32.vlgmr.msra.gmra.mrb[32].mxu0 %v7732_v0  ;;  %v8433_v0 = vpop.f32.mrb[68].mxu1 }
0x1862   :  { %17490 = vmatpush3.bf16.msra.mxu0 %v18398_v19  ;;  %16146 = vmatprep.mubr.msk.f32.mxu0 %vm18199_vm0, %v20144_v62  ;;  %v8434_v27 = vadd.f32 %v8433_v0, %v8359_v24  ;;  %v16123_v4 = vpop.f32.mrb[69].mxu1 }
0x1863   :  { %17491 = vmatprep.subr.bf16.mxu0 %v20143_v53  ;;  %v8510_v15 = vpop.f32.mrb[70].mxu1 }
0x1864   :  { %v8511_v26 = vadd.f32 %v8510_v15, %v8434_v27  ;;  %v16130_v46 = vpop.f32.mrb[71].mxu1  ;;  %v20171_v15 = vld [vmem:[#allocation17_spill] sm:$0xff] }
0x1865   :  { %v8583_v1 = vpop.f32.mrb[72].mxu1 }
0x1866   :  { %17493 = vmatpush3.bf16.msra.mxu0 %v18498_v31  ;;  %v19420_v60 = vadd.f32 %v8583_v1, %v8511_v26  ;;  %v16137_v59 = vpop.f32.mrb[73].mxu1  ;;  %v20172_v26 = vld [vmem:[#allocation18_spill] sm:$0xff] }
0x1867   :  { %17500 = vmatprep.subr.bf16.mxu0 %v20143_v53 }
0x1934   :  { %v8120_v55 = vpop.f32.mrb[32].mxu0 }
0x1935   :  { %v8588_v40 = vsel %vm89_vm1, %v8120_v55, 0  ;;  %v16095_v20 = vpop.f32.mrb[33].mxu0 }
0x1936   :  { %v8659_v39 = vand.u32 4294901760, %v8588_v40 }
0x1938   :  { %v8660_v8 = vsub.f32 %v8588_v40, %v8659_v39  ;;  %16158 = vmatmul.mubr.f32.vlgmr.msra.gmra.mrb[74].mxu1 %v8659_v39  ;;  %v9075_v40 = vsel %vm89_vm1, %v19200_v52, 0 }
0x1939   :  { %17508 = vmatpush3.bf16.msra.mxu1 %v18398_v19  ;;  %16179 = vmatprep.mubr.msk.f32.mxu1 %vm18199_vm0, %v20144_v62  ;;  %v9146_v55 = vand.u32 4294901760, %v9075_v40 }
0x193a   :  { %v8661_v4 = vand.u32 4294901760, %v8660_v8  ;;  %17509 = vmatprep.subr.bf16.mxu1 %v20143_v53 }
0x193b   :  { %v9147_v59 = vsub.f32 %v9075_v40, %v9146_v55 }
0x193c   :  { %v8662_v27 = vsub.f32 %v8660_v8, %v8661_v4 }
0x193d   :  { %17511 = vmatpush3.bf16.msra.mxu1 %v18498_v31  ;;  %v9148_v52 = vand.u32 4294901760, %v9147_v59 }
0x193e   :  { %v8663_v1 = vand.u32 4294901760, %v8662_v27  ;;  %17518 = vmatprep.subr.bf16.mxu1 %v20143_v53 }
0x193f   :  { %v9149_v46 = vsub.f32 %v9147_v59, %v9148_v52 }
0x1940   :  { %16180 = vmatmul.mubr.f32.vlgmr.msra.gmra.mrb[76].mxu1 %v8661_v4  ;;  %16147 = vmatmul.mubr.f32.vlgmr.msra.gmra.mrb[34].mxu0 %v8663_v1 }
0x1941   :  { %17502 = vmatpush3.bf16.msra.mxu0 %v18564_v16  ;;  %17520 = vmatpush3.bf16.msra.mxu1 %v18398_v19 }
0x1942   :  { %17503 = vmatprep.subr.bf16.mxu0 %v20143_v53  ;;  %17521 = vmatprep.subr.bf16.mxu1 %v20143_v53 }
0x1943   :  { %16168 = vmatprep.mubr.msk.f32.mxu0 %vm18199_vm0, %v20144_v62  ;;  %16201 = vmatprep.mubr.msk.f32.mxu1 %vm18199_vm0, %v20144_v62 }
0x1945   :  { %17505 = vmatpush3.bf16.msra.mxu0 %v18502_v32  ;;  %17523 = vmatpush3.bf16.msra.mxu1 %v18498_v31 }
0x1946   :  { %17512 = vmatprep.subr.bf16.mxu0 %v20143_v53  ;;  %17530 = vmatprep.subr.bf16.mxu1 %v20143_v53 }
0x1948   :  { %16169 = vmatmul.mubr.f32.vlgmr.msra.gmra.mrb[36].mxu0 %v8660_v8  ;;  %16202 = vmatmul.mubr.f32.vlgmr.msra.gmra.mrb[78].mxu1 %v8659_v39 }
0x1949   :  { %17514 = vmatpush3.bf16.msra.mxu0 %v18601_v17  ;;  %17532 = vmatpush3.bf16.msra.mxu1 %v18605_v25 }
0x194a   :  { %17515 = vmatprep.subr.bf16.mxu0 %v20143_v53  ;;  %17533 = vmatprep.subr.bf16.mxu1 %v20143_v53 }
0x194b   :  { %16190 = vmatprep.mubr.msk.f32.mxu0 %vm18199_vm0, %v20144_v62  ;;  %16223 = vmatprep.mubr.msk.f32.mxu1 %vm18199_vm0, %v20144_v62 }
0x194d   :  { %17517 = vmatpush3.bf16.msra.mxu0 %v18504_v34  ;;  %17535 = vmatpush3.bf16.msra.mxu1 %v18614_v63 }
0x194e   :  { %17524 = vmatprep.subr.bf16.mxu0 %v20143_v53  ;;  %17542 = vmatprep.subr.bf16.mxu1 %v20143_v53 }
0x1950   :  { %16191 = vmatmul.mubr.f32.vlgmr.msra.gmra.mrb[38].mxu0 %v8659_v39  ;;  %16224 = vmatmul.mubr.f32.vlgmr.msra.gmra.mrb[80].mxu1 %v9146_v55  ;;  %v9150_v39 = vand.u32 4294901760, %v9149_v46 }
0x1951   :  { %17526 = vmatpush3.bf16.msra.mxu0 %v18624_v47  ;;  %17544 = vmatpush3.bf16.msra.mxu1 %v18624_v47 }
0x1952   :  { %17527 = vmatprep.subr.bf16.mxu0 %v20143_v53  ;;  %17545 = vmatprep.subr.bf16.mxu1 %v20143_v53 }
0x1953   :  { %16212 = vmatprep.mubr.msk.f32.mxu0 %vm18199_vm0, %v20144_v62  ;;  %16245 = vmatprep.mubr.msk.f32.mxu1 %vm18199_vm0, %v20144_v62 }
0x1955   :  { %17529 = vmatpush3.bf16.msra.mxu0 %v18635_v36  ;;  %17547 = vmatpush3.bf16.msra.mxu1 %v18635_v36 }
0x1956   :  { %17536 = vmatprep.subr.bf16.mxu0 %v20143_v53  ;;  %17554 = vmatprep.subr.bf16.mxu1 %v20143_v53 }
0x1958   :  { %16213 = vmatmul.mubr.f32.vlgmr.msra.gmra.mrb[40].mxu0 %v9150_v39  ;;  %16246 = vmatmul.mubr.f32.vlgmr.msra.gmra.mrb[82].mxu1 %v9148_v52 }
0x1959   :  { %17538 = vmatpush3.bf16.msra.mxu0 %v18648_v42  ;;  %17556 = vmatpush3.bf16.msra.mxu1 %v18624_v47 }
0x195a   :  { %17539 = vmatprep.subr.bf16.mxu0 %v20143_v53  ;;  %17557 = vmatprep.subr.bf16.mxu1 %v20143_v53 }
0x195b   :  { %16234 = vmatprep.mubr.msk.f32.mxu0 %vm18199_vm0, %v20144_v62  ;;  %16267 = vmatprep.mubr.msk.f32.mxu1 %vm18199_vm0, %v20144_v62 }
0x195d   :  { %17541 = vmatpush3.bf16.msra.mxu0 %v20171_v15  ;;  %17559 = vmatpush3.bf16.msra.mxu1 %v18635_v36 }
0x195e   :  { %17548 = vmatprep.subr.bf16.mxu0 %v20143_v53  ;;  %17632 = vmatprep.subr.bf16.mxu1 %v20143_v53 }
0x1960   :  { %16235 = vmatmul.mubr.f32.vlgmr.msra.gmra.mrb[42].mxu0 %v9147_v59  ;;  %16268 = vmatmul.mubr.f32.vlgmr.msra.gmra.mrb[84].mxu1 %v9146_v55 }
0x1961   :  { %17550 = vmatpush3.bf16.msra.mxu0 %v20172_v26  ;;  %16256 = vmatprep.mubr.msk.f32.mxu0 %vm18199_vm0, %v20144_v62 }
0x1962   :  { %17551 = vmatprep.subr.bf16.mxu0 %v20143_v53  ;;  %17634 = vmatpush3.bf16.msra.mxu1 %v18913_v7 }
0x1963   :  { %17635 = vmatprep.subr.bf16.mxu1 %v20143_v53  ;;  %16392 = vmatprep.mubr.msk.f32.mxu1 %vm18199_vm0, %v20144_v62 }
0x1965   :  { %17553 = vmatpush3.bf16.msra.mxu0 %v20173_v57 }
0x1966   :  { %17560 = vmatprep.subr.bf16.mxu0 %v20143_v53  ;;  %17637 = vmatpush3.bf16.msra.mxu1 %v18923_v49 }
0x1967   :  { %17638 = vmatprep.subr.bf16.mxu1 %v20143_v53 }
0x1968   :  { %16257 = vmatmul.mubr.f32.vlgmr.msra.gmra.mrb[44].mxu0 %v9146_v55 }
0x1969   :  { %17562 = vmatpush3.bf16.msra.mxu0 %v18727_v5  ;;  %16286 = vmatprep.mubr.msk.f32.mxu0 %vm18199_vm0, %v20144_v62 }
0x196a   :  { %17563 = vmatprep.subr.bf16.mxu0 %v20143_v53 }
0x196d   :  { %17565 = vmatpush3.bf16.msra.mxu0 %v18735_v28 }
0x196e   :  { %17566 = vmatprep.subr.bf16.mxu0 %v20143_v53 }
0x1971   :  { %17568 = vmatpush3.bf16.msra.mxu0 %v18763_v3 }
0x1972   :  { %17569 = vmatprep.subr.bf16.mxu0 %v20143_v53 }
0x1975   :  { %17571 = vmatpush3.bf16.msra.mxu0 %v18800_v48 }
0x1976   :  { %17572 = vmatprep.subr.bf16.mxu0 %v20143_v53 }
0x1a0b   :  { %v8756_v9 = vpop.f32.mrb[74].mxu1 }
0x1a0c   :  { %v16159_v14 = vpop.f32.mrb[75].mxu1 }
0x1a13   :  { %v8913_v54 = vpop.f32.mrb[76].mxu1  ;;  %v8665_v24 = vpop.f32.mrb[34].mxu0 }
0x1a14   :  { %v8666_v18 = vadd.f32 %v8665_v24, %v19420_v60  ;;  %v16181_v0 = vpop.f32.mrb[77].mxu1  ;;  %v16148_v20 = vpop.f32.mrb[35].mxu0 }
0x1a16   :  { %v8757_v8 = vadd.f32 %v8756_v9, %v8666_v18 }
0x1a1b   :  { %v8836_v4 = vpop.f32.mrb[36].mxu0  ;;  %v9071_v27 = vpop.f32.mrb[78].mxu1 }
0x1a1c   :  { %v8837_v1 = vadd.f32 %v8836_v4, %v8757_v8  ;;  %v16170_v40 = vpop.f32.mrb[37].mxu0  ;;  %v16203_v55 = vpop.f32.mrb[79].mxu1 }
0x1a1e   :  { %v8914_v59 = vadd.f32 %v8913_v54, %v8837_v1 }
0x1a23   :  { %v8996_v52 = vpop.f32.mrb[38].mxu0  ;;  %v9243_v46 = vpop.f32.mrb[80].mxu1 }
0x1a24   :  { %v8997_v39 = vadd.f32 %v8996_v52, %v8914_v59  ;;  %v16192_v57 = vpop.f32.mrb[39].mxu0  ;;  %v16225_v26 = vpop.f32.mrb[81].mxu1 }
0x1a26   :  { %v9072_v15 = vadd.f32 %v9071_v27, %v8997_v39 }
0x1a2b   :  { %v9152_v14 = vpop.f32.mrb[40].mxu0  ;;  %v9400_v42 = vpop.f32.mrb[82].mxu1 }
0x1a2c   :  { %v9244_v36 = vadd.f32 %v9243_v46, %v9152_v14  ;;  %v16214_v47 = vpop.f32.mrb[41].mxu0  ;;  %v16247_v60 = vpop.f32.mrb[83].mxu1 }
0x1a33   :  { %v9323_v24 = vpop.f32.mrb[42].mxu0  ;;  %v9558_v0 = vpop.f32.mrb[84].mxu1 }
0x1a34   :  { %v9324_v9 = vadd.f32 %v9323_v24, %v9244_v36  ;;  %v16236_v18 = vpop.f32.mrb[43].mxu0  ;;  %v16269_v20 = vpop.f32.mrb[85].mxu1 }
0x1a36   :  { %v9401_v8 = vadd.f32 %v9400_v42, %v9324_v9 }
0x1a3b   :  { %v9483_v4 = vpop.f32.mrb[44].mxu0 }
0x1a3c   :  { %v9484_v40 = vadd.f32 %v9483_v4, %v9401_v8  ;;  %v16258_v54 = vpop.f32.mrb[45].mxu0 }
0x1a3d   :  { %v20175_v54 = vld [vmem:[#allocation30_spill] sm:$0xff] }
0x1a3e   :  { %v9559_v1 = vadd.f32 %v9558_v0, %v9484_v40 }
0x1a40   :  { %v9562_v55 = vadd.f32 %v9559_v1, %v9072_v15  ;;  %v20176_v1 = vld [vmem:[#allocation31_spill] sm:$0xff] }
0x1a42   :  { %v9563_v57 = vadd.f32 %v19187_v6, %v9562_v55  ;;  %v20177_v55 = vld [vmem:[#allocation32_spill] sm:$0xff] }
0x1a44   :  { %18139 = vtanh.f32 %v9563_v57  ;;  %v14220_v27 = vmul.f32 -1.442695, %v9563_v57  ;;  %v20178_v57 = vld [vmem:[#allocation26_spill] sm:$0xff] }
0x1a46   :  { %18141 = vpow2.f32 %v14220_v27  ;;  %v19575_v27 = vld [vmem:[%s20027_s12] ss:$0 sm:$0xff] }
0x1a4e   :  { %v18140_v26 = vpop.eup %18139 }
0x1a4f   :  { %9573 = vrot.lane.b32.xlu1 %v18140_v26, %s18203_s17 }
0x1a50   :  { %v18142_v47 = vpop.eup %18141 }
0x1a51   :  { %v9567_v59 = vadd.f32 1.0, %v18142_v47 }
0x1a53   :  { %18143 = vrcp.f32 %v9567_v59 }
0x1a5d   :  { %v18144_v36 = vpop.eup %18143 }
0x1a5e   :  { %v9571_v42 = vmul.f32 %v18144_v36, %v19193_v13 }
0x1ac1   :  { %v9574_v52 = vpop.permute.xlu1 %9573 }
0x1ac2   :  { %v9576_v46 = vmul.f32 %v18144_v36, %v9574_v52 }
0x1ac4   :  { %9578 = vrot.lane.b32.xlu1 %v9576_v46, %s18204_s8 }
0x1b36   :  { %v9579_v39 = vpop.permute.xlu1 %9578 }
0x1b37   :  { %v19506_v15 = vadd.f32 %v9579_v39, %v9571_v42 }
0x1b39   :  { %18145 = vtanh.f32 %v19506_v15 }
0x1b43   :  { %v18146_v6 = vpop.eup %18145 }
0x1b44   :  { %9584 = vrot.lane.b32.xlu0 %v18146_v6, %s18203_s17 }
0x1b48   :  { %9592 = vrot.lane.b32.xlu0 %v19267_v10, %s18203_s17  ;;  %v20174_v10 = vld [vmem:[#allocation25_spill] sm:$0xff] }
0x1bb6   :  { %v9585_v14 = vpop.permute.xlu0 %9584 }
0x1bb7   :  { %v9587_v60 = vmul.f32 %v18144_v36, %v9585_v14 }
0x1bb9   :  { %9589 = vrot.lane.b32.xlu1 %v9587_v60, %s18204_s8 }
0x1bba   :  { %v9593_v24 = vpop.permute.xlu0 %9592 }
0x1c2b   :  { %v19513_v0 = vpop.permute.xlu1 %9589 }
0x1c2c   :  { %v9595_v13 = vsel %vm89_vm1, %v19513_v0, %v9593_v24 }
0x1c2d   :  { %v9597_v9 = vsel %vm2555_vm5, %v9595_v13, 0 }
0x1c2e   :  { %v9672_v18 = vand.u32 4294901760, %v9597_v9 }
0x1c30   :  { %v9673_v20 = vsub.f32 %v9597_v9, %v9672_v18 }
0x1c32   :  { %v9674_v8 = vand.u32 4294901760, %v9673_v20 }
0x1c34   :  { %v9675_v4 = vsub.f32 %v9673_v20, %v9674_v8 }
0x1c36   :  { %v9676_v40 = vand.u32 4294901760, %v9675_v4 }
0x1c38   :  { %16287 = vmatmul.mubr.f32.vlgmr.msra.gmra.mrb[46].mxu0 %v9676_v40 }
0x1c39   :  { %17574 = vmatpush3.bf16.msra.mxu0 %v20149_v43  ;;  %16305 = vmatprep.mubr.msk.f32.mxu0 %vm18199_vm0, %v20144_v62 }
0x1c3a   :  { %17575 = vmatprep.subr.bf16.mxu0 %v20143_v53 }
0x1c3d   :  { %17577 = vmatpush3.bf16.msra.mxu0 %v20150_v51 }
0x1c3e   :  { %17578 = vmatprep.subr.bf16.mxu0 %v20143_v53 }
0x1c41   :  { %17580 = vmatpush3.bf16.msra.mxu0 %v20151_v44 }
0x1c42   :  { %17581 = vmatprep.subr.bf16.mxu0 %v20143_v53 }
0x1c45   :  { %17583 = vmatpush3.bf16.msra.mxu0 %v20152_v12 }
0x1c46   :  { %17584 = vmatprep.subr.bf16.mxu0 %v20143_v53 }
0x1c48   :  { %16306 = vmatmul.mubr.f32.vlgmr.msra.gmra.mrb[46].mxu0 %v9672_v18 }
0x1c49   :  { %17586 = vmatpush3.bf16.msra.mxu0 %v20153_v45  ;;  %16324 = vmatprep.mubr.msk.f32.mxu0 %vm18199_vm0, %v20144_v62 }
0x1c4a   :  { %17587 = vmatprep.subr.bf16.mxu0 %v20143_v53 }
0x1c4d   :  { %17589 = vmatpush3.bf16.msra.mxu0 %v20154_v30 }
0x1c4e   :  { %17590 = vmatprep.subr.bf16.mxu0 %v20143_v53 }
0x1c51   :  { %17592 = vmatpush3.bf16.msra.mxu0 %v20155_v22 }
0x1c52   :  { %17593 = vmatprep.subr.bf16.mxu0 %v20143_v53 }
0x1c55   :  { %17595 = vmatpush3.bf16.msra.mxu0 %v20174_v10 }
0x1c56   :  { %17596 = vmatprep.subr.bf16.mxu0 %v20143_v53 }
0x1c58   :  { %16325 = vmatmul.mubr.f32.vlgmr.msra.gmra.mrb[46].mxu0 %v9673_v20 }
0x1c59   :  { %17598 = vmatpush3.bf16.msra.mxu0 %v18727_v5  ;;  %16343 = vmatprep.mubr.msk.f32.mxu0 %vm18199_vm0, %v20144_v62 }
0x1c5a   :  { %17599 = vmatprep.subr.bf16.mxu0 %v20143_v53 }
0x1c5d   :  { %17601 = vmatpush3.bf16.msra.mxu0 %v18735_v28 }
0x1c5e   :  { %17602 = vmatprep.subr.bf16.mxu0 %v20143_v53 }
0x1c61   :  { %17604 = vmatpush3.bf16.msra.mxu0 %v18763_v3 }
0x1c62   :  { %17605 = vmatprep.subr.bf16.mxu0 %v20143_v53 }
0x1c65   :  { %17607 = vmatpush3.bf16.msra.mxu0 %v18800_v48 }
0x1c66   :  { %17608 = vmatprep.subr.bf16.mxu0 %v20143_v53 }
0x1c68   :  { %16344 = vmatmul.mubr.f32.vlgmr.msra.gmra.mrb[46].mxu0 %v9674_v8 }
0x1c69   :  { %17610 = vmatpush3.bf16.msra.mxu0 %v20175_v54  ;;  %16362 = vmatprep.mubr.msk.f32.mxu0 %vm18199_vm0, %v20144_v62 }
0x1c6a   :  { %17611 = vmatprep.subr.bf16.mxu0 %v20143_v53 }
0x1c6d   :  { %17613 = vmatpush3.bf16.msra.mxu0 %v20176_v1 }
0x1c6e   :  { %17614 = vmatprep.subr.bf16.mxu0 %v20143_v53 }
0x1c71   :  { %17616 = vmatpush3.bf16.msra.mxu0 %v20177_v55 }
0x1c72   :  { %17617 = vmatprep.subr.bf16.mxu0 %v20143_v53 }
0x1c75   :  { %17619 = vmatpush3.bf16.msra.mxu0 %v20178_v57 }
0x1c76   :  { %17620 = vmatprep.subr.bf16.mxu0 %v20143_v53 }
0x1c78   :  { %16363 = vmatmul.mubr.f32.vlgmr.msra.gmra.mrb[46].mxu0 %v9672_v18 }
0x1c79   :  { %17622 = vmatpush3.bf16.msra.mxu0 %v18727_v5  ;;  %16381 = vmatprep.mubr.msk.f32.mxu0 %vm18199_vm0, %v20144_v62 }
0x1c7a   :  { %17623 = vmatprep.subr.bf16.mxu0 %v20143_v53 }
0x1c7d   :  { %17625 = vmatpush3.bf16.msra.mxu0 %v18735_v28 }
0x1c7e   :  { %17626 = vmatprep.subr.bf16.mxu0 %v20143_v53 }
0x1c81   :  { %17628 = vmatpush3.bf16.msra.mxu0 %v18763_v3 }
0x1c82   :  { %17629 = vmatprep.subr.bf16.mxu0 %v20143_v53 }
0x1c85   :  { %17631 = vmatpush3.bf16.msra.mxu0 %v18800_v48 }
0x1c86   :  { %17704 = vmatprep.subr.bf16.mxu0 %v20143_v53 }
0x1c88   :  { %16382 = vmatmul.mubr.f32.vlgmr.msra.gmra.mrb[46].mxu0 %v9672_v18 }
0x1c89   :  { %17706 = vmatpush3.bf16.msra.mxu0 %v18378_v61  ;;  %16520 = vmatprep.mubr.msk.f32.mxu0 %vm18199_vm0, %v20144_v62 }
0x1c8a   :  { %17707 = vmatprep.subr.bf16.mxu0 %v20143_v53 }
0x1d5b   :  { %v10132_v26 = vpop.f32.mrb[46].mxu0 }
0x1d5c   :  { %v17926_v47 = vadd.f32 %v19575_v27, %v10132_v26  ;;  %v16383_v59 = vpop.f32.mrb[47].mxu0 }
0x1d5e   :  { %18147 = vtanh.f32 %v17926_v47  ;;  %v14221_v52 = vmul.f32 -1.442695, %v17926_v47 }
0x1d60   :  { %18149 = vpow2.f32 %v14221_v52 }
0x1d68   :  { %v18148_v36 = vpop.eup %18147 }
0x1d69   :  { %10145 = vrot.lane.b32.xlu1 %v18148_v36, %s18203_s17 }
0x1d6a   :  { %v18150_v46 = vpop.eup %18149 }
0x1d6b   :  { %v10139_v42 = vadd.f32 1.0, %v18150_v46 }
0x1d6d   :  { %18151 = vrcp.f32 %v10139_v42 }
0x1d77   :  { %v18152_v39 = vpop.eup %18151 }
0x1d78   :  { %v10143_v60 = vmul.f32 %v18152_v39, %v19263_v50 }
0x1ddb   :  { %v10146_v6 = vpop.permute.xlu1 %10145 }
0x1ddc   :  { %v10148_v14 = vmul.f32 %v18152_v39, %v10146_v6 }
0x1dde   :  { %10150 = vrot.lane.b32.xlu0 %v10148_v14, %s18204_s8 }
0x1e50   :  { %v10151_v24 = vpop.permute.xlu0 %10150 }
0x1e51   :  { %v19581_v13 = vadd.f32 %v10151_v24, %v10143_v60 }
0x1e53   :  { %18153 = vtanh.f32 %v19581_v13 }
0x1e5d   :  { %v18154_v9 = vpop.eup %18153 }
0x1e5e   :  { %10156 = vrot.lane.b32.xlu1 %v18154_v9, %s18203_s17 }
0x1ed0   :  { %v10157_v18 = vpop.permute.xlu1 %10156 }
0x1ed1   :  { %v19585_v20 = vmul.f32 %v18152_v39, %v10157_v18 }
0x1ed3   :  { %10161 = vrot.lane.b32.xlu0 %v19585_v20, %s18204_s8 }
0x1f45   :  { %v10162_v8 = vpop.permute.xlu0 %10161 }
0x1f46   :  { %v10163_v4 = vsel %vm89_vm1, %v10162_v8, 0 }
0x1f47   :  { %v19590_v40 = vand.u32 4294901760, %v10163_v4 }
0x1f49   :  { %v10235_v50 = vsub.f32 %v10163_v4, %v19590_v40 }
0x1f4b   :  { %v10236_v26 = vand.u32 4294901760, %v10235_v50 }
0x1f4d   :  { %v10237_v47 = vsub.f32 %v10235_v50, %v10236_v26 }
0x1f4f   :  { %v10238_v59 = vand.u32 4294901760, %v10237_v47 }
0x1f51   :  { %16393 = vmatmul.mubr.f32.vlgmr.msra.gmra.mrb[86].mxu1 %v10238_v59 }
0x1f52   :  { %17640 = vmatpush3.bf16.msra.mxu1 %v18927_v41  ;;  %16403 = vmatprep.mubr.msk.f32.mxu1 %vm18199_vm0, %v20144_v62 }
0x1f53   :  { %17641 = vmatprep.subr.bf16.mxu1 %v20143_v53 }
0x1f56   :  { %17643 = vmatpush3.bf16.msra.mxu1 %v18933_v29 }
0x1f57   :  { %17644 = vmatprep.subr.bf16.mxu1 %v20143_v53 }
0x1f59   :  { %16404 = vmatmul.mubr.f32.vlgmr.msra.gmra.mrb[86].mxu1 %v19590_v40 }
0x1f5a   :  { %17646 = vmatpush3.bf16.msra.mxu1 %v18935_v2  ;;  %16414 = vmatprep.mubr.msk.f32.mxu1 %vm18199_vm0, %v20144_v62 }
0x1f5b   :  { %17647 = vmatprep.subr.bf16.mxu1 %v20143_v53 }
0x1f5e   :  { %17649 = vmatpush3.bf16.msra.mxu1 %v18937_v56 }
0x1f5f   :  { %17650 = vmatprep.subr.bf16.mxu1 %v20143_v53 }
0x1f61   :  { %16415 = vmatmul.mubr.f32.vlgmr.msra.gmra.mrb[86].mxu1 %v10235_v50 }
0x1f62   :  { %17652 = vmatpush3.bf16.msra.mxu1 %v18913_v7  ;;  %16425 = vmatprep.mubr.msk.f32.mxu1 %vm18199_vm0, %v20144_v62 }
0x1f63   :  { %17653 = vmatprep.subr.bf16.mxu1 %v20143_v53 }
0x1f66   :  { %17655 = vmatpush3.bf16.msra.mxu1 %v18923_v49 }
0x1f67   :  { %17656 = vmatprep.subr.bf16.mxu1 %v20143_v53 }
0x1f69   :  { %16426 = vmatmul.mubr.f32.vlgmr.msra.gmra.mrb[86].mxu1 %v10236_v26 }
0x1f6a   :  { %17658 = vmatpush3.bf16.msra.mxu1 %v18939_v23  ;;  %16436 = vmatprep.mubr.msk.f32.mxu1 %vm18199_vm0, %v20144_v62 }
0x1f6b   :  { %17659 = vmatprep.subr.bf16.mxu1 %v20143_v53 }
0x1f6e   :  { %17661 = vmatpush3.bf16.msra.mxu1 %v18941_v58 }
0x1f6f   :  { %17662 = vmatprep.subr.bf16.mxu1 %v20143_v53 }
0x1f71   :  { %16437 = vmatmul.mubr.f32.vlgmr.msra.gmra.mrb[86].mxu1 %v19590_v40 }
0x1f72   :  { %17664 = vmatpush3.bf16.msra.mxu1 %v18913_v7  ;;  %16447 = vmatprep.mubr.msk.f32.mxu1 %vm18199_vm0, %v20144_v62 }
0x1f73   :  { %17665 = vmatprep.subr.bf16.mxu1 %v20143_v53 }
0x1f76   :  { %17667 = vmatpush3.bf16.msra.mxu1 %v18923_v49 }
0x1f77   :  { %17668 = vmatprep.subr.bf16.mxu1 %v20143_v53 }
0x1f79   :  { %16448 = vmatmul.mubr.f32.vlgmr.msra.gmra.mrb[86].mxu1 %v19590_v40 }
0x1f7a   :  { %17670 = vmatpush3.bf16.msra.mxu1 %v18313_v11  ;;  %16458 = vmatprep.mubr.msk.f32.mxu1 %vm18199_vm0, %v20144_v62 }
0x1f7b   :  { %17671 = vmatprep.subr.bf16.mxu1 %v20143_v53 }
0x1f7e   :  { %17673 = vmatpush3.bf16.msra.mxu1 %v18318_v21 }
0x1f7f   :  { %17674 = vmatprep.subr.bf16.mxu1 %v20143_v53 }
0x1f81   :  { %16459 = vmatmul.mubr.f32.vlgmr.msra.gmra.mrb[88].mxu1 %v10238_v59 }
0x1f82   :  { %17676 = vmatpush3.bf16.msra.mxu1 %v18323_v33  ;;  %16469 = vmatprep.mubr.msk.f32.mxu1 %vm18199_vm0, %v20144_v62  ;;  %v20179_v33 = vld [vmem:[#allocation2_spill] sm:$0xff] }
0x1f83   :  { %17677 = vmatprep.subr.bf16.mxu1 %v20143_v53 }
0x1f86   :  { %17679 = vmatpush3.bf16.msra.mxu1 %v18326_v35  ;;  %v20180_v35 = vld [vmem:[#allocation3_spill] sm:$0xff] }
0x1f87   :  { %17680 = vmatprep.subr.bf16.mxu1 %v20143_v53 }
0x1f89   :  { %16470 = vmatmul.mubr.f32.vlgmr.msra.gmra.mrb[88].mxu1 %v19590_v40 }
0x1f8a   :  { %17682 = vmatpush3.bf16.msra.mxu1 %v18332_v37  ;;  %16480 = vmatprep.mubr.msk.f32.mxu1 %vm18199_vm0, %v20144_v62  ;;  %v20181_v37 = vld [vmem:[#allocation8_spill] sm:$0xff] }
0x1f8b   :  { %17683 = vmatprep.subr.bf16.mxu1 %v20143_v53 }
0x1f8e   :  { %17685 = vmatpush3.bf16.msra.mxu1 %v18336_v38 }
0x1f8f   :  { %17686 = vmatprep.subr.bf16.mxu1 %v20143_v53 }
0x1f91   :  { %16481 = vmatmul.mubr.f32.vlgmr.msra.gmra.mrb[88].mxu1 %v10235_v50 }
0x1f92   :  { %17688 = vmatpush3.bf16.msra.mxu1 %v18313_v11  ;;  %16491 = vmatprep.mubr.msk.f32.mxu1 %vm18199_vm0, %v20144_v62 }
0x1f93   :  { %17689 = vmatprep.subr.bf16.mxu1 %v20143_v53 }
0x1f96   :  { %17691 = vmatpush3.bf16.msra.mxu1 %v18318_v21 }
0x1f97   :  { %17692 = vmatprep.subr.bf16.mxu1 %v20143_v53 }
0x1f99   :  { %16492 = vmatmul.mubr.f32.vlgmr.msra.gmra.mrb[88].mxu1 %v10236_v26 }
0x1f9a   :  { %17694 = vmatpush3.bf16.msra.mxu1 %v20179_v33  ;;  %16502 = vmatprep.mubr.msk.f32.mxu1 %vm18199_vm0, %v20144_v62 }
0x1f9b   :  { %17695 = vmatprep.subr.bf16.mxu1 %v20143_v53 }
0x1f9e   :  { %17697 = vmatpush3.bf16.msra.mxu1 %v20180_v35 }
0x1f9f   :  { %17698 = vmatprep.subr.bf16.mxu1 %v20143_v53 }
0x1fa1   :  { %16503 = vmatmul.mubr.f32.vlgmr.msra.gmra.mrb[88].mxu1 %v19590_v40 }
0x1fa2   :  { %17700 = vmatpush3.bf16.msra.mxu1 %v18313_v11  ;;  %16513 = vmatprep.mubr.msk.f32.mxu1 %vm18199_vm0, %v20144_v62 }
0x1fa3   :  { %17701 = vmatprep.subr.bf16.mxu1 %v20143_v53 }
0x1fa6   :  { %17703 = vmatpush3.bf16.msra.mxu1 %v18318_v21  ;;  %v18195_v21 = vld [vmem:[%s20017_s2] sm:$0x3] }
0x1fa7   :  { %17722 = vmatprep.subr.bf16.mxu1 %v20143_v53 }
0x1fa9   :  { %16514 = vmatmul.mubr.f32.vlgmr.msra.gmra.mrb[88].mxu1 %v19590_v40  ;;  %v11638_v40 = vld [vmem:[%s20022_s0 + $0x6] sm:$0x3] }
0x1faa   :  { %17724 = vmatpush3.bf16.msra.mxu1 %v20181_v37  ;;  %16562 = vmatprep.mubr.msk.f32.mxu1 %vm18199_vm0, %v20144_v62  ;;  %v11640_v50 = vsel %vm603_vm4, %v11638_v40, 0  ;;  %v20187_v40 = vld [vmem:[#allocation5_spill] sm:$0xff] }
0x1fab   :  { %17725 = vmatprep.subr.bf16.mxu1 %v20143_v53  ;;  %v11709_v26 = vand.u32 4294901760, %v11640_v50 }
0x1fad   :  { %v11710_v47 = vsub.f32 %v11640_v50, %v11709_v26  ;;  %v20188_v50 = vld [vmem:[#allocation6_spill] sm:$0xff] }
0x1faf   :  { %v11711_v59 = vand.u32 4294901760, %v11710_v47 }
0x1fb1   :  { %v11712_v33 = vsub.f32 %v11710_v47, %v11711_v59 }
0x1fb3   :  { %v11713_v35 = vand.u32 4294901760, %v11712_v33 }
0x1fb5   :  { %16563 = vmatmul.mubr.f32.vlgmr.msra.gmra.mrb[90].mxu1 %v11713_v35 }
0x1fb6   :  { %16569 = vmatprep.mubr.msk.f32.mxu1 %vm18199_vm0, %v20144_v62 }
0x204c   :  { %v19669_v38 = vpop.f32.mrb[86].mxu1 }
0x204d   :  { %v16449_v11 = vpop.f32.mrb[87].mxu1 }
0x204e   :  { %v20182_v11 = vld [vmem:[#allocation9_spill] sm:$0xff] }
0x204f   :  { %17727 = vmatpush3.bf16.msra.mxu1 %v20182_v11 }
0x2050   :  { %17728 = vmatprep.subr.bf16.mxu1 %v20143_v53 }
0x2052   :  { %16570 = vmatmul.mubr.f32.vlgmr.msra.gmra.mrb[92].mxu1 %v11709_v26 }
0x2053   :  { %16576 = vmatprep.mubr.msk.f32.mxu1 %vm18199_vm0, %v20144_v62 }
0x207c   :  { %v11149_v36 = vpop.f32.mrb[88].mxu1 }
0x207d   :  { %11155 = vperm.xlu1 %18094, %v11149_v36   ;;  %v16515_v52 = vpop.f32.mrb[89].mxu1  ;;  %v20183_v36 = vld [vmem:[#allocation10_spill] sm:$0xff] }
0x207e   :  { %17730 = vmatpush3.bf16.msra.mxu1 %v20183_v36  ;;  %v20184_v52 = vld [vmem:[#allocation11_spill] sm:$0xff] }
0x207f   :  { %17731 = vmatprep.subr.bf16.mxu1 %v20143_v53 }
0x2081   :  { %16577 = vmatmul.mubr.f32.vlgmr.msra.gmra.mrb[94].mxu1 %v11710_v47 }
0x2082   :  { %17733 = vmatpush3.bf16.msra.mxu1 %v20181_v37  ;;  %16583 = vmatprep.mubr.msk.f32.mxu1 %vm18199_vm0, %v20144_v62 }
0x2083   :  { %17734 = vmatprep.subr.bf16.mxu1 %v20143_v53 }
0x2085   :  { %16584 = vmatmul.mubr.f32.vlgmr.msra.gmra.mrb[96].mxu1 %v11711_v59 }
0x2086   :  { %17736 = vmatpush3.bf16.msra.mxu1 %v20184_v52  ;;  %16590 = vmatprep.mubr.msk.f32.mxu1 %vm18199_vm0, %v20144_v62 }
0x2087   :  { %17737 = vmatprep.subr.bf16.mxu1 %v20143_v53 }
0x2088   :  { %v11715_v47 = vpop.f32.mrb[90].mxu1 }
0x2089   :  { %16591 = vmatmul.mubr.f32.vlgmr.msra.gmra.mrb[98].mxu1 %v11709_v26  ;;  %v16564_v59 = vpop.f32.mrb[91].mxu1 }
0x208a   :  { %17739 = vmatpush3.bf16.msra.mxu1 %v20181_v37  ;;  %16597 = vmatprep.mubr.msk.f32.mxu1 %vm18199_vm0, %v20144_v62 }
0x208b   :  { %17746 = vmatprep.subr.bf16.mxu1 %v20143_v53 }
0x208d   :  { %16598 = vmatmul.mubr.f32.vlgmr.msra.gmra.mrb[100].mxu1 %v11709_v26  ;;  %v20189_v26 = vld [vmem:[#allocation7_spill] sm:$0xff] }
0x208e   :  { %16619 = vmatprep.mubr.msk.f32.mxu1 %vm18199_vm0, %v20144_v62 }
0x20fc   :  { %v11156_v46 = vpop.permute.xlu1 %11155 }
0x20fd   :  { %v11158_v42 = vadd.f32 %v18195_v21, %v11156_v46  ;;  %v20185_v46 = vld [vmem:[#allocation12_spill] sm:$0xff]  ;;  %v20186_v21 = vld [vmem:[#allocation13_spill] sm:$0xff] }
0x20fe   :  { %17748 = vmatpush3.bf16.msra.mxu1 %v20185_v46 }
0x20ff   :  { %v11159_v39 = vsel %vm584_vm2, %v11158_v42, -inf  ;;  %17749 = vmatprep.subr.bf16.mxu1 %v20143_v53 }
0x2100   :  { %11160 = vmax.xlane.f32.xlu0 %v11159_v39  ;;  %v18196_v39 = vld [vmem:[%s20020_s3] sm:$0x3] }
0x2102   :  { %17751 = vmatpush3.bf16.msra.mxu1 %v20186_v21 }
0x2103   :  { %17758 = vmatprep.subr.bf16.mxu1 %v20143_v53 }
0x218d   :  { %v11161_v6 = vpop.xlane.xlu0 %11160 }
0x218e   :  { %v11162_v14 = vsub.f32 %v11158_v42, %v11161_v6 }
0x2190   :  { %v11163_v60 = vmul.f32 1.442695, %v11162_v14 }
0x2192   :  { %18155 = vpow2.f32 %v11163_v60 }
0x219c   :  { %v18156_v24 = vpop.eup %18155 }
0x219d   :  { %v11165_v9 = vsel %vm584_vm2, %v18156_v24, 0.0 }
0x219e   :  { %11166 = vadd.xlane.f32.xlu1 %v11165_v9 }
0x222b   :  { %v11167_v18 = vpop.xlane.xlu1 %11166 }
0x222c   :  { %18157 = vrcp.f32 %v11167_v18 }
0x2236   :  { %v18158_v8 = vpop.eup %18157 }
0x2237   :  { %v19676_v4 = vmul.f32 %v18158_v8, %v18156_v24 }
0x2239   :  { %11171 = vrot.lane.b32.xlu0 %v19676_v4, %s18202_s23 }
0x22ab   :  { %v11172_v42 = vpop.permute.xlu0 %11171 }
0x22ac   :  { %v11174_v37 = vsel %vm600_vm3, %v19676_v4, %v11172_v42 }
0x22ad   :  { %v11175_v6 = vmul.f32 %v18196_v39, %v11174_v37 }
0x22af   :  { %v11177_v14 = vsel %vm603_vm4, %v11175_v6, 0 }
0x22b0   :  { %v11246_v60 = vand.u32 4294901760, %v11177_v14 }
0x22b2   :  { %v11247_v24 = vsub.f32 %v11177_v14, %v11246_v60 }
0x22b4   :  { %v11248_v9 = vand.u32 4294901760, %v11247_v24 }
0x22b6   :  { %v11249_v18 = vsub.f32 %v11247_v24, %v11248_v9 }
0x22b8   :  { %v11250_v8 = vand.u32 4294901760, %v11249_v18 }
0x22ba   :  { %16521 = vmatmul.mubr.f32.vlgmr.msra.gmra.mrb[48].mxu0 %v11250_v8 }
0x22bb   :  { %17709 = vmatpush3.bf16.msra.mxu0 %v20187_v40  ;;  %16527 = vmatprep.mubr.msk.f32.mxu0 %vm18199_vm0, %v20144_v62 }
0x22bc   :  { %17710 = vmatprep.subr.bf16.mxu0 %v20143_v53 }
0x22c2   :  { %16528 = vmatmul.mubr.f32.vlgmr.msra.gmra.mrb[48].mxu0 %v11246_v60 }
0x22c3   :  { %17712 = vmatpush3.bf16.msra.mxu0 %v20188_v50  ;;  %16534 = vmatprep.mubr.msk.f32.mxu0 %vm18199_vm0, %v20144_v62 }
0x22c4   :  { %17713 = vmatprep.subr.bf16.mxu0 %v20143_v53 }
0x22ca   :  { %16535 = vmatmul.mubr.f32.vlgmr.msra.gmra.mrb[48].mxu0 %v11247_v24 }
0x22cb   :  { %17715 = vmatpush3.bf16.msra.mxu0 %v18378_v61  ;;  %16541 = vmatprep.mubr.msk.f32.mxu0 %vm18199_vm0, %v20144_v62 }
0x22cc   :  { %17716 = vmatprep.subr.bf16.mxu0 %v20143_v53 }
0x22d2   :  { %16542 = vmatmul.mubr.f32.vlgmr.msra.gmra.mrb[48].mxu0 %v11248_v9 }
0x22d3   :  { %17718 = vmatpush3.bf16.msra.mxu0 %v20189_v26  ;;  %16548 = vmatprep.mubr.msk.f32.mxu0 %vm18199_vm0, %v20144_v62 }
0x22d4   :  { %17719 = vmatprep.subr.bf16.mxu0 %v20143_v53 }
0x22da   :  { %16549 = vmatmul.mubr.f32.vlgmr.msra.gmra.mrb[48].mxu0 %v11246_v60 }
0x22db   :  { %17721 = vmatpush3.bf16.msra.mxu0 %v18378_v61  ;;  %16555 = vmatprep.mubr.msk.f32.mxu0 %vm18199_vm0, %v20144_v62  ;;  %v11796_v61 = vpop.f32.mrb[92].mxu1 }
0x22dc   :  { %17740 = vmatprep.subr.bf16.mxu0 %v20143_v53  ;;  %v11797_v33 = vadd.f32 %v11796_v61, %v11715_v47  ;;  %v16571_v35 = vpop.f32.mrb[93].mxu1  ;;  %v12589_v61 = vsel %vm89_vm1, %v19513_v0, 0  ;;  %v20193_v0 = vld [vmem:[#allocation17_spill] sm:$0xff] }
0x22dd   :  { %v11872_v11 = vpop.f32.mrb[94].mxu1  ;;  %v20195_v35 = vld [vmem:[#allocation19_spill] sm:$0xff] }
0x22de   :  { %v11873_v36 = vadd.f32 %v11872_v11, %v11797_v33  ;;  %v16578_v52 = vpop.f32.mrb[95].mxu1  ;;  %v20194_v33 = vld [vmem:[#allocation18_spill] sm:$0xff] }
0x22df   :  { %v11947_v46 = vpop.f32.mrb[96].mxu1 }
0x22e0   :  { %v11948_v21 = vadd.f32 %v11947_v46, %v11873_v36  ;;  %v16585_v42 = vpop.f32.mrb[97].mxu1 }
0x22e1   :  { %v12024_v37 = vpop.f32.mrb[98].mxu1 }
0x22e2   :  { %16556 = vmatmul.mubr.f32.vlgmr.msra.gmra.mrb[48].mxu0 %v11246_v60  ;;  %v12025_v39 = vadd.f32 %v12024_v37, %v11948_v21  ;;  %v16592_v6 = vpop.f32.mrb[99].mxu1 }
0x22e3   :  { %17742 = vmatpush3.bf16.msra.mxu0 %v18398_v19  ;;  %16608 = vmatprep.mubr.msk.f32.mxu0 %vm18199_vm0, %v20144_v62  ;;  %v12097_v14 = vpop.f32.mrb[100].mxu1 }
0x22e4   :  { %17743 = vmatprep.subr.bf16.mxu0 %v20143_v53  ;;  %v19742_v60 = vadd.f32 %v12097_v14, %v12025_v39  ;;  %v16599_v24 = vpop.f32.mrb[101].mxu1 }
0x22e7   :  { %17745 = vmatpush3.bf16.msra.mxu0 %v18498_v31 }
0x22e8   :  { %17752 = vmatprep.subr.bf16.mxu0 %v20143_v53 }
0x23b5   :  { %v11634_v9 = vpop.f32.mrb[48].mxu0 }
0x23b6   :  { %v12102_v18 = vsel %vm89_vm1, %v11634_v9, 0  ;;  %v16557_v8 = vpop.f32.mrb[49].mxu0 }
0x23b7   :  { %v12173_v40 = vand.u32 4294901760, %v12102_v18 }
0x23b9   :  { %v12174_v50 = vsub.f32 %v12102_v18, %v12173_v40  ;;  %16620 = vmatmul.mubr.f32.vlgmr.msra.gmra.mrb[102].mxu1 %v12173_v40 }
0x23ba   :  { %17760 = vmatpush3.bf16.msra.mxu1 %v18398_v19  ;;  %16641 = vmatprep.mubr.msk.f32.mxu1 %vm18199_vm0, %v20144_v62 }
0x23bb   :  { %v12175_v26 = vand.u32 4294901760, %v12174_v50  ;;  %17761 = vmatprep.subr.bf16.mxu1 %v20143_v53 }
0x23bd   :  { %v12176_v47 = vsub.f32 %v12174_v50, %v12175_v26 }
0x23be   :  { %17763 = vmatpush3.bf16.msra.mxu1 %v18498_v31 }
0x23bf   :  { %v12177_v59 = vand.u32 4294901760, %v12176_v47  ;;  %17770 = vmatprep.subr.bf16.mxu1 %v20143_v53 }
0x23c1   :  { %16642 = vmatmul.mubr.f32.vlgmr.msra.gmra.mrb[104].mxu1 %v12175_v26  ;;  %16609 = vmatmul.mubr.f32.vlgmr.msra.gmra.mrb[50].mxu0 %v12177_v59 }
0x23c2   :  { %17754 = vmatpush3.bf16.msra.mxu0 %v18564_v16  ;;  %17772 = vmatpush3.bf16.msra.mxu1 %v18398_v19  ;;  %v12660_v16 = vand.u32 4294901760, %v12589_v61 }
0x23c3   :  { %17755 = vmatprep.subr.bf16.mxu0 %v20143_v53  ;;  %17773 = vmatprep.subr.bf16.mxu1 %v20143_v53 }
0x23c4   :  { %16630 = vmatprep.mubr.msk.f32.mxu0 %vm18199_vm0, %v20144_v62  ;;  %16663 = vmatprep.mubr.msk.f32.mxu1 %vm18199_vm0, %v20144_v62  ;;  %v12661_v19 = vsub.f32 %v12589_v61, %v12660_v16 }
0x23c6   :  { %17757 = vmatpush3.bf16.msra.mxu0 %v18502_v32  ;;  %17775 = vmatpush3.bf16.msra.mxu1 %v18498_v31  ;;  %v12662_v31 = vand.u32 4294901760, %v12661_v19  ;;  %v20190_v32 = vld [vmem:[#allocation14_spill] sm:$0xff] }
0x23c7   :  { %17764 = vmatprep.subr.bf16.mxu0 %v20143_v53  ;;  %17782 = vmatprep.subr.bf16.mxu1 %v20143_v53 }
0x23c9   :  { %16631 = vmatmul.mubr.f32.vlgmr.msra.gmra.mrb[52].mxu0 %v12174_v50  ;;  %16664 = vmatmul.mubr.f32.vlgmr.msra.gmra.mrb[106].mxu1 %v12173_v40 }
0x23ca   :  { %17766 = vmatpush3.bf16.msra.mxu0 %v18601_v17  ;;  %17784 = vmatpush3.bf16.msra.mxu1 %v18605_v25  ;;  %v12663_v17 = vsub.f32 %v12661_v19, %v12662_v31 }
0x23cb   :  { %17767 = vmatprep.subr.bf16.mxu0 %v20143_v53  ;;  %17785 = vmatprep.subr.bf16.mxu1 %v20143_v53 }
0x23cc   :  { %16652 = vmatprep.mubr.msk.f32.mxu0 %vm18199_vm0, %v20144_v62  ;;  %16685 = vmatprep.mubr.msk.f32.mxu1 %vm18199_vm0, %v20144_v62  ;;  %v12664_v25 = vand.u32 4294901760, %v12663_v17 }
0x23ce   :  { %17769 = vmatpush3.bf16.msra.mxu0 %v18504_v34  ;;  %17787 = vmatpush3.bf16.msra.mxu1 %v18614_v63  ;;  %v20191_v34 = vld [vmem:[#allocation15_spill] sm:$0xff]  ;;  %v20192_v63 = vld [vmem:[#allocation16_spill] sm:$0xff] }
0x23cf   :  { %17776 = vmatprep.subr.bf16.mxu0 %v20143_v53  ;;  %17794 = vmatprep.subr.bf16.mxu1 %v20143_v53 }
0x23d1   :  { %16653 = vmatmul.mubr.f32.vlgmr.msra.gmra.mrb[54].mxu0 %v12173_v40  ;;  %16686 = vmatmul.mubr.f32.vlgmr.msra.gmra.mrb[108].mxu1 %v12660_v16 }
0x23d2   :  { %17778 = vmatpush3.bf16.msra.mxu0 %v20190_v32  ;;  %17796 = vmatpush3.bf16.msra.mxu1 %v20190_v32 }
0x23d3   :  { %17779 = vmatprep.subr.bf16.mxu0 %v20143_v53  ;;  %17797 = vmatprep.subr.bf16.mxu1 %v20143_v53 }
0x23d4   :  { %16674 = vmatprep.mubr.msk.f32.mxu0 %vm18199_vm0, %v20144_v62  ;;  %16707 = vmatprep.mubr.msk.f32.mxu1 %vm18199_vm0, %v20144_v62 }
0x23d6   :  { %17781 = vmatpush3.bf16.msra.mxu0 %v20191_v34  ;;  %17799 = vmatpush3.bf16.msra.mxu1 %v20191_v34 }
0x23d7   :  { %17788 = vmatprep.subr.bf16.mxu0 %v20143_v53  ;;  %17806 = vmatprep.subr.bf16.mxu1 %v20143_v53 }
0x23d9   :  { %16675 = vmatmul.mubr.f32.vlgmr.msra.gmra.mrb[56].mxu0 %v12664_v25  ;;  %16708 = vmatmul.mubr.f32.vlgmr.msra.gmra.mrb[110].mxu1 %v12662_v31 }
0x23da   :  { %17790 = vmatpush3.bf16.msra.mxu0 %v20192_v63  ;;  %17808 = vmatpush3.bf16.msra.mxu1 %v20190_v32 }
0x23db   :  { %17791 = vmatprep.subr.bf16.mxu0 %v20143_v53  ;;  %17809 = vmatprep.subr.bf16.mxu1 %v20143_v53 }
0x23dc   :  { %16696 = vmatprep.mubr.msk.f32.mxu0 %vm18199_vm0, %v20144_v62  ;;  %16729 = vmatprep.mubr.msk.f32.mxu1 %vm18199_vm0, %v20144_v62 }
0x23de   :  { %17793 = vmatpush3.bf16.msra.mxu0 %v20193_v0  ;;  %17811 = vmatpush3.bf16.msra.mxu1 %v20191_v34 }
0x23df   :  { %17800 = vmatprep.subr.bf16.mxu0 %v20143_v53  ;;  %17884 = vmatprep.subr.bf16.mxu1 %v20143_v53 }
0x23e1   :  { %16697 = vmatmul.mubr.f32.vlgmr.msra.gmra.mrb[58].mxu0 %v12661_v19  ;;  %16730 = vmatmul.mubr.f32.vlgmr.msra.gmra.mrb[112].mxu1 %v12660_v16 }
0x23e2   :  { %17802 = vmatpush3.bf16.msra.mxu0 %v20194_v33  ;;  %16718 = vmatprep.mubr.msk.f32.mxu0 %vm18199_vm0, %v20144_v62 }
0x23e3   :  { %17803 = vmatprep.subr.bf16.mxu0 %v20143_v53  ;;  %17886 = vmatpush3.bf16.msra.mxu1 %v18913_v7 }
0x23e4   :  { %17887 = vmatprep.subr.bf16.mxu1 %v20143_v53  ;;  %16854 = vmatprep.mubr.msk.f32.mxu1 %vm18199_vm0, %v20144_v62 }
0x23e6   :  { %17805 = vmatpush3.bf16.msra.mxu0 %v20195_v35 }
0x23e7   :  { %17812 = vmatprep.subr.bf16.mxu0 %v20143_v53  ;;  %17889 = vmatpush3.bf16.msra.mxu1 %v18923_v49 }
0x23e8   :  { %17890 = vmatprep.subr.bf16.mxu1 %v20143_v53 }
0x23e9   :  { %16719 = vmatmul.mubr.f32.vlgmr.msra.gmra.mrb[60].mxu0 %v12660_v16 }
0x23ea   :  { %17814 = vmatpush3.bf16.msra.mxu0 %v18727_v5  ;;  %16748 = vmatprep.mubr.msk.f32.mxu0 %vm18199_vm0, %v20144_v62 }
0x23eb   :  { %17815 = vmatprep.subr.bf16.mxu0 %v20143_v53 }
0x23ee   :  { %17817 = vmatpush3.bf16.msra.mxu0 %v18735_v28 }
0x23ef   :  { %17818 = vmatprep.subr.bf16.mxu0 %v20143_v53 }
0x23f2   :  { %17820 = vmatpush3.bf16.msra.mxu0 %v18763_v3 }
0x23f3   :  { %17821 = vmatprep.subr.bf16.mxu0 %v20143_v53 }
0x23f6   :  { %17823 = vmatpush3.bf16.msra.mxu0 %v18800_v48 }
0x23f7   :  { %17824 = vmatprep.subr.bf16.mxu0 %v20143_v53 }
0x248c   :  { %v12270_v11 = vpop.f32.mrb[102].mxu1 }
0x248d   :  { %v16621_v36 = vpop.f32.mrb[103].mxu1 }
0x2494   :  { %v12427_v52 = vpop.f32.mrb[104].mxu1  ;;  %v12179_v46 = vpop.f32.mrb[50].mxu0 }
0x2495   :  { %v12180_v21 = vadd.f32 %v12179_v46, %v19742_v60  ;;  %v16643_v42 = vpop.f32.mrb[105].mxu1  ;;  %v16610_v37 = vpop.f32.mrb[51].mxu0 }
0x2497   :  { %v12271_v39 = vadd.f32 %v12270_v11, %v12180_v21  ;;  %v18197_v21 = vld [vmem:[%s20024_s10] ss:$0 sm:$0xff] }
0x249c   :  { %v12350_v6 = vpop.f32.mrb[52].mxu0  ;;  %v12585_v14 = vpop.f32.mrb[106].mxu1 }
0x249d   :  { %v12351_v24 = vadd.f32 %v12350_v6, %v12271_v39  ;;  %v16632_v9 = vpop.f32.mrb[53].mxu0  ;;  %v16665_v18 = vpop.f32.mrb[107].mxu1 }
0x249f   :  { %v12428_v8 = vadd.f32 %v12427_v52, %v12351_v24 }
0x24a4   :  { %v12510_v40 = vpop.f32.mrb[54].mxu0  ;;  %v12757_v50 = vpop.f32.mrb[108].mxu1 }
0x24a5   :  { %v12511_v26 = vadd.f32 %v12510_v40, %v12428_v8  ;;  %v16654_v47 = vpop.f32.mrb[55].mxu0  ;;  %v16687_v59 = vpop.f32.mrb[109].mxu1 }
0x24a7   :  { %v12586_v61 = vadd.f32 %v12585_v14, %v12511_v26 }
0x24ac   :  { %v12666_v16 = vpop.f32.mrb[56].mxu0  ;;  %v12914_v19 = vpop.f32.mrb[110].mxu1 }
0x24ad   :  { %v12758_v31 = vadd.f32 %v12757_v50, %v12666_v16  ;;  %v16676_v32 = vpop.f32.mrb[57].mxu0  ;;  %v16709_v60 = vpop.f32.mrb[111].mxu1 }
0x24b4   :  { %v12837_v17 = vpop.f32.mrb[58].mxu0  ;;  %v13072_v34 = vpop.f32.mrb[112].mxu1 }
0x24b5   :  { %v12838_v25 = vadd.f32 %v12837_v17, %v12758_v31  ;;  %v16698_v63 = vpop.f32.mrb[59].mxu0  ;;  %v16731_v0 = vpop.f32.mrb[113].mxu1 }
0x24b7   :  { %v12915_v33 = vadd.f32 %v12914_v19, %v12838_v25 }
0x24bc   :  { %v12997_v35 = vpop.f32.mrb[60].mxu0 }
0x24bd   :  { %v12998_v11 = vadd.f32 %v12997_v35, %v12915_v33  ;;  %v16720_v36 = vpop.f32.mrb[61].mxu0  ;;  %v20197_v33 = vld [vmem:[#allocation20_spill] sm:$0xff] }
0x24bf   :  { %v13073_v52 = vadd.f32 %v13072_v34, %v12998_v11 }
0x24c1   :  { %v13076_v46 = vadd.f32 %v13073_v52, %v12586_v61 }
0x24c3   :  { %v13077_v42 = vadd.f32 %v18197_v21, %v13076_v46 }
0x24c5   :  { %18159 = vtanh.f32 %v13077_v42  ;;  %v14222_v39 = vmul.f32 -1.442695, %v13077_v42 }
0x24c7   :  { %18161 = vpow2.f32 %v14222_v39 }
0x24cf   :  { %v18160_v37 = vpop.eup %18159 }
0x24d0   :  { %13087 = vrot.lane.b32.xlu1 %v18160_v37, %s18203_s17 }
0x24d1   :  { %v18162_v6 = vpop.eup %18161 }
0x24d2   :  { %v13081_v14 = vadd.f32 1.0, %v18162_v6 }
0x24d4   :  { %18163 = vrcp.f32 %v13081_v14 }
0x24de   :  { %v18164_v24 = vpop.eup %18163 }
0x24df   :  { %v13085_v8 = vmul.f32 %v18164_v24, %v19506_v15 }
0x2542   :  { %v13088_v9 = vpop.permute.xlu1 %13087 }
0x2543   :  { %v13090_v18 = vmul.f32 %v18164_v24, %v13088_v9  ;;  %v20198_v9 = vld [vmem:[#allocation4_spill] sm:$0xff] }
0x2545   :  { %13092 = vrot.lane.b32.xlu0 %v13090_v18, %s18204_s8 }
0x25b7   :  { %v13093_v40 = vpop.permute.xlu0 %13092 }
0x25b8   :  { %v19830_v50 = vadd.f32 %v13093_v40, %v13085_v8  ;;  %v20199_v8 = vld [vmem:[#allocation21_spill] sm:$0xff] }
0x25ba   :  { %18165 = vtanh.f32 %v19830_v50  ;;  %v14185_v11 = vrot.slane %v19830_v50, 4 }
0x25c4   :  { %v18166_v26 = vpop.eup %18165 }
0x25c5   :  { %13098 = vrot.lane.b32.xlu1 %v18166_v26, %s18203_s17 }
0x25c9   :  { %13106 = vrot.lane.b32.xlu1 %v19585_v20, %s18203_s17 }
0x2637   :  { %v13099_v47 = vpop.permute.xlu1 %13098 }
0x2638   :  { %v19836_v59 = vmul.f32 %v18164_v24, %v13099_v47 }
0x263a   :  { %13103 = vrot.lane.b32.xlu0 %v19836_v59, %s18204_s8 }
0x263b   :  { %v13107_v61 = vpop.permute.xlu1 %13106 }
0x26ac   :  { %v13104_v16 = vpop.permute.xlu0 %13103 }
0x26ad   :  { %v13109_v15 = vsel %vm89_vm1, %v13104_v16, %v13107_v61 }
0x26ae   :  { %v13111_v19 = vsel %vm2555_vm5, %v13109_v15, 0 }
0x26af   :  { %v13186_v31 = vand.u32 4294901760, %v13111_v19 }
0x26b1   :  { %v13187_v32 = vsub.f32 %v13111_v19, %v13186_v31 }
0x26b3   :  { %v13188_v60 = vand.u32 4294901760, %v13187_v32 }
0x26b5   :  { %v13189_v17 = vsub.f32 %v13187_v32, %v13188_v60 }
0x26b7   :  { %v13190_v34 = vand.u32 4294901760, %v13189_v17 }
0x26b9   :  { %16749 = vmatmul.mubr.f32.vlgmr.msra.gmra.mrb[62].mxu0 %v13190_v34 }
0x26ba   :  { %17826 = vmatpush3.bf16.msra.mxu0 %v20149_v43  ;;  %16767 = vmatprep.mubr.msk.f32.mxu0 %vm18199_vm0, %v20144_v62 }
0x26bb   :  { %17827 = vmatprep.subr.bf16.mxu0 %v20143_v53 }
0x26be   :  { %17829 = vmatpush3.bf16.msra.mxu0 %v20150_v51 }
0x26bf   :  { %17830 = vmatprep.subr.bf16.mxu0 %v20143_v53 }
0x26c2   :  { %17832 = vmatpush3.bf16.msra.mxu0 %v20151_v44 }
0x26c3   :  { %17833 = vmatprep.subr.bf16.mxu0 %v20143_v53 }
0x26c6   :  { %17835 = vmatpush3.bf16.msra.mxu0 %v20152_v12 }
0x26c7   :  { %17836 = vmatprep.subr.bf16.mxu0 %v20143_v53 }
0x26c9   :  { %16768 = vmatmul.mubr.f32.vlgmr.msra.gmra.mrb[62].mxu0 %v13186_v31 }
0x26ca   :  { %17838 = vmatpush3.bf16.msra.mxu0 %v20153_v45  ;;  %16786 = vmatprep.mubr.msk.f32.mxu0 %vm18199_vm0, %v20144_v62 }
0x26cb   :  { %17839 = vmatprep.subr.bf16.mxu0 %v20143_v53 }
0x26ce   :  { %17841 = vmatpush3.bf16.msra.mxu0 %v20154_v30 }
0x26cf   :  { %17842 = vmatprep.subr.bf16.mxu0 %v20143_v53 }
0x26d2   :  { %17844 = vmatpush3.bf16.msra.mxu0 %v20155_v22 }
0x26d3   :  { %17845 = vmatprep.subr.bf16.mxu0 %v20143_v53 }
0x26d6   :  { %17847 = vmatpush3.bf16.msra.mxu0 %v20174_v10 }
0x26d7   :  { %17848 = vmatprep.subr.bf16.mxu0 %v20143_v53 }
0x26d9   :  { %16787 = vmatmul.mubr.f32.vlgmr.msra.gmra.mrb[62].mxu0 %v13187_v32 }
0x26da   :  { %17850 = vmatpush3.bf16.msra.mxu0 %v18727_v5  ;;  %16805 = vmatprep.mubr.msk.f32.mxu0 %vm18199_vm0, %v20144_v62 }
0x26db   :  { %17851 = vmatprep.subr.bf16.mxu0 %v20143_v53 }
0x26de   :  { %17853 = vmatpush3.bf16.msra.mxu0 %v18735_v28 }
0x26df   :  { %17854 = vmatprep.subr.bf16.mxu0 %v20143_v53 }
0x26e2   :  { %17856 = vmatpush3.bf16.msra.mxu0 %v18763_v3 }
0x26e3   :  { %17857 = vmatprep.subr.bf16.mxu0 %v20143_v53 }
0x26e6   :  { %17859 = vmatpush3.bf16.msra.mxu0 %v18800_v48 }
0x26e7   :  { %17860 = vmatprep.subr.bf16.mxu0 %v20143_v53 }
0x26e9   :  { %16806 = vmatmul.mubr.f32.vlgmr.msra.gmra.mrb[62].mxu0 %v13188_v60 }
0x26ea   :  { %17862 = vmatpush3.bf16.msra.mxu0 %v20175_v54  ;;  %16824 = vmatprep.mubr.msk.f32.mxu0 %vm18199_vm0, %v20144_v62 }
0x26eb   :  { %17863 = vmatprep.subr.bf16.mxu0 %v20143_v53 }
0x26ee   :  { %17865 = vmatpush3.bf16.msra.mxu0 %v20176_v1 }
0x26ef   :  { %17866 = vmatprep.subr.bf16.mxu0 %v20143_v53 }
0x26f2   :  { %17868 = vmatpush3.bf16.msra.mxu0 %v20177_v55  ;;  %v19902_v55 = vld [vmem:[%s20029_s14] ss:$0 sm:$0xff] }
0x26f3   :  { %17869 = vmatprep.subr.bf16.mxu0 %v20143_v53  ;;  %v19922_v35 = vadd.f32 %v19902_v55, %v20197_v33 }
0x26f6   :  { %17871 = vmatpush3.bf16.msra.mxu0 %v20178_v57  ;;  %v20196_v57 = vld [vmem:[#allocation35_spill] sm:$0xff] }
0x26f7   :  { %17872 = vmatprep.subr.bf16.mxu0 %v20143_v53 }
0x26f9   :  { %16825 = vmatmul.mubr.f32.vlgmr.msra.gmra.mrb[62].mxu0 %v13186_v31 }
0x26fa   :  { %17874 = vmatpush3.bf16.msra.mxu0 %v18727_v5  ;;  %16843 = vmatprep.mubr.msk.f32.mxu0 %vm18199_vm0, %v20144_v62 }
0x26fb   :  { %17875 = vmatprep.subr.bf16.mxu0 %v20143_v53 }
0x26fe   :  { %17877 = vmatpush3.bf16.msra.mxu0 %v18735_v28 }
0x26ff   :  { %17878 = vmatprep.subr.bf16.mxu0 %v20143_v53 }
0x2702   :  { %17880 = vmatpush3.bf16.msra.mxu0 %v18763_v3 }
0x2703   :  { %17881 = vmatprep.subr.bf16.mxu0 %v20143_v53 }
0x2706   :  { %17883 = vmatpush3.bf16.msra.mxu0 %v18800_v48 }
0x2709   :  { %16844 = vmatmul.mubr.f32.vlgmr.msra.gmra.mrb[62].mxu0 %v13186_v31 }
0x27dc   :  { %v13646_v43 = vpop.f32.mrb[62].mxu0 }
0x27dd   :  { %v17928_v51 = vadd.f32 %v19575_v27, %v13646_v43  ;;  %v16845_v5 = vpop.f32.mrb[63].mxu0  ;;  %v19906_v27 = vadd.f32 %v19902_v55, %v20196_v57 }
0x27df   :  { %18167 = vtanh.f32 %v17928_v51  ;;  %v14223_v12 = vmul.f32 -1.442695, %v17928_v51  ;;  %v3621_v20 = vsel %vm3620_vm6, %v19906_v27, -inf }
0x27e1   :  { %18169 = vpow2.f32 %v14223_v12 }
0x27e9   :  { %v18168_v44 = vpop.eup %18167 }
0x27ea   :  { %13659 = vrot.lane.b32.xlu0 %v18168_v44, %s18203_s17 }
0x27eb   :  { %v18170_v28 = vpop.eup %18169 }
0x27ec   :  { %v13653_v45 = vadd.f32 1.0, %v18170_v28 }
0x27ee   :  { %18171 = vrcp.f32 %v13653_v45 }
0x27f8   :  { %v18172_v30 = vpop.eup %18171 }
0x27f9   :  { %v13657_v48 = vmul.f32 %v18172_v30, %v19581_v13  ;;  %v19910_v13 = vadd.f32 %v19902_v55, %v19669_v38  ;;  %v7136_v38 = vsel %vm3620_vm6, %v19922_v35, -inf }
0x27fb   :  { %v10650_v25 = vsel %vm3620_vm6, %v19910_v13, -inf }
0x285c   :  { %v13660_v3 = vpop.permute.xlu0 %13659 }
0x285d   :  { %v13662_v22 = vmul.f32 %v18172_v30, %v13660_v3 }
0x285f   :  { %13664 = vrot.lane.b32.xlu1 %v13662_v22, %s18204_s8 }
0x28d1   :  { %v13665_v10 = vpop.permute.xlu1 %13664 }
0x28d2   :  { %v19895_v54 = vadd.f32 %v13665_v10, %v13657_v48 }
0x28d4   :  { %18173 = vtanh.f32 %v19895_v54  ;;  %v14190_v12 = vrot.slane %v19895_v54, 2  ;;  %v20200_v54 = vld [vmem:[#allocation36_spill] sm:$0xff] }
0x28de   :  { %v18174_v1 = vpop.eup %18173 }
0x28df   :  { %13670 = vrot.lane.b32.xlu0 %v18174_v1, %s18203_s17 }
0x28fe   :  { %3622 = vmax.xlane.f32.xlu0 %v3621_v20 }
0x2902   :  { %10651 = vmax.xlane.f32.xlu0 %v10650_v25 }
0x2951   :  { %v13671_v63 = vpop.permute.xlu0 %13670 }
0x2952   :  { %v19916_v0 = vmul.f32 %v18172_v30, %v13671_v63 }
0x2954   :  { %13675 = vrot.lane.b32.xlu1 %v19916_v0, %s18204_s8 }
0x2978   :  { %7137 = vmax.xlane.f32.xlu1 %v7136_v38 }
0x2989   :  { %14186 = vrot.lane.b32.xlu1 %v14185_v11, %s18203_s17 }
0x298b   :  { %v19928_v36 = vpop.xlane.xlu0 %3622 }
0x298c   :  { %v3624_v52 = vsub.f32 %v19906_v27, %v19928_v36 }
0x298e   :  { %v3625_v21 = vmul.f32 1.442695, %v3624_v52 }
0x298f   :  { %v19932_v46 = vpop.xlane.xlu0 %10651 }
0x2990   :  { %v10653_v42 = vsub.f32 %v19910_v13, %v19932_v46  ;;  %18175 = vpow2.f32 %v3625_v21 }
0x2992   :  { %v10654_v37 = vmul.f32 1.442695, %v10653_v42 }
0x2994   :  { %18177 = vpow2.f32 %v10654_v37 }
0x299a   :  { %v18176_v39 = vpop.eup %18175 }
0x299b   :  { %v3627_v6 = vsel %vm3620_vm6, %v18176_v39, 0.0 }
0x299e   :  { %v18178_v14 = vpop.eup %18177 }
0x299f   :  { %v10656_v24 = vsel %vm3620_vm6, %v18178_v14, 0.0 }
0x29ad   :  { %3628 = vadd.xlane.f32.xlu1 %v3627_v6 }
0x29b1   :  { %10657 = vadd.xlane.f32.xlu1 %v10656_v24 }
0x29c2   :  { %3634 = vrot.lane.b32.xlu1 %v20198_v9, %s18204_s8 }
0x29c6   :  { %v13676_v18 = vpop.permute.xlu1 %13675  ;;  %10663 = vrot.lane.b32.xlu1 %v20199_v8, %s18204_s8 }
0x29c7   :  { %v13677_v40 = vsel %vm89_vm1, %v13676_v18, 0 }
0x29c8   :  { %v13748_v50 = vand.u32 4294901760, %v13677_v40 }
0x29ca   :  { %v13749_v26 = vsub.f32 %v13677_v40, %v13748_v50  ;;  %14177 = vrot.lane.b32.xlu1 %v19676_v4, %s18204_s8 }
0x29cc   :  { %v13750_v47 = vand.u32 4294901760, %v13749_v26 }
0x29ce   :  { %v13751_v61 = vsub.f32 %v13749_v26, %v13750_v47 }
0x29d0   :  { %v13752_v16 = vand.u32 4294901760, %v13751_v61 }
0x29d2   :  { %16855 = vmatmul.mubr.f32.vlgmr.msra.gmra.mrb[114].mxu1 %v13752_v16 }
0x29d3   :  { %17892 = vmatpush3.bf16.msra.mxu1 %v18927_v41  ;;  %16865 = vmatprep.mubr.msk.f32.mxu1 %vm18199_vm0, %v20144_v62  ;;  %v14182_v41 = vrot.slane %v19916_v0, 6 }
0x29d4   :  { %17893 = vmatprep.subr.bf16.mxu1 %v20143_v53 }
0x29d7   :  { %17895 = vmatpush3.bf16.msra.mxu1 %v18933_v29 }
0x29d8   :  { %17896 = vmatprep.subr.bf16.mxu1 %v20143_v53 }
0x29da   :  { %16866 = vmatmul.mubr.f32.vlgmr.msra.gmra.mrb[114].mxu1 %v13748_v50 }
0x29db   :  { %17898 = vmatpush3.bf16.msra.mxu1 %v18935_v2  ;;  %16876 = vmatprep.mubr.msk.f32.mxu1 %vm18199_vm0, %v20144_v62 }
0x29dc   :  { %17899 = vmatprep.subr.bf16.mxu1 %v20143_v53 }
0x29df   :  { %17901 = vmatpush3.bf16.msra.mxu1 %v18937_v56  ;;  %v14195_v56 = vsel %vm14194_vm7, %v19836_v59, %v14182_v41 }
0x29e0   :  { %17902 = vmatprep.subr.bf16.mxu1 %v20143_v53 }
0x29e2   :  { %16877 = vmatmul.mubr.f32.vlgmr.msra.gmra.mrb[114].mxu1 %v13749_v26 }
0x29e3   :  { %17904 = vmatpush3.bf16.msra.mxu1 %v18913_v7  ;;  %16887 = vmatprep.mubr.msk.f32.mxu1 %vm18199_vm0, %v20144_v62 }
0x29e4   :  { %17905 = vmatprep.subr.bf16.mxu1 %v20143_v53 }
0x29e7   :  { %17907 = vmatpush3.bf16.msra.mxu1 %v18923_v49 }
0x29e8   :  { %17908 = vmatprep.subr.bf16.mxu1 %v20143_v53 }
0x29ea   :  { %16888 = vmatmul.mubr.f32.vlgmr.msra.gmra.mrb[114].mxu1 %v13750_v47 }
0x29eb   :  { %17910 = vmatpush3.bf16.msra.mxu1 %v18939_v23  ;;  %16898 = vmatprep.mubr.msk.f32.mxu1 %vm18199_vm0, %v20144_v62 }
0x29ec   :  { %17911 = vmatprep.subr.bf16.mxu1 %v20143_v53 }
0x29ef   :  { %17913 = vmatpush3.bf16.msra.mxu1 %v18941_v58 }
0x29f0   :  { %17914 = vmatprep.subr.bf16.mxu1 %v20143_v53 }
0x29f2   :  { %16899 = vmatmul.mubr.f32.vlgmr.msra.gmra.mrb[114].mxu1 %v13748_v50 }
0x29f3   :  { %17916 = vmatpush3.bf16.msra.mxu1 %v18913_v7  ;;  %16909 = vmatprep.mubr.msk.f32.mxu1 %vm18199_vm0, %v20144_v62 }
0x29f4   :  { %17917 = vmatprep.subr.bf16.mxu1 %v20143_v53 }
0x29f7   :  { %17919 = vmatpush3.bf16.msra.mxu1 %v18923_v49 }
0x29fa   :  { %16910 = vmatmul.mubr.f32.vlgmr.msra.gmra.mrb[114].mxu1 %v13748_v50 }
0x2a05   :  { %v7138_v29 = vpop.xlane.xlu1 %7137 }
0x2a06   :  { %v7139_v28 = vsub.f32 %v19922_v35, %v7138_v29 }
0x2a08   :  { %v7140_v45 = vmul.f32 1.442695, %v7139_v28 }
0x2a09   :  { %v14187_v2 = vpop.permute.xlu1 %14186 }
0x2a0a   :  { %v14197_v23 = vsel %vm14196_vm8, %v14195_v56, %v14187_v2 }
0x2a3a   :  { %v3629_v58 = vpop.xlane.xlu1 %3628 }
0x2a3b   :  { %18179 = vlog2.f32 %v3629_v58 }
0x2a3e   :  { %v10658_v7 = vpop.xlane.xlu1 %10657 }
0x2a3f   :  { %18181 = vlog2.f32 %v10658_v7 }
0x2a40   :  { %18183 = vpow2.f32 %v7140_v45 }
0x2a42   :  { %v3635_v49 = vpop.permute.xlu1 %3634 }
0x2a45   :  { %v18180_v4 = vpop.eup %18179 }
0x2a46   :  { %v3631_v62 = vmul.f32 0.6931472, %v18180_v4  ;;  %v10664_v17 = vpop.permute.xlu1 %10663 }
0x2a48   :  { %v3632_v53 = vadd.f32 %v3631_v62, %v19928_v36 }
0x2a49   :  { %v18182_v15 = vpop.eup %18181 }
0x2a4a   :  { %v10660_v19 = vmul.f32 0.6931472, %v18182_v15  ;;  %v3633_v31 = vsub.f32 %v19906_v27, %v3632_v53  ;;  %v18184_v30 = vpop.eup %18183  ;;  %v14178_v37 = vpop.permute.xlu1 %14177 }
0x2a4b   :  { %v7142_v3 = vsel %vm3620_vm6, %v18184_v30, 0.0 }
0x2a4c   :  { %v10661_v32 = vadd.f32 %v10660_v19, %v19932_v46  ;;  %v3637_v60 = vsel %vm89_vm1, %v3633_v31, %v3635_v49 }
0x2a4d   :  { %3639 = vst.msk [vmem:[%s20030_s15] sm:$0x3] %vm3638_vm9, %v3637_v60 }
0x2a4e   :  { %v10662_v59 = vsub.f32 %v19910_v13, %v10661_v32 }
0x2a50   :  { %v10666_v34 = vsel %vm89_vm1, %v10662_v59, %v10664_v17 }
0x2a51   :  { %10667 = vst.msk [vmem:[%s20030_s15 + $0x4] sm:$0x3] %vm3638_vm9, %v10666_v34 }
0x2acd   :  { %v14160_v43 = vpop.f32.mrb[114].mxu1 }
0x2ace   :  { %v17929_v51 = vadd.f32 %v19902_v55, %v14160_v43  ;;  %v16911_v5 = vpop.f32.mrb[115].mxu1 }
0x2ad0   :  { %v14164_v44 = vsel %vm3620_vm6, %v17929_v51, -inf }
0x2ad1   :  { %14165 = vmax.xlane.f32.xlu0 %v14164_v44 }
0x2ae7   :  { %14191 = vrot.lane.b32.xlu0 %v14190_v12, %s18203_s17 }
0x2b06   :  { %7143 = vadd.xlane.f32.xlu0 %v7142_v3 }
0x2b5e   :  { %v14166_v22 = vpop.xlane.xlu0 %14165 }
0x2b5f   :  { %v14167_v48 = vsub.f32 %v17929_v51, %v14166_v22 }
0x2b61   :  { %v14168_v10 = vmul.f32 1.442695, %v14167_v48 }
0x2b62   :  { %v14192_v57 = vpop.permute.xlu0 %14191 }
0x2b63   :  { %18185 = vpow2.f32 %v14168_v10  ;;  %v14199_v27 = vsel %vm14198_vm10, %v14197_v23, %v14192_v57 }
0x2b6d   :  { %v18186_v1 = vpop.eup %18185 }
0x2b6e   :  { %v14170_v55 = vsel %vm3620_vm6, %v18186_v1, 0.0 }
0x2b6f   :  { %14171 = vadd.xlane.f32.xlu0 %v14170_v55 }
0x2b85   :  { %7149 = vrot.lane.b32.xlu0 %v20200_v54, %s18204_s8 }
0x2b89   :  { %14201 = vrot.lane.b32.xlu0 %v14199_v27, %s18204_s8 }
0x2b93   :  { %v7144_v13 = vpop.xlane.xlu0 %7143 }
0x2b94   :  { %18187 = vlog2.f32 %v7144_v13 }
0x2b9e   :  { %v18188_v20 = vpop.eup %18187 }
0x2b9f   :  { %v7146_v25 = vmul.f32 0.6931472, %v18188_v20 }
0x2ba1   :  { %v7147_v63 = vadd.f32 %v7146_v25, %v7138_v29 }
0x2ba3   :  { %v7148_v33 = vsub.f32 %v19922_v35, %v7147_v63 }
0x2bfc   :  { %v14172_v0 = vpop.xlane.xlu0 %14171 }
0x2bfd   :  { %18189 = vlog2.f32 %v14172_v0 }
0x2c00   :  { %v7150_v38 = vpop.permute.xlu0 %7149 }
0x2c01   :  { %v7152_v11 = vsel %vm89_vm1, %v7148_v33, %v7150_v38 }
0x2c02   :  { %7153 = vst.msk [vmem:[%s20030_s15 + $0x2] sm:$0x3] %vm3638_vm9, %v7152_v11 }
0x2c04   :  { %v14202_v36 = vpop.permute.xlu0 %14201 }
0x2c05   :  { %14204 = vst.msk [vmem:[%s20031_s16] sm:$0xff] %vm89_vm1, %v14202_v36 }
0x2c07   :  { %v18190_v52 = vpop.eup %18189 }
0x2c08   :  { %v14174_v46 = vmul.f32 0.6931472, %v18190_v52 }
0x2c0a   :  { %v14175_v21 = vadd.f32 %v14174_v46, %v14166_v22 }
0x2c0c   :  { %v14176_v42 = vsub.f32 %v17929_v51, %v14175_v21 }
0x2c0e   :  { %v14180_v35 = vsel %vm89_vm1, %v14176_v42, %v14178_v37 }
0x2c0f   :  { %14181 = vst.msk [vmem:[%s20030_s15 + $0x6] sm:$0x3] %vm3638_vm9, %v14180_v35 }

</bundles_post_ra>
